<compile_context>
chip_gen: v6e
topology: v6e:2x2x1
jax: 0.10.0
libtpu: 0.0.40
codegen_flags: <defaults>
</compile_context>

<pallas_src>
import numpy as np
import jax
import jax.numpy as jnp
from jax.experimental import pallas as pl
from jax.experimental.pallas import tpu as pltpu

N_LINKS = 4
ACT_DIM = N_LINKS * 6 - 2              # 22
OBS_DIM = 7 + ACT_DIM + 6 + ACT_DIM    # 57

PACK_IN = 74       # packed per-sample input: jcat(48) | ext(2) | jlrs(24)
PACK_W = 32        # lane width of packed weight buffer (max dense D_out = 32)


# ---------------------------------------------------------------------------
# Parameters (deterministic synthetic init, PyTorch shapes)
# ---------------------------------------------------------------------------
def make_params(key):
    ks = jax.random.split(key, 10)

    def conv_p(k, c_out, c_in, ksz):
        kw, kb = jax.random.split(k)
        bound = 1.0 / np.sqrt(c_in * ksz)
        w = jax.random.uniform(kw, (c_out, c_in, ksz), jnp.float32, -bound, bound)
        b = jax.random.uniform(kb, (c_out,), jnp.float32, -bound, bound)
        return w, b

    def deconv_p(k, c_in, c_out, ksz):
        kw, kb = jax.random.split(k)
        bound = 1.0 / np.sqrt(c_in * ksz)
        w = jax.random.uniform(kw, (c_in, c_out, ksz), jnp.float32, -bound, bound)
        b = jax.random.uniform(kb, (c_out,), jnp.float32, -bound, bound)
        return w, b

    return {
        "conv_1": conv_p(ks[0], 4, 12, 3),
        "conv_2": conv_p(ks[1], 8, 4, 3),
        "conv_3": conv_p(ks[2], 8, 8, 3),
        "conv_4": conv_p(ks[3], 8, 8, 2),
        "conv_emb_1": conv_p(ks[4], 8, 10, 1),
        "conv_emb_2": conv_p(ks[5], 8, 8, 1),
        "deconv_1": deconv_p(ks[6], 8, 4, 3),
        "deconv_2": deconv_p(ks[7], 4, 4, 3),
        "deconv_3": deconv_p(ks[8], 4, 8, 3),
        "deconv_4": deconv_p(ks[9], 14, 6, 3),
        # log_std exists in the module but is unused by forward()
        "log_std": jnp.zeros((1, ACT_DIM), jnp.float32),
    }


# ---------------------------------------------------------------------------
# Glue: lower every conv / deconv to a dense matrix on flattened activations
# (flattening convention: NLC, index = l * C + c, per sample)
# ---------------------------------------------------------------------------
def _conv_dense(w, b, l_in, pad):
    """Conv1d (stride 1) as a dense (L_in*C_in, L_out*C_out) map + flat bias."""
    w = np.asarray(w, np.float32)
    b = np.asarray(b, np.float32)
    c_out, c_in, k_sz = w.shape
    l_out = l_in + 2 * pad - k_sz + 1
    d = np.zeros((l_in * c_in, l_out * c_out), np.float32)
    for lo in range(l_out):
        for k in range(k_sz):
            li = lo + k - pad
            if 0 <= li < l_in:
                d[li * c_in:(li + 1) * c_in, lo * c_out:(lo + 1) * c_out] += w[:, :, k].T
    return d, np.tile(b, l_out)


def _deconv_dense(w, b, l_in, pad):
    """ConvTranspose1d (stride 1) as a dense map + flat bias."""
    w = np.asarray(w, np.float32)
    b = np.asarray(b, np.float32)
    c_in, c_out, k_sz = w.shape
    l_out = l_in + k_sz - 1 - 2 * pad
    d = np.zeros((l_in * c_in, l_out * c_out), np.float32)
    for li in range(l_in):
        for k in range(k_sz):
            lo = li + k - pad
            if 0 <= lo < l_out:
                d[li * c_in:(li + 1) * c_in, lo * c_out:(lo + 1) * c_out] += w[:, :, k]
    return d, np.tile(b, l_out)


def _embed_rows(w, row_start):
    """Zero-embed a (r, c) matrix into PACK_IN rows so it acts directly on the
    full packed input vector (avoids lane-slicing inside the kernel)."""
    out = np.zeros((PACK_IN, w.shape[1]), np.float32)
    out[row_start:row_start + w.shape[0], :] = w
    return out


def build_packed_weights(params):
    d1, b1 = _conv_dense(*params["conv_1"], l_in=4, pad=1)        # (48, 16)
    d2, b2 = _conv_dense(*params["conv_2"], l_in=4, pad=1)        # (16, 32)
    d3, b3 = _conv_dense(*params["conv_3"], l_in=4, pad=0)        # (32, 16)
    d4, b4 = _conv_dense(*params["conv_4"], l_in=2, pad=0)        # (16, 8)
    de1, be1 = _conv_dense(*params["conv_emb_1"], l_in=1, pad=0)  # (10, 8)
    de2, be2 = _conv_dense(*params["conv_emb_2"], l_in=1, pad=0)  # (8, 8)
    dd1, bd1 = _deconv_dense(*params["deconv_1"], l_in=1, pad=0)  # (8, 12)
    dd2, bd2 = _deconv_dense(*params["deconv_2"], l_in=3, pad=1)  # (12, 12)
    dd3, bd3 = _deconv_dense(*params["deconv_3"], l_in=3, pad=1)  # (12, 24)
    dd4, bd4 = _deconv_dense(*params["deconv_4"], l_in=4, pad=1)  # (56, 24)

    # nn.Upsample(size=4, mode='nearest'): length 3 -> 4, indices [0, 0, 1, 2],
    # expressed as a (24, 32) selection matrix on flattened activations.
    sel = np.zeros((24, 32), np.float32)
    for lo, li in enumerate([0, 0, 1, 2]):
        sel[li * 8:(li + 1) * 8, lo * 8:(lo + 1) * 8] = np.eye(8, dtype=np.float32)

    # Split deconv_4 input rows: channels 0..7 = upsampled fm_dc3, 8..13 = jlrs.
    rows_up = [l * 14 + c for l in range(4) for c in range(8)]
    rows_j = [l * 14 + 8 + c for l in range(4) for c in range(6)]
    wd4_up = sel @ dd4[rows_up, :]                  # (24, 24)  upsample folded in
    wd4_j = dd4[rows_j, :]                          # (24, 24)

    # Fold the PyTorch NCL channel-major flatten + `[:, 2:]` into the columns.
    perm = np.array([(j % 4) * 6 + j // 4 for j in range(24)])
    wd4_up = wd4_up[:, perm][:, 2:]                 # (24, 22)
    wd4_j = wd4_j[:, perm][:, 2:]                   # (24, 22)
    bd4 = bd4[perm][2:]                             # (22,)

    entries = [
        ("d1x", _embed_rows(d1, 0)), ("b1", b1),
        ("d2", d2), ("b2", b2),
        ("d3", d3), ("b3", b3),
        ("d4", d4), ("b4", b4),
        ("we1_c4", de1[0:8, :]), ("we1_extx", _embed_rows(de1[8:10, :], 48)),
        ("be1", be1),
        ("we2", de2), ("be2", be2),
        ("wd1", dd1), ("bd1", bd1),
        ("wd2", dd2), ("bd2", bd2),
        ("wd3", dd3), ("bd3", bd3),
        ("wd4_up", wd4_up), ("wd4_jx", _embed_rows(wd4_j, 50)),
        ("bd4", bd4),
    ]

    # Pack everything into one (R, 32) f32 buffer; 8-row-aligned chunks.
    chunks, layout, off = [], {}, 0
    for name, arr in entries:
        arr = np.asarray(arr, np.float32)
        if arr.ndim == 1:
            arr = arr[None, :]
        r, c = arr.shape
        r_pad = ((r + 7) // 8) * 8
        buf = np.zeros((r_pad, PACK_W), np.float32)
        buf[:r, :c] = arr
        layout[name] = (off, r, c)
        chunks.append(buf)
        off += r_pad
    return jnp.asarray(np.concatenate(chunks, axis=0)), layout


# ---------------------------------------------------------------------------
# Glue: preprocessing (mirrors the PyTorch tensor surgery exactly)
# ---------------------------------------------------------------------------
def preprocess_pack(x):
    n = x.shape[0]
    # psi = gamma Euler angle of numpy-quaternion's as_euler_angles(q) with
    # q = (w, x, y, z) = x[0, 3:7]:  gamma = atan2(z, w) - atan2(-x, y)
    qw, qx, qy, qz = x[0, 3], x[0, 4], x[0, 5], x[0, 6]
    psi = jnp.arctan2(qz, qw) - jnp.arctan2(-qx, qy)
    ext = jnp.concatenate(
        [jnp.full((n, 1), psi, jnp.float32),
         x[:, 7 + ACT_DIM + 5: 7 + ACT_DIM + 6]], axis=1)                # (n, 2)

    zeros2 = jnp.zeros((n, 2), jnp.float32)
    jl = jnp.concatenate([zeros2, x[:, 7:7 + ACT_DIM]], axis=1)          # (n, 24) NCL
    jdl = jnp.concatenate([zeros2, x[:, 7 + ACT_DIM + 6:]], axis=1)      # (n, 24) NCL
    jlrs = jnp.transpose(jl.reshape(n, 6, 4), (0, 2, 1))                 # (n, 4, 6)
    jdlrs = jnp.transpose(jdl.reshape(n, 6, 4), (0, 2, 1))               # (n, 4, 6)
    jcat = jnp.concatenate([jlrs, jdlrs], axis=2).reshape(n, 48)         # l-major flat
    return jnp.concatenate([jcat, ext, jlrs.reshape(n, 24)], axis=1)     # (n, 74)


# ---------------------------------------------------------------------------
# Pallas kernel: one batch block per grid step, one matmul per layer
# ---------------------------------------------------------------------------
def make_policy_kernel(layout):
    def w_of(ref, name):
        off, r, c = layout[name]
        return ref[off:off + r, 0:c]          # static slice of the packed buffer

    def kernel(x_ref, w_ref, o_ref):
        def mm(a, name):
            return jnp.dot(a, w_of(w_ref, name), preferred_element_type=jnp.float32)

        def bias(name):
            return w_of(w_ref, name)          # (1, c) row, broadcasts over batch

        x = x_ref[...]                        # (B, 74): jcat | ext | jlrs
        h = jnp.tanh(mm(x, "d1x") + bias("b1"))                           # conv_1
        h = jnp.tanh(mm(h, "d2") + bias("b2"))                            # conv_2
        h = jnp.tanh(mm(h, "d3") + bias("b3"))                            # conv_3
        h = jnp.tanh(mm(h, "d4") + bias("b4"))                            # conv_4
        h = jnp.tanh(mm(h, "we1_c4") + mm(x, "we1_extx") + bias("be1"))   # conv_emb_1
        h = jnp.tanh(mm(h, "we2") + bias("be2"))                          # conv_emb_2
        h = jnp.tanh(mm(h, "wd1") + bias("bd1"))                          # deconv_1
        h = jnp.tanh(mm(h, "wd2") + bias("bd2"))                          # deconv_2
        h = jnp.tanh(mm(h, "wd3") + bias("bd3"))                          # deconv_3
        # upsample + deconv_4 + channel-major flatten + [:, 2:] folded into weights
        o_ref[...] = mm(h, "wd4_up") + mm(x, "wd4_jx") + bias("bd4")
    return kernel


def make_forward(layout, wpack_shape, block_b=256):
    kernel = make_policy_kernel(layout)

    def forward(x, wpack):
        n = x.shape[0]
        packed = preprocess_pack(x)
        n_pad = ((n + block_b - 1) // block_b) * block_b
        if n_pad != n:
            packed = jnp.concatenate(
                [packed, jnp.zeros((n_pad - n, PACK_IN), jnp.float32)], axis=0)

        out = pl.pallas_call(
            kernel,
            out_shape=jax.ShapeDtypeStruct((n_pad, ACT_DIM), jnp.float32),
            grid=(n_pad // block_b,),
            in_specs=[
                pl.BlockSpec((block_b, PACK_IN), lambda i: (i, 0)),   # batch block
                pl.BlockSpec(wpack_shape, lambda i: (0, 0)),          # packed weights
            ],
            out_specs=pl.BlockSpec((block_b, ACT_DIM), lambda i: (i, 0)),
            compiler_params=pltpu.CompilerParams(
                dimension_semantics=("parallel",)),
        )(packed, wpack)
        return out[:n]

    return jax.jit(forward)


# ---------------------------------------------------------------------------
# Pure-JAX reference (per-tap NLC convs straight from the PyTorch weights)
# ---------------------------------------------------------------------------
def ref_forward(x, params):
    n = x.shape[0]
    qw, qx, qy, qz = x[0, 3], x[0, 4], x[0, 5], x[0, 6]
    psi = jnp.arctan2(qz, qw) - jnp.arctan2(-qx, qy)
    ext = jnp.concatenate(
        [jnp.full((n, 1), psi, jnp.float32),
         x[:, 7 + ACT_DIM + 5: 7 + ACT_DIM + 6]], axis=1)
    zeros2 = jnp.zeros((n, 2), jnp.float32)
    jl = jnp.concatenate([zeros2, x[:, 7:7 + ACT_DIM]], axis=1)
    jdl = jnp.concatenate([zeros2, x[:, 7 + ACT_DIM + 6:]], axis=1)
    jlrs = jnp.transpose(jl.reshape(n, 6, 4), (0, 2, 1))
    jdlrs = jnp.transpose(jdl.reshape(n, 6, 4), (0, 2, 1))
    jcat = jnp.concatenate([jlrs, jdlrs], axis=2)

    def conv(xn, name, pad, act=True):
        w, b = params[name]
        c_out, c_in, k_sz = w.shape
        l_in = xn.shape[1]
        l_out = l_in + 2 * pad - k_sz + 1
        if pad:
            xn = jnp.pad(xn, ((0, 0), (pad, pad), (0, 0)))
        acc = jnp.zeros((n, l_out, c_out), jnp.float32)
        for k in range(k_sz):
            acc += jnp.einsum("nlc,dc->nld", xn[:, k:k + l_out, :], w[:, :, k])
        acc += b[None, None, :]
        return jnp.tanh(acc) if act else acc

    def deconv(xn, name, pad, act=True):
        w, b = params[name]
        c_in, c_out, k_sz = w.shape
        l_in = xn.shape[1]
        l_full = l_in + k_sz - 1
        l_out = l_full - 2 * pad
        acc = jnp.zeros((n, l_full, c_out), jnp.float32)
        for k in range(k_sz):
            acc = acc.at[:, k:k + l_in, :].add(
                jnp.einsum("nlc,cd->nld", xn, w[:, :, k]))
        acc = acc[:, pad:pad + l_out, :] + b[None, None, :]
        return jnp.tanh(acc) if act else acc

    c1 = conv(jcat, "conv_1", 1)
    c2 = conv(c1, "conv_2", 1)
    c3 = conv(c2, "conv_3", 0)
    c4 = conv(c3, "conv_4", 0)
    e1 = conv(jnp.concatenate([c4, ext[:, None, :]], axis=2), "conv_emb_1", 0)
    e2 = conv(e1, "conv_emb_2", 0)
    d1 = deconv(e2, "deconv_1", 0)
    d2 = deconv(d1, "deconv_2", 1)
    d3 = deconv(d2, "deconv_3", 1)
    up = d3[:, jnp.array([0, 0, 1, 2]), :]
    d4 = deconv(jnp.concatenate([up, jlrs], axis=2), "deconv_4", 1, act=False)
    acts = jnp.transpose(d4, (0, 2, 1)).reshape(n, 24)
    return acts[:, 2:]


# ---------------------------------------------------------------------------
if __name__ == "__main__":
    key = jax.random.PRNGKey(0)
    k_x, k_p = jax.random.split(key)

    N = 2
    x = jax.random.normal(k_x, (N, OBS_DIM), dtype=jnp.float32)

    params = make_params(k_p)
    wpack, layout = build_packed_weights(params)

    fwd = make_forward(layout, wpack.shape, block_b=256)
    out = jax.block_until_ready(fwd(x, wpack))

    ref = jax.block_until_ready(ref_forward(x, params))
    np.testing.assert_allclose(np.asarray(out), np.asarray(ref),
                               rtol=1e-4, atol=1e-4)
    assert out.shape == (N, ACT_DIM)

    print("KERNEL_OK")
</pallas_src>

<mosaic_0001>
module attributes {stable_mosaic.version = 11 : i64} {
  func.func @kernel(%arg0: i32, %arg1: memref<256x74xf32, #tpu.memory_space<vmem>>, %arg2: memref<464x32xf32, #tpu.memory_space<vmem>>, %arg3: memref<256x22xf32, #tpu.memory_space<vmem>>) attributes {dimension_semantics = [#tpu.dimension_semantics<parallel>], iteration_bounds = array<i64: 1>, scalar_prefetch = 0 : i64, scratch_operands = 0 : i64, tpu.core_type = #tpu.core_type<tc>, window_params = [{transform_indices = @transform_0, window_bounds = array<i64: 256, 74>}, {pipeline_mode = #tpu.pipeline_mode<synchronous>, transform_indices = @transform_1, window_bounds = array<i64: 464, 32>}, {transform_indices = @transform_2, window_bounds = array<i64: 256, 22>}]} {
    %c0 = arith.constant 0 : index
    %c0_0 = arith.constant 0 : index
    %0 = vector.load %arg1[%c0, %c0_0] : memref<256x74xf32, #tpu.memory_space<vmem>>, vector<256x74xf32>
    %c0_1 = arith.constant 0 : index
    %c0_2 = arith.constant 0 : index
    %1 = vector.load %arg2[%c0_1, %c0_2] : memref<464x32xf32, #tpu.memory_space<vmem>>, vector<74x16xf32>
    %cst = arith.constant dense<0.000000e+00> : vector<256x16xf32>
    %2 = tpu.matmul %0, %1, %cst {dimension_numbers = #tpu.dot_dimension_numbers<[1], [0], [0], [1], [0, 0, 1, 1], [], []>} : vector<256x74xf32>, vector<74x16xf32>, vector<256x16xf32> -> vector<256x16xf32>
    %c80 = arith.constant 80 : index
    %c0_3 = arith.constant 0 : index
    %3 = vector.load %arg2[%c80, %c0_3] : memref<464x32xf32, #tpu.memory_space<vmem>>, vector<1x16xf32>
    %4 = vector.broadcast %3 : vector<1x16xf32> to vector<256x16xf32>
    %5 = arith.addf %2, %4 : vector<256x16xf32>
    %6 = math.tanh %5 : vector<256x16xf32>
    %c88 = arith.constant 88 : index
    %c0_4 = arith.constant 0 : index
    %7 = vector.load %arg2[%c88, %c0_4] : memref<464x32xf32, #tpu.memory_space<vmem>>, vector<16x32xf32>
    %cst_5 = arith.constant dense<0.000000e+00> : vector<256x32xf32>
    %8 = tpu.matmul %6, %7, %cst_5 {dimension_numbers = #tpu.dot_dimension_numbers<[1], [0], [0], [1], [0, 0, 1, 1], [], []>} : vector<256x16xf32>, vector<16x32xf32>, vector<256x32xf32> -> vector<256x32xf32>
    %c104 = arith.constant 104 : index
    %c0_6 = arith.constant 0 : index
    %9 = vector.load %arg2[%c104, %c0_6] : memref<464x32xf32, #tpu.memory_space<vmem>>, vector<1x32xf32>
    %10 = vector.broadcast %9 : vector<1x32xf32> to vector<256x32xf32>
    %11 = arith.addf %8, %10 : vector<256x32xf32>
    %12 = math.tanh %11 : vector<256x32xf32>
    %c112 = arith.constant 112 : index
    %c0_7 = arith.constant 0 : index
    %13 = vector.load %arg2[%c112, %c0_7] : memref<464x32xf32, #tpu.memory_space<vmem>>, vector<32x16xf32>
    %cst_8 = arith.constant dense<0.000000e+00> : vector<256x16xf32>
    %14 = tpu.matmul %12, %13, %cst_8 {dimension_numbers = #tpu.dot_dimension_numbers<[1], [0], [0], [1], [0, 0, 1, 1], [], []>} : vector<256x32xf32>, vector<32x16xf32>, vector<256x16xf32> -> vector<256x16xf32>
    %c144 = arith.constant 144 : index
    %c0_9 = arith.constant 0 : index
    %15 = vector.load %arg2[%c144, %c0_9] : memref<464x32xf32, #tpu.memory_space<vmem>>, vector<1x16xf32>
    %16 = vector.broadcast %15 : vector<1x16xf32> to vector<256x16xf32>
    %17 = arith.addf %14, %16 : vector<256x16xf32>
    %18 = math.tanh %17 : vector<256x16xf32>
    %c152 = arith.constant 152 : index
    %c0_10 = arith.constant 0 : index
    %19 = vector.load %arg2[%c152, %c0_10] : memref<464x32xf32, #tpu.memory_space<vmem>>, vector<16x8xf32>
    %cst_11 = arith.constant dense<0.000000e+00> : vector<256x8xf32>
    %20 = tpu.matmul %18, %19, %cst_11 {dimension_numbers = #tpu.dot_dimension_numbers<[1], [0], [0], [1], [0, 0, 1, 1], [], []>} : vector<256x16xf32>, vector<16x8xf32>, vector<256x8xf32> -> vector<256x8xf32>
    %c168 = arith.constant 168 : index
    %c0_12 = arith.constant 0 : index
    %21 = vector.load %arg2[%c168, %c0_12] : memref<464x32xf32, #tpu.memory_space<vmem>>, vector<1x8xf32>
    %22 = vector.broadcast %21 : vector<1x8xf32> to vector<256x8xf32>
    %23 = arith.addf %20, %22 : vector<256x8xf32>
    %24 = math.tanh %23 : vector<256x8xf32>
    %c176 = arith.constant 176 : index
    %c0_13 = arith.constant 0 : index
    %25 = vector.load %arg2[%c176, %c0_13] : memref<464x32xf32, #tpu.memory_space<vmem>>, vector<8x8xf32>
    %cst_14 = arith.constant dense<0.000000e+00> : vector<256x8xf32>
    %26 = tpu.matmul %24, %25, %cst_14 {dimension_numbers = #tpu.dot_dimension_numbers<[1], [0], [0], [1], [0, 0, 1, 1], [], []>} : vector<256x8xf32>, vector<8x8xf32>, vector<256x8xf32> -> vector<256x8xf32>
    %c184 = arith.constant 184 : index
    %c0_15 = arith.constant 0 : index
    %27 = vector.load %arg2[%c184, %c0_15] : memref<464x32xf32, #tpu.memory_space<vmem>>, vector<74x8xf32>
    %cst_16 = arith.constant dense<0.000000e+00> : vector<256x8xf32>
    %28 = tpu.matmul %0, %27, %cst_16 {dimension_numbers = #tpu.dot_dimension_numbers<[1], [0], [0], [1], [0, 0, 1, 1], [], []>} : vector<256x74xf32>, vector<74x8xf32>, vector<256x8xf32> -> vector<256x8xf32>
    %29 = arith.addf %26, %28 : vector<256x8xf32>
    %c264 = arith.constant 264 : index
    %c0_17 = arith.constant 0 : index
    %30 = vector.load %arg2[%c264, %c0_17] : memref<464x32xf32, #tpu.memory_space<vmem>>, vector<1x8xf32>
    %31 = vector.broadcast %30 : vector<1x8xf32> to vector<256x8xf32>
    %32 = arith.addf %29, %31 : vector<256x8xf32>
    %33 = math.tanh %32 : vector<256x8xf32>
    %c272 = arith.constant 272 : index
    %c0_18 = arith.constant 0 : index
    %34 = vector.load %arg2[%c272, %c0_18] : memref<464x32xf32, #tpu.memory_space<vmem>>, vector<8x8xf32>
    %cst_19 = arith.constant dense<0.000000e+00> : vector<256x8xf32>
    %35 = tpu.matmul %33, %34, %cst_19 {dimension_numbers = #tpu.dot_dimension_numbers<[1], [0], [0], [1], [0, 0, 1, 1], [], []>} : vector<256x8xf32>, vector<8x8xf32>, vector<256x8xf32> -> vector<256x8xf32>
    %c280 = arith.constant 280 : index
    %c0_20 = arith.constant 0 : index
    %36 = vector.load %arg2[%c280, %c0_20] : memref<464x32xf32, #tpu.memory_space<vmem>>, vector<1x8xf32>
    %37 = vector.broadcast %36 : vector<1x8xf32> to vector<256x8xf32>
    %38 = arith.addf %35, %37 : vector<256x8xf32>
    %39 = math.tanh %38 : vector<256x8xf32>
    %c288 = arith.constant 288 : index
    %c0_21 = arith.constant 0 : index
    %40 = vector.load %arg2[%c288, %c0_21] : memref<464x32xf32, #tpu.memory_space<vmem>>, vector<8x12xf32>
    %cst_22 = arith.constant dense<0.000000e+00> : vector<256x12xf32>
    %41 = tpu.matmul %39, %40, %cst_22 {dimension_numbers = #tpu.dot_dimension_numbers<[1], [0], [0], [1], [0, 0, 1, 1], [], []>} : vector<256x8xf32>, vector<8x12xf32>, vector<256x12xf32> -> vector<256x12xf32>
    %c296 = arith.constant 296 : index
    %c0_23 = arith.constant 0 : index
    %42 = vector.load %arg2[%c296, %c0_23] : memref<464x32xf32, #tpu.memory_space<vmem>>, vector<1x12xf32>
    %43 = vector.broadcast %42 : vector<1x12xf32> to vector<256x12xf32>
    %44 = arith.addf %41, %43 : vector<256x12xf32>
    %45 = math.tanh %44 : vector<256x12xf32>
    %c304 = arith.constant 304 : index
    %c0_24 = arith.constant 0 : index
    %46 = vector.load %arg2[%c304, %c0_24] : memref<464x32xf32, #tpu.memory_space<vmem>>, vector<12x12xf32>
    %cst_25 = arith.constant dense<0.000000e+00> : vector<256x12xf32>
    %47 = tpu.matmul %45, %46, %cst_25 {dimension_numbers = #tpu.dot_dimension_numbers<[1], [0], [0], [1], [0, 0, 1, 1], [], []>} : vector<256x12xf32>, vector<12x12xf32>, vector<256x12xf32> -> vector<256x12xf32>
    %c320 = arith.constant 320 : index
    %c0_26 = arith.constant 0 : index
    %48 = vector.load %arg2[%c320, %c0_26] : memref<464x32xf32, #tpu.memory_space<vmem>>, vector<1x12xf32>
    %49 = vector.broadcast %48 : vector<1x12xf32> to vector<256x12xf32>
    %50 = arith.addf %47, %49 : vector<256x12xf32>
    %51 = math.tanh %50 : vector<256x12xf32>
    %c328 = arith.constant 328 : index
    %c0_27 = arith.constant 0 : index
    %52 = vector.load %arg2[%c328, %c0_27] : memref<464x32xf32, #tpu.memory_space<vmem>>, vector<12x24xf32>
    %cst_28 = arith.constant dense<0.000000e+00> : vector<256x24xf32>
    %53 = tpu.matmul %51, %52, %cst_28 {dimension_numbers = #tpu.dot_dimension_numbers<[1], [0], [0], [1], [0, 0, 1, 1], [], []>} : vector<256x12xf32>, vector<12x24xf32>, vector<256x24xf32> -> vector<256x24xf32>
    %c344 = arith.constant 344 : index
    %c0_29 = arith.constant 0 : index
    %54 = vector.load %arg2[%c344, %c0_29] : memref<464x32xf32, #tpu.memory_space<vmem>>, vector<1x24xf32>
    %55 = vector.broadcast %54 : vector<1x24xf32> to vector<256x24xf32>
    %56 = arith.addf %53, %55 : vector<256x24xf32>
    %57 = math.tanh %56 : vector<256x24xf32>
    %c352 = arith.constant 352 : index
    %c0_30 = arith.constant 0 : index
    %58 = vector.load %arg2[%c352, %c0_30] : memref<464x32xf32, #tpu.memory_space<vmem>>, vector<24x22xf32>
    %cst_31 = arith.constant dense<0.000000e+00> : vector<256x22xf32>
    %59 = tpu.matmul %57, %58, %cst_31 {dimension_numbers = #tpu.dot_dimension_numbers<[1], [0], [0], [1], [0, 0, 1, 1], [], []>} : vector<256x24xf32>, vector<24x22xf32>, vector<256x22xf32> -> vector<256x22xf32>
    %c376 = arith.constant 376 : index
    %c0_32 = arith.constant 0 : index
    %60 = vector.load %arg2[%c376, %c0_32] : memref<464x32xf32, #tpu.memory_space<vmem>>, vector<74x22xf32>
    %cst_33 = arith.constant dense<0.000000e+00> : vector<256x22xf32>
    %61 = tpu.matmul %0, %60, %cst_33 {dimension_numbers = #tpu.dot_dimension_numbers<[1], [0], [0], [1], [0, 0, 1, 1], [], []>} : vector<256x74xf32>, vector<74x22xf32>, vector<256x22xf32> -> vector<256x22xf32>
    %62 = arith.addf %59, %61 : vector<256x22xf32>
    %c456 = arith.constant 456 : index
    %c0_34 = arith.constant 0 : index
    %63 = vector.load %arg2[%c456, %c0_34] : memref<464x32xf32, #tpu.memory_space<vmem>>, vector<1x22xf32>
    %64 = vector.broadcast %63 : vector<1x22xf32> to vector<256x22xf32>
    %65 = arith.addf %62, %64 : vector<256x22xf32>
    %c0_35 = arith.constant 0 : index
    %c0_36 = arith.constant 0 : index
    %66 = vector.load %arg3[%c0_35, %c0_36] : memref<256x22xf32, #tpu.memory_space<vmem>>, vector<256x22xf32>
    tpu.vector_store %arg3[%c0_35, %c0_36], %65 {strides = array<i32>} : memref<256x22xf32, #tpu.memory_space<vmem>>, vector<256x22xf32>,
    return
  }
  func.func @transform_0(%arg0: i32) -> (i32, i32) {
    %c0_i32 = arith.constant 0 : i32
    %c0_i32_0 = arith.constant 0 : i32
    return %arg0, %c0_i32 : i32, i32
  }
  func.func @transform_1(%arg0: i32) -> (i32, i32) {
    %c0_i32 = arith.constant 0 : i32
    %c0_i32_0 = arith.constant 0 : i32
    %c0_i32_1 = arith.constant 0 : i32
    return %c0_i32, %c0_i32_0 : i32, i32
  }
  func.func @transform_2(%arg0: i32) -> (i32, i32) {
    %c0_i32 = arith.constant 0 : i32
    %c0_i32_0 = arith.constant 0 : i32
    return %arg0, %c0_i32 : i32, i32
  }
}

</mosaic_0001>

<bundles_post_ra>
// kernel: forward.1
= control target key start
LH: loop header
LB: loop body
LE: loop exit
PB: predicated region body
PF: predicated region fallthrough
CT: control target
= control target key end

     0   :  { %vm155_vm0 = vcmask 1041408   ;;  %vm58_vm1 = vcmask 605184   ;;  %vm423_vm2 = vcmask 130048   ;;  %vm786_vm3 = vcmask 261120   ;;  %s7760_s1 = inlined_call_operand.vmem [shape: f32[464,32], index: 1, kind: input, shape index: {}]   ;;  %s7761_s0 = inlined_call_operand.vmem [shape: f32[256,74], index: 0, kind: input, shape index: {}]   ;;  %s7762_s2 = inlined_call_operand.vmem [shape: f32[256,22], index: 2, kind: output, shape index: {}]  }
   0x1   :  { %v52_v0 = vld [vmem:[%s7760_s1 + $0x48] sm:$0x3]  ;;  %v51_v1 = vld [vmem:[%s7760_s1 + $0x40] sm:$0xff]  ;;  %v50_v2 = vld [vmem:[%s7760_s1 + $0x38] sm:$0xff]  ;;  %vm1739_vm4 = vcmask 64512   ;;  %vm2952_vm5 = vcmask 1043456  }
   0x2   :  { %5044 = vmatprep.subr.msk.mxu0 %vm155_vm0, %v52_v0  ;;  %v6386_v3 = vld [vmem:[%s7761_s0] sm:$0xff]  ;;  %v49_v4 = vld [vmem:[%s7760_s1 + $0x30] sm:$0xff]  ;;  %v48_v5 = vld [vmem:[%s7760_s1 + $0x28] sm:$0xff]  ;;  %vm2855_vm6 = vcmask 97280   ;;  %vm3817_vm7 = vcmask 195584   ;;  %vm4176_vm8 = vcmask 179200  }
   0x3   :  { %5045 = vmatpush3.msk.msra.mxu0 %vm155_vm0, %v52_v0  ;;  %5064 = vmatprep.mubr.msk.f32.mxu0 %vm58_vm1, %v6386_v3  ;;  %v47_v6 = vld [vmem:[%s7760_s1 + $0x20] sm:$0xff]  ;;  %v46_v7 = vld [vmem:[%s7760_s1 + $0x18] sm:$0xff]  ;;  %v45_v8 = vld [vmem:[%s7760_s1 + $0x10] sm:$0xff] }
   0x4   :  { %5046 = vmatprep.subr.mxu0 %v51_v1  ;;  %v44_v9 = vld [vmem:[%s7760_s1 + $0x8] sm:$0xff]  ;;  %v43_v10 = vld [vmem:[%s7760_s1] sm:$0xff]  ;;  %v13_v12 = vld [vmem:[%s7761_s0 + $0x10] sm:$0xff] }
   0x5   :  { %5047 = vmatpush3.msra.mxu0 %v51_v1  ;;  %v12_v11 = vld [vmem:[%s7761_s0 + $0x8] sm:$0xff]  ;;  %v14_v13 = vld [vmem:[%s7761_s0 + $0x18] sm:$0xff]  ;;  %v15_v14 = vld [vmem:[%s7761_s0 + $0x20] sm:$0xff] }
   0x6   :  { %5048 = vmatprep.subr.mxu0 %v50_v2  ;;  %v16_v15 = vld [vmem:[%s7761_s0 + $0x28] sm:$0xff]  ;;  %v17_v16 = vld [vmem:[%s7761_s0 + $0x30] sm:$0xff]  ;;  %v18_v17 = vld [vmem:[%s7761_s0 + $0x38] sm:$0xff] }
   0x7   :  { %5049 = vmatpush3.msra.mxu0 %v50_v2  ;;  %v19_v18 = vld [vmem:[%s7761_s0 + $0x40] sm:$0xff]  ;;  %v20_v19 = vld [vmem:[%s7761_s0 + $0x48] sm:$0xff]  ;;  %v21_v20 = vld [vmem:[%s7761_s0 + $0x50] sm:$0xff] }
   0x8   :  { %5050 = vmatprep.subr.mxu0 %v49_v4  ;;  %v22_v21 = vld [vmem:[%s7761_s0 + $0x58] sm:$0xff]  ;;  %v23_v22 = vld [vmem:[%s7761_s0 + $0x60] sm:$0xff]  ;;  %v24_v23 = vld [vmem:[%s7761_s0 + $0x68] sm:$0xff] }
   0x9   :  { %5051 = vmatpush3.msra.mxu0 %v49_v4  ;;  %v25_v24 = vld [vmem:[%s7761_s0 + $0x70] sm:$0xff]  ;;  %v26_v25 = vld [vmem:[%s7761_s0 + $0x78] sm:$0xff]  ;;  %v27_v26 = vld [vmem:[%s7761_s0 + $0x80] sm:$0xff] }
   0xa   :  { %5052 = vmatprep.subr.mxu0 %v48_v5  ;;  %v28_v27 = vld [vmem:[%s7761_s0 + $0x88] sm:$0xff]  ;;  %v29_v28 = vld [vmem:[%s7761_s0 + $0x90] sm:$0xff]  ;;  %v30_v29 = vld [vmem:[%s7761_s0 + $0x98] sm:$0xff] }
   0xb   :  { %5053 = vmatpush3.msra.mxu0 %v48_v5  ;;  %v31_v30 = vld [vmem:[%s7761_s0 + $0xa0] sm:$0xff]  ;;  %v32_v31 = vld [vmem:[%s7761_s0 + $0xa8] sm:$0xff]  ;;  %v33_v32 = vld [vmem:[%s7761_s0 + $0xb0] sm:$0xff] }
   0xc   :  { %5054 = vmatprep.subr.mxu0 %v47_v6  ;;  %v34_v33 = vld [vmem:[%s7761_s0 + $0xb8] sm:$0xff]  ;;  %v35_v34 = vld [vmem:[%s7761_s0 + $0xc0] sm:$0xff]  ;;  %v36_v35 = vld [vmem:[%s7761_s0 + $0xc8] sm:$0xff] }
   0xd   :  { %5055 = vmatpush3.msra.mxu0 %v47_v6  ;;  %v37_v36 = vld [vmem:[%s7761_s0 + $0xd0] sm:$0xff]  ;;  %v38_v37 = vld [vmem:[%s7761_s0 + $0xd8] sm:$0xff]  ;;  %v39_v38 = vld [vmem:[%s7761_s0 + $0xe0] sm:$0xff] }
   0xe   :  { %5056 = vmatprep.subr.mxu0 %v46_v7  ;;  %v40_v39 = vld [vmem:[%s7761_s0 + $0xe8] sm:$0xff]  ;;  %v41_v40 = vld [vmem:[%s7761_s0 + $0xf0] sm:$0xff]  ;;  %v42_v41 = vld [vmem:[%s7761_s0 + $0xf8] sm:$0xff] }
   0xf   :  { %5057 = vmatpush3.msra.mxu0 %v46_v7  ;;  %v417_v42 = vld [vmem:[%s7760_s1 + $0x60] sm:$0xff]  ;;  %v416_v43 = vld [vmem:[%s7760_s1 + $0x58] sm:$0xff]  ;;  %v780_v44 = vld [vmem:[%s7760_s1 + $0x88] sm:$0xff] }
  0x10   :  { %5058 = vmatprep.subr.mxu0 %v45_v8  ;;  %5112 = vmatprep.subr.mxu1 %v417_v42  ;;  %v6547_v45 = vld [vmem:[%s7760_s1 + $0x50] ss:$0 sm:$0xff]  ;;  %v779_v5 = vld [vmem:[%s7760_s1 + $0x80] sm:$0xff]  ;;  %v778_v7 = vld [vmem:[%s7760_s1 + $0x78] sm:$0xff] }
  0x11   :  { %5059 = vmatpush3.msra.mxu0 %v45_v8  ;;  %5113 = vmatpush3.msra.mxu1 %v417_v42 }
  0x12   :  { %5060 = vmatprep.subr.mxu0 %v44_v9  ;;  %5114 = vmatprep.subr.mxu1 %v416_v43 }
  0x13   :  { %5061 = vmatpush3.msra.mxu0 %v44_v9  ;;  %5115 = vmatpush3.msra.mxu1 %v416_v43 }
  0x14   :  { %5062 = vmatprep.subr.mxu0 %v43_v10  ;;  %5164 = vmatprep.subr.mxu1 %v780_v44 }
  0x15   :  { %5063 = vmatpush3.msra.mxu0 %v43_v10 }
  0x16   :  { %5065 = vmatmul.mubr.msk.f32.vlgmr.msra.gmra.mxu0 %vm58_vm1, %v12_v11 }
  0x17   :  { %5067 = vmatprep.mubr.msk.f32.mxu0 %vm58_vm1, %v13_v12 }
  0x1a   :  { %5068 = vmatmul.mubr.msk.f32.gmra.mxu0 %vm58_vm1, %v14_v13 }
  0x1b   :  { %5070 = vmatprep.mubr.msk.f32.mxu0 %vm58_vm1, %v15_v14 }
  0x1e   :  { %5071 = vmatmul.mubr.msk.f32.gmra.mxu0 %vm58_vm1, %v16_v15 }
  0x1f   :  { %5073 = vmatprep.mubr.msk.f32.mxu0 %vm58_vm1, %v17_v16 }
  0x22   :  { %5074 = vmatmul.mubr.msk.f32.gmra.mxu0 %vm58_vm1, %v18_v17 }
  0x23   :  { %5076 = vmatprep.mubr.msk.f32.mxu0 %vm58_vm1, %v19_v18 }
  0x26   :  { %5077 = vmatmul.mubr.msk.f32.gmra.mxu0 %vm58_vm1, %v20_v19 }
  0x27   :  { %5079 = vmatprep.mubr.msk.f32.mxu0 %vm58_vm1, %v21_v20 }
  0x2a   :  { %5080 = vmatmul.mubr.msk.f32.gmra.mxu0 %vm58_vm1, %v22_v21 }
  0x2b   :  { %5082 = vmatprep.mubr.msk.f32.mxu0 %vm58_vm1, %v23_v22 }
  0x2e   :  { %5083 = vmatmul.mubr.msk.f32.gmra.mxu0 %vm58_vm1, %v24_v23 }
  0x2f   :  { %5085 = vmatprep.mubr.msk.f32.mxu0 %vm58_vm1, %v25_v24 }
  0x32   :  { %5086 = vmatmul.mubr.msk.f32.gmra.mxu0 %vm58_vm1, %v26_v25 }
  0x33   :  { %5088 = vmatprep.mubr.msk.f32.mxu0 %vm58_vm1, %v27_v26 }
  0x36   :  { %5089 = vmatmul.mubr.msk.f32.gmra.mxu0 %vm58_vm1, %v28_v27 }
  0x37   :  { %5091 = vmatprep.mubr.msk.f32.mxu0 %vm58_vm1, %v29_v28 }
  0x3a   :  { %5092 = vmatmul.mubr.msk.f32.gmra.mxu0 %vm58_vm1, %v30_v29 }
  0x3b   :  { %5094 = vmatprep.mubr.msk.f32.mxu0 %vm58_vm1, %v31_v30 }
  0x3e   :  { %5095 = vmatmul.mubr.msk.f32.gmra.mxu0 %vm58_vm1, %v32_v31 }
  0x3f   :  { %5097 = vmatprep.mubr.msk.f32.mxu0 %vm58_vm1, %v33_v32 }
  0x42   :  { %5098 = vmatmul.mubr.msk.f32.gmra.mxu0 %vm58_vm1, %v34_v33 }
  0x43   :  { %5100 = vmatprep.mubr.msk.f32.mxu0 %vm58_vm1, %v35_v34 }
  0x46   :  { %5101 = vmatmul.mubr.msk.f32.gmra.mxu0 %vm58_vm1, %v36_v35 }
  0x47   :  { %5103 = vmatprep.mubr.msk.f32.mxu0 %vm58_vm1, %v37_v36 }
  0x4a   :  { %5104 = vmatmul.mubr.msk.f32.gmra.mxu0 %vm58_vm1, %v38_v37 }
  0x4b   :  { %5106 = vmatprep.mubr.msk.f32.mxu0 %vm58_vm1, %v39_v38 }
  0x4e   :  { %5107 = vmatmul.mubr.msk.f32.gmra.mxu0 %vm58_vm1, %v40_v39 }
  0x4f   :  { %5109 = vmatprep.mubr.msk.f32.mxu0 %vm58_vm1, %v41_v40 }
  0x52   :  { %5110 = vmatmul.mubr.msk.f32.gmra.mxu0 %vm58_vm1, %v42_v41 }
  0xd6   :  { %v5066_v46 = vpop.f32.mrf.mxu0 }
  0xd7   :  { %v231_v47 = vadd.f32 %v5066_v46, %v6547_v45 }
  0xd8   :  { %v225_v48 = vpop.f32.mrf.mxu0 }
  0xd9   :  { %v226_v49 = vadd.f32 %v6547_v45, %v225_v48 }
  0xda   :  { %v5069_v50 = vpop.f32.mrf.mxu0 }
  0xdb   :  { %5718 = vtanh.f32 %v226_v49  ;;  %v241_v51 = vadd.f32 %v5069_v50, %v6547_v45 }
  0xdc   :  { %5720 = vtanh.f32 %v231_v47  ;;  %v235_v52 = vpop.f32.mrf.mxu0 }
  0xdd   :  { %v236_v53 = vadd.f32 %v6547_v45, %v235_v52 }
  0xde   :  { %v5072_v54 = vpop.f32.mrf.mxu0 }
  0xdf   :  { %5722 = vtanh.f32 %v236_v53  ;;  %v251_v55 = vadd.f32 %v5072_v54, %v6547_v45 }
  0xe0   :  { %5724 = vtanh.f32 %v241_v51  ;;  %v245_v56 = vpop.f32.mrf.mxu0 }
  0xe1   :  { %v246_v57 = vadd.f32 %v6547_v45, %v245_v56 }
  0xe2   :  { %v5075_v58 = vpop.f32.mrf.mxu0 }
  0xe3   :  { %5726 = vtanh.f32 %v246_v57  ;;  %v261_v59 = vadd.f32 %v5075_v58, %v6547_v45 }
  0xe4   :  { %5728 = vtanh.f32 %v251_v55  ;;  %v255_v60 = vpop.f32.mrf.mxu0 }
  0xe5   :  { %v256_v61 = vadd.f32 %v6547_v45, %v255_v60 }
  0xe6   :  { %v5078_v62 = vpop.f32.mrf.mxu0 }
  0xe7   :  { %5730 = vtanh.f32 %v256_v61  ;;  %v271_v0 = vadd.f32 %v5078_v62, %v6547_v45 }
  0xe8   :  { %v5719_v63 = vpop.eup %5718  ;;  %5732 = vtanh.f32 %v261_v59  ;;  %v265_v1 = vpop.f32.mrf.mxu0 }
  0xe9   :  { %v5721_v2 = vpop.eup %5720  ;;  %v266_v4 = vadd.f32 %v6547_v45, %v265_v1  ;;  %5116 = vmatprep.mubr.msk.f32.mxu1 %vm423_vm2, %v5719_v63 }
  0xea   :  { %v5081_v6 = vpop.f32.mrf.mxu0  ;;  %5117 = vmatmul.mubr.msk.f32.vlgmr.msra.gmra.mxu1 %vm423_vm2, %v5721_v2 }
  0xeb   :  { %5734 = vtanh.f32 %v266_v4  ;;  %5165 = vmatpush3.msra.mxu1 %v780_v44  ;;  %v281_v9 = vadd.f32 %v5081_v6, %v6547_v45 }
  0xec   :  { %v5723_v8 = vpop.eup %5722  ;;  %5736 = vtanh.f32 %v271_v0  ;;  %v275_v10 = vpop.f32.mrf.mxu0  ;;  %5166 = vmatprep.subr.mxu1 %v779_v5 }
  0xed   :  { %v5725_v11 = vpop.eup %5724  ;;  %v276_v12 = vadd.f32 %v6547_v45, %v275_v10  ;;  %5119 = vmatprep.mubr.msk.f32.mxu1 %vm423_vm2, %v5723_v8  ;;  %5167 = vmatpush3.msra.mxu1 %v779_v5 }
  0xee   :  { %v5084_v13 = vpop.f32.mrf.mxu0  ;;  %5120 = vmatmul.mubr.msk.f32.gmra.mxu1 %vm423_vm2, %v5725_v11  ;;  %5168 = vmatprep.subr.mxu1 %v778_v7 }
  0xef   :  { %5738 = vtanh.f32 %v276_v12  ;;  %5169 = vmatpush3.msra.mxu1 %v778_v7  ;;  %v291_v15 = vadd.f32 %v5084_v13, %v6547_v45 }
  0xf0   :  { %v5727_v14 = vpop.eup %5726  ;;  %5740 = vtanh.f32 %v281_v9  ;;  %v285_v16 = vpop.f32.mrf.mxu0 }
  0xf1   :  { %v5729_v17 = vpop.eup %5728  ;;  %v286_v18 = vadd.f32 %v6547_v45, %v285_v16  ;;  %5122 = vmatprep.mubr.msk.f32.mxu1 %vm423_vm2, %v5727_v14 }
  0xf2   :  { %v5087_v19 = vpop.f32.mrf.mxu0  ;;  %5123 = vmatmul.mubr.msk.f32.gmra.mxu1 %vm423_vm2, %v5729_v17 }
  0xf3   :  { %5742 = vtanh.f32 %v286_v18  ;;  %v301_v21 = vadd.f32 %v5087_v19, %v6547_v45  ;;  %v777_v18 = vld [vmem:[%s7760_s1 + $0x70] sm:$0xff]  ;;  %v1141_v19 = vld [vmem:[%s7760_s1 + $0xa0] sm:$0xff] }
  0xf4   :  { %v5731_v20 = vpop.eup %5730  ;;  %5744 = vtanh.f32 %v291_v15  ;;  %v295_v22 = vpop.f32.mrf.mxu0  ;;  %5170 = vmatprep.subr.mxu1 %v777_v18  ;;  %5220 = vmatprep.subr.mxu0 %v1141_v19 }
  0xf5   :  { %v5733_v23 = vpop.eup %5732  ;;  %v296_v24 = vadd.f32 %v6547_v45, %v295_v22  ;;  %5125 = vmatprep.mubr.msk.f32.mxu1 %vm423_vm2, %v5731_v20  ;;  %5171 = vmatpush3.msra.mxu1 %v777_v18  ;;  %v1140_v20 = vld [vmem:[%s7760_s1 + $0x98] sm:$0xff] }
  0xf6   :  { %v5090_v25 = vpop.f32.mrf.mxu0  ;;  %5126 = vmatmul.mubr.msk.f32.gmra.mxu1 %vm423_vm2, %v5733_v23  ;;  %5221 = vmatpush3.msra.mxu0 %v1141_v19 }
  0xf7   :  { %5746 = vtanh.f32 %v296_v24  ;;  %v311_v27 = vadd.f32 %v5090_v25, %v6547_v45  ;;  %5222 = vmatprep.subr.mxu0 %v1140_v20 }
  0xf8   :  { %v5735_v26 = vpop.eup %5734  ;;  %5748 = vtanh.f32 %v301_v21  ;;  %v305_v28 = vpop.f32.mrf.mxu0  ;;  %5223 = vmatpush3.msra.mxu0 %v1140_v20  ;;  %v6631_v21 = vld [vmem:[%s7760_s1 + $0x68] ss:$0 sm:$0xff] }
  0xf9   :  { %v5737_v29 = vpop.eup %5736  ;;  %v306_v30 = vadd.f32 %v6547_v45, %v305_v28  ;;  %5128 = vmatprep.mubr.msk.f32.mxu1 %vm423_vm2, %v5735_v26 }
  0xfa   :  { %v5093_v31 = vpop.f32.mrf.mxu0  ;;  %5129 = vmatmul.mubr.msk.f32.gmra.mxu1 %vm423_vm2, %v5737_v29 }
  0xfb   :  { %5750 = vtanh.f32 %v306_v30  ;;  %v321_v33 = vadd.f32 %v5093_v31, %v6547_v45 }
  0xfc   :  { %v5739_v32 = vpop.eup %5738  ;;  %5752 = vtanh.f32 %v311_v27  ;;  %v315_v34 = vpop.f32.mrf.mxu0 }
  0xfd   :  { %v5741_v35 = vpop.eup %5740  ;;  %v316_v36 = vadd.f32 %v6547_v45, %v315_v34  ;;  %5131 = vmatprep.mubr.msk.f32.mxu1 %vm423_vm2, %v5739_v32 }
  0xfe   :  { %v5096_v37 = vpop.f32.mrf.mxu0  ;;  %5132 = vmatmul.mubr.msk.f32.gmra.mxu1 %vm423_vm2, %v5741_v35 }
  0xff   :  { %5754 = vtanh.f32 %v316_v36  ;;  %v331_v39 = vadd.f32 %v5096_v37, %v6547_v45 }
 0x100   :  { %v5743_v38 = vpop.eup %5742  ;;  %5756 = vtanh.f32 %v321_v33  ;;  %v325_v40 = vpop.f32.mrf.mxu0 }
 0x101   :  { %v5745_v41 = vpop.eup %5744  ;;  %v326_v42 = vadd.f32 %v6547_v45, %v325_v40  ;;  %5134 = vmatprep.mubr.msk.f32.mxu1 %vm423_vm2, %v5743_v38 }
 0x102   :  { %v5099_v43 = vpop.f32.mrf.mxu0  ;;  %5135 = vmatmul.mubr.msk.f32.gmra.mxu1 %vm423_vm2, %v5745_v41 }
 0x103   :  { %5758 = vtanh.f32 %v326_v42  ;;  %v341_v46 = vadd.f32 %v5099_v43, %v6547_v45 }
 0x104   :  { %v5747_v44 = vpop.eup %5746  ;;  %5760 = vtanh.f32 %v331_v39  ;;  %v335_v47 = vpop.f32.mrf.mxu0 }
 0x105   :  { %v5749_v48 = vpop.eup %5748  ;;  %v336_v49 = vadd.f32 %v6547_v45, %v335_v47  ;;  %5137 = vmatprep.mubr.msk.f32.mxu1 %vm423_vm2, %v5747_v44 }
 0x106   :  { %v5102_v50 = vpop.f32.mrf.mxu0  ;;  %5138 = vmatmul.mubr.msk.f32.gmra.mxu1 %vm423_vm2, %v5749_v48 }
 0x107   :  { %5762 = vtanh.f32 %v336_v49  ;;  %v351_v52 = vadd.f32 %v5102_v50, %v6547_v45 }
 0x108   :  { %v5751_v51 = vpop.eup %5750  ;;  %5764 = vtanh.f32 %v341_v46  ;;  %v345_v53 = vpop.f32.mrf.mxu0 }
 0x109   :  { %v5753_v54 = vpop.eup %5752  ;;  %v346_v55 = vadd.f32 %v6547_v45, %v345_v53  ;;  %5140 = vmatprep.mubr.msk.f32.mxu1 %vm423_vm2, %v5751_v51 }
 0x10a   :  { %v5105_v56 = vpop.f32.mrf.mxu0  ;;  %5141 = vmatmul.mubr.msk.f32.gmra.mxu1 %vm423_vm2, %v5753_v54 }
 0x10b   :  { %5766 = vtanh.f32 %v346_v55  ;;  %v361_v58 = vadd.f32 %v5105_v56, %v6547_v45 }
 0x10c   :  { %v5755_v57 = vpop.eup %5754  ;;  %5768 = vtanh.f32 %v351_v52  ;;  %v355_v59 = vpop.f32.mrf.mxu0 }
 0x10d   :  { %v5757_v60 = vpop.eup %5756  ;;  %v356_v61 = vadd.f32 %v6547_v45, %v355_v59  ;;  %5143 = vmatprep.mubr.msk.f32.mxu1 %vm423_vm2, %v5755_v57 }
 0x10e   :  { %v5108_v62 = vpop.f32.mrf.mxu0  ;;  %5144 = vmatmul.mubr.msk.f32.gmra.mxu1 %vm423_vm2, %v5757_v60 }
 0x10f   :  { %5770 = vtanh.f32 %v356_v61  ;;  %v371_v0 = vadd.f32 %v5108_v62, %v6547_v45 }
 0x110   :  { %v5759_v63 = vpop.eup %5758  ;;  %5772 = vtanh.f32 %v361_v58  ;;  %v365_v1 = vpop.f32.mrf.mxu0 }
 0x111   :  { %v5761_v2 = vpop.eup %5760  ;;  %v366_v4 = vadd.f32 %v6547_v45, %v365_v1  ;;  %5146 = vmatprep.mubr.msk.f32.mxu1 %vm423_vm2, %v5759_v63 }
 0x112   :  { %v5111_v5 = vpop.f32.mrf.mxu0  ;;  %5147 = vmatmul.mubr.msk.f32.gmra.mxu1 %vm423_vm2, %v5761_v2 }
 0x113   :  { %5774 = vtanh.f32 %v366_v4  ;;  %v381_v7 = vadd.f32 %v5111_v5, %v6547_v45 }
 0x114   :  { %v5763_v6 = vpop.eup %5762  ;;  %5776 = vtanh.f32 %v371_v0  ;;  %v375_v8 = vpop.f32.mrf.mxu0 }
 0x115   :  { %v5765_v9 = vpop.eup %5764  ;;  %v376_v10 = vadd.f32 %v6547_v45, %v375_v8  ;;  %5149 = vmatprep.mubr.msk.f32.mxu1 %vm423_vm2, %v5763_v6 }
 0x116   :  { %5150 = vmatmul.mubr.msk.f32.gmra.mxu1 %vm423_vm2, %v5765_v9 }
 0x117   :  { %5778 = vtanh.f32 %v376_v10 }
 0x118   :  { %v5767_v11 = vpop.eup %5766  ;;  %5780 = vtanh.f32 %v381_v7 }
 0x119   :  { %v5769_v12 = vpop.eup %5768  ;;  %5152 = vmatprep.mubr.msk.f32.mxu1 %vm423_vm2, %v5767_v11 }
 0x11a   :  { %5153 = vmatmul.mubr.msk.f32.gmra.mxu1 %vm423_vm2, %v5769_v12 }
 0x11c   :  { %v5771_v13 = vpop.eup %5770 }
 0x11d   :  { %v5773_v14 = vpop.eup %5772  ;;  %5155 = vmatprep.mubr.msk.f32.mxu1 %vm423_vm2, %v5771_v13 }
 0x11e   :  { %5156 = vmatmul.mubr.msk.f32.gmra.mxu1 %vm423_vm2, %v5773_v14 }
 0x120   :  { %v5775_v15 = vpop.eup %5774 }
 0x121   :  { %v5777_v45 = vpop.eup %5776  ;;  %5158 = vmatprep.mubr.msk.f32.mxu1 %vm423_vm2, %v5775_v15 }
 0x122   :  { %5159 = vmatmul.mubr.msk.f32.gmra.mxu1 %vm423_vm2, %v5777_v45 }
 0x124   :  { %v5779_v16 = vpop.eup %5778 }
 0x125   :  { %v5781_v17 = vpop.eup %5780  ;;  %5161 = vmatprep.mubr.msk.f32.mxu1 %vm423_vm2, %v5779_v16 }
 0x126   :  { %5162 = vmatmul.mubr.msk.f32.gmra.mxu1 %vm423_vm2, %v5781_v17 }
 0x1aa   :  { %v5118_v22 = vpop.f32.mrf.mxu1 }
 0x1ab   :  { %v592_v23 = vadd.f32 %v5118_v22, %v6631_v21 }
 0x1ac   :  { %v586_v24 = vpop.f32.mrf.mxu1 }
 0x1ad   :  { %v587_v25 = vadd.f32 %v6631_v21, %v586_v24 }
 0x1ae   :  { %v5121_v26 = vpop.f32.mrf.mxu1 }
 0x1af   :  { %5782 = vtanh.f32 %v587_v25  ;;  %v602_v27 = vadd.f32 %v5121_v26, %v6631_v21 }
 0x1b0   :  { %5784 = vtanh.f32 %v592_v23  ;;  %v596_v28 = vpop.f32.mrf.mxu1 }
 0x1b1   :  { %v597_v29 = vadd.f32 %v6631_v21, %v596_v28 }
 0x1b2   :  { %v5124_v30 = vpop.f32.mrf.mxu1 }
 0x1b3   :  { %5786 = vtanh.f32 %v597_v29  ;;  %v612_v31 = vadd.f32 %v5124_v30, %v6631_v21 }
 0x1b4   :  { %5788 = vtanh.f32 %v602_v27  ;;  %v606_v32 = vpop.f32.mrf.mxu1 }
 0x1b5   :  { %v607_v33 = vadd.f32 %v6631_v21, %v606_v32 }
 0x1b6   :  { %v5127_v34 = vpop.f32.mrf.mxu1 }
 0x1b7   :  { %5790 = vtanh.f32 %v607_v33  ;;  %v622_v35 = vadd.f32 %v5127_v34, %v6631_v21 }
 0x1b8   :  { %5792 = vtanh.f32 %v612_v31  ;;  %v616_v36 = vpop.f32.mrf.mxu1 }
 0x1b9   :  { %v617_v37 = vadd.f32 %v6631_v21, %v616_v36 }
 0x1ba   :  { %v5130_v38 = vpop.f32.mrf.mxu1 }
 0x1bb   :  { %5794 = vtanh.f32 %v617_v37  ;;  %v632_v40 = vadd.f32 %v5130_v38, %v6631_v21 }
 0x1bc   :  { %v5783_v39 = vpop.eup %5782  ;;  %5796 = vtanh.f32 %v622_v35  ;;  %v626_v41 = vpop.f32.mrf.mxu1 }
 0x1bd   :  { %v5785_v42 = vpop.eup %5784  ;;  %v627_v43 = vadd.f32 %v6631_v21, %v626_v41  ;;  %5172 = vmatprep.mubr.msk.f32.mxu1 %vm786_vm3, %v5783_v39 }
 0x1be   :  { %v5133_v44 = vpop.f32.mrf.mxu1  ;;  %5173 = vmatmul.mubr.msk.f32.vlgmr.msra.gmra.mxu1 %vm786_vm3, %v5785_v42 }
 0x1bf   :  { %5798 = vtanh.f32 %v627_v43  ;;  %v642_v47 = vadd.f32 %v5133_v44, %v6631_v21 }
 0x1c0   :  { %v5787_v46 = vpop.eup %5786  ;;  %5800 = vtanh.f32 %v632_v40  ;;  %v636_v48 = vpop.f32.mrf.mxu1 }
 0x1c1   :  { %v5789_v49 = vpop.eup %5788  ;;  %v637_v50 = vadd.f32 %v6631_v21, %v636_v48  ;;  %5175 = vmatprep.mubr.msk.f32.mxu1 %vm786_vm3, %v5787_v46 }
 0x1c2   :  { %v5136_v51 = vpop.f32.mrf.mxu1  ;;  %5176 = vmatmul.mubr.msk.f32.gmra.mxu1 %vm786_vm3, %v5789_v49 }
 0x1c3   :  { %5802 = vtanh.f32 %v637_v50  ;;  %v652_v53 = vadd.f32 %v5136_v51, %v6631_v21 }
 0x1c4   :  { %v5791_v52 = vpop.eup %5790  ;;  %5804 = vtanh.f32 %v642_v47  ;;  %v646_v54 = vpop.f32.mrf.mxu1 }
 0x1c5   :  { %v5793_v55 = vpop.eup %5792  ;;  %v647_v56 = vadd.f32 %v6631_v21, %v646_v54  ;;  %5178 = vmatprep.mubr.msk.f32.mxu1 %vm786_vm3, %v5791_v52 }
 0x1c6   :  { %v5139_v57 = vpop.f32.mrf.mxu1  ;;  %5179 = vmatmul.mubr.msk.f32.gmra.mxu1 %vm786_vm3, %v5793_v55 }
 0x1c7   :  { %5806 = vtanh.f32 %v647_v56  ;;  %v662_v59 = vadd.f32 %v5139_v57, %v6631_v21  ;;  %v1510_v56 = vld [vmem:[%s7760_s1 + $0x100] sm:$0x3]  ;;  %v1509_v57 = vld [vmem:[%s7760_s1 + $0xf8] sm:$0xff] }
 0x1c8   :  { %v5795_v58 = vpop.eup %5794  ;;  %5808 = vtanh.f32 %v652_v53  ;;  %v656_v60 = vpop.f32.mrf.mxu1  ;;  %5272 = vmatprep.subr.msk.mxu1 %vm155_vm0, %v1510_v56 }
 0x1c9   :  { %v5797_v61 = vpop.eup %5796  ;;  %v657_v62 = vadd.f32 %v6631_v21, %v656_v60  ;;  %5181 = vmatprep.mubr.msk.f32.mxu1 %vm786_vm3, %v5795_v58  ;;  %v6708_v58 = vld [vmem:[%s7760_s1 + $0xb0] sm:$0xff]  ;;  %5273 = vmatpush3.msk.msra.mxu1 %vm155_vm0, %v1510_v56  ;;  %v1506_v60 = vld [vmem:[%s7760_s1 + $0xe0] sm:$0xff] }
 0x1ca   :  { %v5142_v63 = vpop.f32.mrf.mxu1  ;;  %5182 = vmatmul.mubr.msk.f32.gmra.mxu1 %vm786_vm3, %v5797_v61  ;;  %5340 = vmatprep.subr.mxu0 %v6708_v58  ;;  %v1505_v61 = vld [vmem:[%s7760_s1 + $0xd8] sm:$0xff] }
 0x1cb   :  { %5810 = vtanh.f32 %v657_v62  ;;  %v672_v1 = vadd.f32 %v5142_v63, %v6631_v21  ;;  %5274 = vmatprep.subr.mxu1 %v1509_v57  ;;  %v1504_v62 = vld [vmem:[%s7760_s1 + $0xd0] sm:$0xff]  ;;  %v1503_v63 = vld [vmem:[%s7760_s1 + $0xc8] sm:$0xff] }
 0x1cc   :  { %v5799_v0 = vpop.eup %5798  ;;  %5812 = vtanh.f32 %v662_v59  ;;  %v666_v2 = vpop.f32.mrf.mxu1  ;;  %5275 = vmatpush3.msra.mxu1 %v1509_v57  ;;  %v1507_v59 = vld [vmem:[%s7760_s1 + $0xe8] sm:$0xff] }
 0x1cd   :  { %v5801_v4 = vpop.eup %5800  ;;  %v667_v5 = vadd.f32 %v6631_v21, %v666_v2  ;;  %5184 = vmatprep.mubr.msk.f32.mxu1 %vm786_vm3, %v5799_v0  ;;  %v1502_v0 = vld [vmem:[%s7760_s1 + $0xc0] sm:$0xff] }
 0x1ce   :  { %v5145_v6 = vpop.f32.mrf.mxu1  ;;  %5185 = vmatmul.mubr.msk.f32.gmra.mxu1 %vm786_vm3, %v5801_v4 }
 0x1cf   :  { %5814 = vtanh.f32 %v667_v5  ;;  %v682_v8 = vadd.f32 %v5145_v6, %v6631_v21 }
 0x1d0   :  { %v5803_v7 = vpop.eup %5802  ;;  %5816 = vtanh.f32 %v672_v1  ;;  %v676_v9 = vpop.f32.mrf.mxu1  ;;  %v6737_v1 = vld [vmem:[%s7760_s1 + $0x90] ss:$0 sm:$0xff] }
 0x1d1   :  { %v5805_v10 = vpop.eup %5804  ;;  %v677_v11 = vadd.f32 %v6631_v21, %v676_v9  ;;  %5187 = vmatprep.mubr.msk.f32.mxu1 %vm786_vm3, %v5803_v7 }
 0x1d2   :  { %v5148_v12 = vpop.f32.mrf.mxu1  ;;  %5188 = vmatmul.mubr.msk.f32.gmra.mxu1 %vm786_vm3, %v5805_v10 }
 0x1d3   :  { %5818 = vtanh.f32 %v677_v11  ;;  %v692_v14 = vadd.f32 %v5148_v12, %v6631_v21 }
 0x1d4   :  { %v5807_v13 = vpop.eup %5806  ;;  %5820 = vtanh.f32 %v682_v8  ;;  %v686_v15 = vpop.f32.mrf.mxu1 }
 0x1d5   :  { %v5809_v45 = vpop.eup %5808  ;;  %v687_v16 = vadd.f32 %v6631_v21, %v686_v15  ;;  %5190 = vmatprep.mubr.msk.f32.mxu1 %vm786_vm3, %v5807_v13 }
 0x1d6   :  { %v5151_v17 = vpop.f32.mrf.mxu1  ;;  %5191 = vmatmul.mubr.msk.f32.gmra.mxu1 %vm786_vm3, %v5809_v45 }
 0x1d7   :  { %5822 = vtanh.f32 %v687_v16  ;;  %v702_v19 = vadd.f32 %v5151_v17, %v6631_v21 }
 0x1d8   :  { %v5811_v18 = vpop.eup %5810  ;;  %5824 = vtanh.f32 %v692_v14  ;;  %v696_v20 = vpop.f32.mrf.mxu1 }
 0x1d9   :  { %v5813_v22 = vpop.eup %5812  ;;  %v697_v23 = vadd.f32 %v6631_v21, %v696_v20  ;;  %5193 = vmatprep.mubr.msk.f32.mxu1 %vm786_vm3, %v5811_v18 }
 0x1da   :  { %v5154_v24 = vpop.f32.mrf.mxu1  ;;  %5194 = vmatmul.mubr.msk.f32.gmra.mxu1 %vm786_vm3, %v5813_v22 }
 0x1db   :  { %5826 = vtanh.f32 %v697_v23  ;;  %v712_v26 = vadd.f32 %v5154_v24, %v6631_v21 }
 0x1dc   :  { %v5815_v25 = vpop.eup %5814  ;;  %5828 = vtanh.f32 %v702_v19  ;;  %v706_v27 = vpop.f32.mrf.mxu1 }
 0x1dd   :  { %v5817_v28 = vpop.eup %5816  ;;  %v707_v29 = vadd.f32 %v6631_v21, %v706_v27  ;;  %5196 = vmatprep.mubr.msk.f32.mxu1 %vm786_vm3, %v5815_v25 }
 0x1de   :  { %v5157_v30 = vpop.f32.mrf.mxu1  ;;  %5197 = vmatmul.mubr.msk.f32.gmra.mxu1 %vm786_vm3, %v5817_v28 }
 0x1df   :  { %5830 = vtanh.f32 %v707_v29  ;;  %v722_v32 = vadd.f32 %v5157_v30, %v6631_v21 }
 0x1e0   :  { %v5819_v31 = vpop.eup %5818  ;;  %5832 = vtanh.f32 %v712_v26  ;;  %v716_v33 = vpop.f32.mrf.mxu1 }
 0x1e1   :  { %v5821_v34 = vpop.eup %5820  ;;  %v717_v35 = vadd.f32 %v6631_v21, %v716_v33  ;;  %5199 = vmatprep.mubr.msk.f32.mxu1 %vm786_vm3, %v5819_v31 }
 0x1e2   :  { %v5160_v36 = vpop.f32.mrf.mxu1  ;;  %5200 = vmatmul.mubr.msk.f32.gmra.mxu1 %vm786_vm3, %v5821_v34 }
 0x1e3   :  { %5834 = vtanh.f32 %v717_v35  ;;  %v732_v38 = vadd.f32 %v5160_v36, %v6631_v21 }
 0x1e4   :  { %v5823_v37 = vpop.eup %5822  ;;  %5836 = vtanh.f32 %v722_v32  ;;  %v726_v39 = vpop.f32.mrf.mxu1 }
 0x1e5   :  { %v5825_v40 = vpop.eup %5824  ;;  %v727_v41 = vadd.f32 %v6631_v21, %v726_v39  ;;  %5202 = vmatprep.mubr.msk.f32.mxu1 %vm786_vm3, %v5823_v37 }
 0x1e6   :  { %v5163_v42 = vpop.f32.mrf.mxu1  ;;  %5203 = vmatmul.mubr.msk.f32.gmra.mxu1 %vm786_vm3, %v5825_v40 }
 0x1e7   :  { %5838 = vtanh.f32 %v727_v41  ;;  %v742_v44 = vadd.f32 %v5163_v42, %v6631_v21 }
 0x1e8   :  { %v5827_v43 = vpop.eup %5826  ;;  %5840 = vtanh.f32 %v732_v38  ;;  %v736_v46 = vpop.f32.mrf.mxu1 }
 0x1e9   :  { %v5829_v47 = vpop.eup %5828  ;;  %v737_v48 = vadd.f32 %v6631_v21, %v736_v46  ;;  %5205 = vmatprep.mubr.msk.f32.mxu1 %vm786_vm3, %v5827_v43 }
 0x1ea   :  { %5206 = vmatmul.mubr.msk.f32.gmra.mxu1 %vm786_vm3, %v5829_v47 }
 0x1eb   :  { %5842 = vtanh.f32 %v737_v48 }
 0x1ec   :  { %v5831_v49 = vpop.eup %5830  ;;  %5844 = vtanh.f32 %v742_v44 }
 0x1ed   :  { %v5833_v50 = vpop.eup %5832  ;;  %5208 = vmatprep.mubr.msk.f32.mxu1 %vm786_vm3, %v5831_v49 }
 0x1ee   :  { %5209 = vmatmul.mubr.msk.f32.gmra.mxu1 %vm786_vm3, %v5833_v50 }
 0x1f0   :  { %v5835_v51 = vpop.eup %5834 }
 0x1f1   :  { %v5837_v52 = vpop.eup %5836  ;;  %5211 = vmatprep.mubr.msk.f32.mxu1 %vm786_vm3, %v5835_v51 }
 0x1f2   :  { %5212 = vmatmul.mubr.msk.f32.gmra.mxu1 %vm786_vm3, %v5837_v52 }
 0x1f4   :  { %v5839_v53 = vpop.eup %5838 }
 0x1f5   :  { %v5841_v21 = vpop.eup %5840  ;;  %5214 = vmatprep.mubr.msk.f32.mxu1 %vm786_vm3, %v5839_v53 }
 0x1f6   :  { %5215 = vmatmul.mubr.msk.f32.gmra.mxu1 %vm786_vm3, %v5841_v21 }
 0x1f8   :  { %v5843_v54 = vpop.eup %5842 }
 0x1f9   :  { %v5845_v55 = vpop.eup %5844  ;;  %5217 = vmatprep.mubr.msk.f32.mxu1 %vm786_vm3, %v5843_v54 }
 0x1fa   :  { %5218 = vmatmul.mubr.msk.f32.gmra.mxu1 %vm786_vm3, %v5845_v55 }
 0x1fb   :  { %5292 = vmatprep.mubr.msk.f32.mxu1 %vm58_vm1, %v6386_v3  ;;  %v1508_v3 = vld [vmem:[%s7760_s1 + $0xf0] sm:$0xff] }
 0x1fc   :  { %5276 = vmatprep.subr.mxu1 %v1508_v3 }
 0x1fd   :  { %5277 = vmatpush3.msra.mxu1 %v1508_v3 }
 0x1fe   :  { %5278 = vmatprep.subr.mxu1 %v1507_v59 }
 0x1ff   :  { %5279 = vmatpush3.msra.mxu1 %v1507_v59 }
 0x200   :  { %5280 = vmatprep.subr.mxu1 %v1506_v60 }
 0x201   :  { %5281 = vmatpush3.msra.mxu1 %v1506_v60 }
 0x202   :  { %5282 = vmatprep.subr.mxu1 %v1505_v61 }
 0x203   :  { %5283 = vmatpush3.msra.mxu1 %v1505_v61 }
 0x204   :  { %5284 = vmatprep.subr.mxu1 %v1504_v62 }
 0x205   :  { %5285 = vmatpush3.msra.mxu1 %v1504_v62 }
 0x206   :  { %5286 = vmatprep.subr.mxu1 %v1503_v63 }
 0x207   :  { %5287 = vmatpush3.msra.mxu1 %v1503_v63 }
 0x208   :  { %5288 = vmatprep.subr.mxu1 %v1502_v0 }
 0x209   :  { %5289 = vmatpush3.msra.mxu1 %v1502_v0 }
 0x27e   :  { %v5174_v2 = vpop.f32.mrf.mxu1 }
 0x27f   :  { %v955_v4 = vadd.f32 %v5174_v2, %v6737_v1 }
 0x280   :  { %v949_v5 = vpop.f32.mrf.mxu1 }
 0x281   :  { %v950_v6 = vadd.f32 %v6737_v1, %v949_v5 }
 0x282   :  { %v5177_v7 = vpop.f32.mrf.mxu1 }
 0x283   :  { %5846 = vtanh.f32 %v950_v6  ;;  %v965_v8 = vadd.f32 %v5177_v7, %v6737_v1 }
 0x284   :  { %5848 = vtanh.f32 %v955_v4  ;;  %v959_v9 = vpop.f32.mrf.mxu1 }
 0x285   :  { %v960_v10 = vadd.f32 %v6737_v1, %v959_v9 }
 0x286   :  { %v5180_v11 = vpop.f32.mrf.mxu1 }
 0x287   :  { %5850 = vtanh.f32 %v960_v10  ;;  %v975_v12 = vadd.f32 %v5180_v11, %v6737_v1 }
 0x288   :  { %5852 = vtanh.f32 %v965_v8  ;;  %v969_v13 = vpop.f32.mrf.mxu1 }
 0x289   :  { %v970_v14 = vadd.f32 %v6737_v1, %v969_v13 }
 0x28a   :  { %v5183_v15 = vpop.f32.mrf.mxu1 }
 0x28b   :  { %5854 = vtanh.f32 %v970_v14  ;;  %v985_v45 = vadd.f32 %v5183_v15, %v6737_v1 }
 0x28c   :  { %5856 = vtanh.f32 %v975_v12  ;;  %v979_v16 = vpop.f32.mrf.mxu1 }
 0x28d   :  { %v980_v17 = vadd.f32 %v6737_v1, %v979_v16 }
 0x28e   :  { %v5186_v18 = vpop.f32.mrf.mxu1 }
 0x28f   :  { %5858 = vtanh.f32 %v980_v17  ;;  %v995_v20 = vadd.f32 %v5186_v18, %v6737_v1 }
 0x290   :  { %v5847_v19 = vpop.eup %5846  ;;  %5860 = vtanh.f32 %v985_v45  ;;  %v989_v22 = vpop.f32.mrf.mxu1 }
 0x291   :  { %v5849_v23 = vpop.eup %5848  ;;  %v990_v24 = vadd.f32 %v6737_v1, %v989_v22  ;;  %5224 = vmatprep.mubr.msk.f32.mxu0 %vm423_vm2, %v5847_v19 }
 0x292   :  { %v5189_v25 = vpop.f32.mrf.mxu1  ;;  %5225 = vmatmul.mubr.msk.f32.vlgmr.msra.gmra.mxu0 %vm423_vm2, %v5849_v23 }
 0x293   :  { %5862 = vtanh.f32 %v990_v24  ;;  %5341 = vmatpush3.msra.mxu0 %v6708_v58  ;;  %v1005_v27 = vadd.f32 %v5189_v25, %v6737_v1 }
 0x294   :  { %v5851_v26 = vpop.eup %5850  ;;  %5864 = vtanh.f32 %v995_v20  ;;  %v999_v28 = vpop.f32.mrf.mxu1 }
 0x295   :  { %v5853_v29 = vpop.eup %5852  ;;  %v1000_v30 = vadd.f32 %v6737_v1, %v999_v28  ;;  %5227 = vmatprep.mubr.msk.f32.mxu0 %vm423_vm2, %v5851_v26 }
 0x296   :  { %v5192_v31 = vpop.f32.mrf.mxu1  ;;  %5228 = vmatmul.mubr.msk.f32.gmra.mxu0 %vm423_vm2, %v5853_v29 }
 0x297   :  { %5866 = vtanh.f32 %v1000_v30  ;;  %v1015_v33 = vadd.f32 %v5192_v31, %v6737_v1 }
 0x298   :  { %v5855_v32 = vpop.eup %5854  ;;  %5868 = vtanh.f32 %v1005_v27  ;;  %v1009_v34 = vpop.f32.mrf.mxu1 }
 0x299   :  { %v5857_v35 = vpop.eup %5856  ;;  %v1010_v36 = vadd.f32 %v6737_v1, %v1009_v34  ;;  %5230 = vmatprep.mubr.msk.f32.mxu0 %vm423_vm2, %v5855_v32 }
 0x29a   :  { %v5195_v37 = vpop.f32.mrf.mxu1  ;;  %5231 = vmatmul.mubr.msk.f32.gmra.mxu0 %vm423_vm2, %v5857_v35 }
 0x29b   :  { %5870 = vtanh.f32 %v1010_v36  ;;  %v1025_v39 = vadd.f32 %v5195_v37, %v6737_v1  ;;  %v1501_v36 = vld [vmem:[%s7760_s1 + $0xb8] sm:$0xff]  ;;  %v6294_v37 = vld [vmem:[%s7761_s0 + $0x8] sm:$0xff] }
 0x29c   :  { %v5859_v38 = vpop.eup %5858  ;;  %5872 = vtanh.f32 %v1015_v33  ;;  %v1019_v40 = vpop.f32.mrf.mxu1  ;;  %5290 = vmatprep.subr.mxu1 %v1501_v36 }
 0x29d   :  { %v5861_v41 = vpop.eup %5860  ;;  %v1020_v42 = vadd.f32 %v6737_v1, %v1019_v40  ;;  %5233 = vmatprep.mubr.msk.f32.mxu0 %vm423_vm2, %v5859_v38  ;;  %5291 = vmatpush3.msra.mxu1 %v1501_v36  ;;  %v6295_v38 = vld [vmem:[%s7761_s0 + $0x10] sm:$0xff]  ;;  %v6297_v40 = vld [vmem:[%s7761_s0 + $0x20] sm:$0xff] }
 0x29e   :  { %v5198_v43 = vpop.f32.mrf.mxu1  ;;  %5234 = vmatmul.mubr.msk.f32.gmra.mxu0 %vm423_vm2, %v5861_v41  ;;  %5293 = vmatmul.mubr.msk.f32.vlgmr.msra.gmra.mxu1 %vm58_vm1, %v6294_v37  ;;  %v6299_v41 = vld [vmem:[%s7761_s0 + $0x30] sm:$0xff] }
 0x29f   :  { %5874 = vtanh.f32 %v1020_v42  ;;  %v1035_v46 = vadd.f32 %v5198_v43, %v6737_v1  ;;  %5716 = vmatprep.subr.mxu1 %v6708_v58  ;;  %5295 = vmatprep.mubr.msk.f32.mxu1 %vm58_vm1, %v6295_v38  ;;  %v6300_v42 = vld [vmem:[%s7761_s0 + $0x38] sm:$0xff]  ;;  %v6301_v43 = vld [vmem:[%s7761_s0 + $0x40] sm:$0xff] }
 0x2a0   :  { %v5863_v44 = vpop.eup %5862  ;;  %5876 = vtanh.f32 %v1025_v39  ;;  %v1029_v47 = vpop.f32.mrf.mxu1  ;;  %5717 = vmatpush3.msra.mxu1 %v6708_v58  ;;  %v6296_v39 = vld [vmem:[%s7761_s0 + $0x18] sm:$0xff]  ;;  %v6298_v58 = vld [vmem:[%s7761_s0 + $0x28] sm:$0xff] }
 0x2a1   :  { %v5865_v48 = vpop.eup %5864  ;;  %v1030_v49 = vadd.f32 %v6737_v1, %v1029_v47  ;;  %5236 = vmatprep.mubr.msk.f32.mxu0 %vm423_vm2, %v5863_v44  ;;  %v6302_v44 = vld [vmem:[%s7761_s0 + $0x48] sm:$0xff]  ;;  %v6304_v47 = vld [vmem:[%s7761_s0 + $0x58] sm:$0xff] }
 0x2a2   :  { %v5201_v50 = vpop.f32.mrf.mxu1  ;;  %5237 = vmatmul.mubr.msk.f32.gmra.mxu0 %vm423_vm2, %v5865_v48  ;;  %5296 = vmatmul.mubr.msk.f32.gmra.mxu1 %vm58_vm1, %v6296_v39  ;;  %v6305_v48 = vld [vmem:[%s7761_s0 + $0x60] sm:$0xff] }
 0x2a3   :  { %5878 = vtanh.f32 %v1030_v49  ;;  %v1045_v52 = vadd.f32 %v5201_v50, %v6737_v1  ;;  %5298 = vmatprep.mubr.msk.f32.mxu1 %vm58_vm1, %v6297_v40  ;;  %v6306_v49 = vld [vmem:[%s7761_s0 + $0x68] sm:$0xff]  ;;  %v6307_v50 = vld [vmem:[%s7761_s0 + $0x70] sm:$0xff] }
 0x2a4   :  { %v5867_v51 = vpop.eup %5866  ;;  %5880 = vtanh.f32 %v1035_v46  ;;  %v1039_v53 = vpop.f32.mrf.mxu1  ;;  %v6303_v46 = vld [vmem:[%s7761_s0 + $0x50] sm:$0xff] }
 0x2a5   :  { %v5869_v21 = vpop.eup %5868  ;;  %v1040_v54 = vadd.f32 %v6737_v1, %v1039_v53  ;;  %5239 = vmatprep.mubr.msk.f32.mxu0 %vm423_vm2, %v5867_v51  ;;  %v6308_v51 = vld [vmem:[%s7761_s0 + $0x78] sm:$0xff]  ;;  %v6310_v53 = vld [vmem:[%s7761_s0 + $0x88] sm:$0xff] }
 0x2a6   :  { %v5204_v55 = vpop.f32.mrf.mxu1  ;;  %5240 = vmatmul.mubr.msk.f32.gmra.mxu0 %vm423_vm2, %v5869_v21  ;;  %5299 = vmatmul.mubr.msk.f32.gmra.mxu1 %vm58_vm1, %v6298_v58  ;;  %v6311_v21 = vld [vmem:[%s7761_s0 + $0x90] sm:$0xff] }
 0x2a7   :  { %5882 = vtanh.f32 %v1040_v54  ;;  %v1055_v57 = vadd.f32 %v5204_v55, %v6737_v1  ;;  %5301 = vmatprep.mubr.msk.f32.mxu1 %vm58_vm1, %v6299_v41  ;;  %v6312_v54 = vld [vmem:[%s7761_s0 + $0x98] sm:$0xff]  ;;  %v6313_v55 = vld [vmem:[%s7761_s0 + $0xa0] sm:$0xff] }
 0x2a8   :  { %v5871_v56 = vpop.eup %5870  ;;  %5884 = vtanh.f32 %v1045_v52  ;;  %v1049_v3 = vpop.f32.mrf.mxu1  ;;  %v6309_v52 = vld [vmem:[%s7761_s0 + $0x80] sm:$0xff] }
 0x2a9   :  { %v5873_v59 = vpop.eup %5872  ;;  %v1050_v60 = vadd.f32 %v6737_v1, %v1049_v3  ;;  %5242 = vmatprep.mubr.msk.f32.mxu0 %vm423_vm2, %v5871_v56  ;;  %v6314_v56 = vld [vmem:[%s7761_s0 + $0xa8] sm:$0xff]  ;;  %v6316_v3 = vld [vmem:[%s7761_s0 + $0xb8] sm:$0xff] }
 0x2aa   :  { %v5207_v61 = vpop.f32.mrf.mxu1  ;;  %5243 = vmatmul.mubr.msk.f32.gmra.mxu0 %vm423_vm2, %v5873_v59  ;;  %5302 = vmatmul.mubr.msk.f32.gmra.mxu1 %vm58_vm1, %v6300_v42  ;;  %v6317_v59 = vld [vmem:[%s7761_s0 + $0xc0] sm:$0xff] }
 0x2ab   :  { %5886 = vtanh.f32 %v1050_v60  ;;  %v1065_v63 = vadd.f32 %v5207_v61, %v6737_v1  ;;  %5304 = vmatprep.mubr.msk.f32.mxu1 %vm58_vm1, %v6301_v43  ;;  %v6318_v60 = vld [vmem:[%s7761_s0 + $0xc8] sm:$0xff]  ;;  %v6319_v61 = vld [vmem:[%s7761_s0 + $0xd0] sm:$0xff] }
 0x2ac   :  { %v5875_v62 = vpop.eup %5874  ;;  %5888 = vtanh.f32 %v1055_v57  ;;  %v1059_v0 = vpop.f32.mrf.mxu1  ;;  %v6315_v57 = vld [vmem:[%s7761_s0 + $0xb0] sm:$0xff] }
 0x2ad   :  { %v5877_v2 = vpop.eup %5876  ;;  %v1060_v4 = vadd.f32 %v6737_v1, %v1059_v0  ;;  %5245 = vmatprep.mubr.msk.f32.mxu0 %vm423_vm2, %v5875_v62  ;;  %v6320_v62 = vld [vmem:[%s7761_s0 + $0xd8] sm:$0xff]  ;;  %v6322_v0 = vld [vmem:[%s7761_s0 + $0xe8] sm:$0xff] }
 0x2ae   :  { %v5210_v5 = vpop.f32.mrf.mxu1  ;;  %5246 = vmatmul.mubr.msk.f32.gmra.mxu0 %vm423_vm2, %v5877_v2  ;;  %5305 = vmatmul.mubr.msk.f32.gmra.mxu1 %vm58_vm1, %v6302_v44  ;;  %v6323_v2 = vld [vmem:[%s7761_s0 + $0xf0] sm:$0xff] }
 0x2af   :  { %5890 = vtanh.f32 %v1060_v4  ;;  %v1075_v7 = vadd.f32 %v5210_v5, %v6737_v1  ;;  %5307 = vmatprep.mubr.msk.f32.mxu1 %vm58_vm1, %v6303_v46  ;;  %v6324_v4 = vld [vmem:[%s7761_s0 + $0xf8] sm:$0xff]  ;;  %v6936_v5 = vld [vmem:[%s7760_s1 + $0xa8] ss:$0 sm:$0xff] }
 0x2b0   :  { %v5879_v6 = vpop.eup %5878  ;;  %5892 = vtanh.f32 %v1065_v63  ;;  %v1069_v8 = vpop.f32.mrf.mxu1  ;;  %v6321_v63 = vld [vmem:[%s7761_s0 + $0xe0] sm:$0xff] }
 0x2b1   :  { %v5881_v9 = vpop.eup %5880  ;;  %v1070_v10 = vadd.f32 %v6737_v1, %v1069_v8  ;;  %5248 = vmatprep.mubr.msk.f32.mxu0 %vm423_vm2, %v5879_v6 }
 0x2b2   :  { %v5213_v11 = vpop.f32.mrf.mxu1  ;;  %5249 = vmatmul.mubr.msk.f32.gmra.mxu0 %vm423_vm2, %v5881_v9  ;;  %5308 = vmatmul.mubr.msk.f32.gmra.mxu1 %vm58_vm1, %v6304_v47 }
 0x2b3   :  { %5894 = vtanh.f32 %v1070_v10  ;;  %v1085_v13 = vadd.f32 %v5213_v11, %v6737_v1  ;;  %5310 = vmatprep.mubr.msk.f32.mxu1 %vm58_vm1, %v6305_v48 }
 0x2b4   :  { %v5883_v12 = vpop.eup %5882  ;;  %5896 = vtanh.f32 %v1075_v7  ;;  %v1079_v14 = vpop.f32.mrf.mxu1 }
 0x2b5   :  { %v5885_v15 = vpop.eup %5884  ;;  %v1080_v45 = vadd.f32 %v6737_v1, %v1079_v14  ;;  %5251 = vmatprep.mubr.msk.f32.mxu0 %vm423_vm2, %v5883_v12 }
 0x2b6   :  { %v5216_v16 = vpop.f32.mrf.mxu1  ;;  %5252 = vmatmul.mubr.msk.f32.gmra.mxu0 %vm423_vm2, %v5885_v15  ;;  %5311 = vmatmul.mubr.msk.f32.gmra.mxu1 %vm58_vm1, %v6306_v49 }
 0x2b7   :  { %5898 = vtanh.f32 %v1080_v45  ;;  %v1095_v18 = vadd.f32 %v5216_v16, %v6737_v1  ;;  %5313 = vmatprep.mubr.msk.f32.mxu1 %vm58_vm1, %v6307_v50 }
 0x2b8   :  { %v5887_v17 = vpop.eup %5886  ;;  %5900 = vtanh.f32 %v1085_v13  ;;  %v1089_v19 = vpop.f32.mrf.mxu1 }
 0x2b9   :  { %v5889_v20 = vpop.eup %5888  ;;  %v1090_v22 = vadd.f32 %v6737_v1, %v1089_v19  ;;  %5254 = vmatprep.mubr.msk.f32.mxu0 %vm423_vm2, %v5887_v17 }
 0x2ba   :  { %v5219_v23 = vpop.f32.mrf.mxu1  ;;  %5255 = vmatmul.mubr.msk.f32.gmra.mxu0 %vm423_vm2, %v5889_v20  ;;  %5314 = vmatmul.mubr.msk.f32.gmra.mxu1 %vm58_vm1, %v6308_v51 }
 0x2bb   :  { %5902 = vtanh.f32 %v1090_v22  ;;  %v1105_v25 = vadd.f32 %v5219_v23, %v6737_v1  ;;  %5316 = vmatprep.mubr.msk.f32.mxu1 %vm58_vm1, %v6309_v52 }
 0x2bc   :  { %v5891_v24 = vpop.eup %5890  ;;  %5904 = vtanh.f32 %v1095_v18  ;;  %v1099_v26 = vpop.f32.mrf.mxu1 }
 0x2bd   :  { %v5893_v27 = vpop.eup %5892  ;;  %v1100_v28 = vadd.f32 %v6737_v1, %v1099_v26  ;;  %5257 = vmatprep.mubr.msk.f32.mxu0 %vm423_vm2, %v5891_v24 }
 0x2be   :  { %5258 = vmatmul.mubr.msk.f32.gmra.mxu0 %vm423_vm2, %v5893_v27  ;;  %5317 = vmatmul.mubr.msk.f32.gmra.mxu1 %vm58_vm1, %v6310_v53 }
 0x2bf   :  { %5906 = vtanh.f32 %v1100_v28  ;;  %5319 = vmatprep.mubr.msk.f32.mxu1 %vm58_vm1, %v6311_v21 }
 0x2c0   :  { %v5895_v29 = vpop.eup %5894  ;;  %5908 = vtanh.f32 %v1105_v25 }
 0x2c1   :  { %v5897_v30 = vpop.eup %5896  ;;  %5260 = vmatprep.mubr.msk.f32.mxu0 %vm423_vm2, %v5895_v29 }
 0x2c2   :  { %5261 = vmatmul.mubr.msk.f32.gmra.mxu0 %vm423_vm2, %v5897_v30  ;;  %5320 = vmatmul.mubr.msk.f32.gmra.mxu1 %vm58_vm1, %v6312_v54 }
 0x2c3   :  { %5322 = vmatprep.mubr.msk.f32.mxu1 %vm58_vm1, %v6313_v55 }
 0x2c4   :  { %v5899_v31 = vpop.eup %5898 }
 0x2c5   :  { %v5901_v32 = vpop.eup %5900  ;;  %5263 = vmatprep.mubr.msk.f32.mxu0 %vm423_vm2, %v5899_v31 }
 0x2c6   :  { %5264 = vmatmul.mubr.msk.f32.gmra.mxu0 %vm423_vm2, %v5901_v32  ;;  %5323 = vmatmul.mubr.msk.f32.gmra.mxu1 %vm58_vm1, %v6314_v56 }
 0x2c7   :  { %5325 = vmatprep.mubr.msk.f32.mxu1 %vm58_vm1, %v6315_v57 }
 0x2c8   :  { %v5903_v33 = vpop.eup %5902 }
 0x2c9   :  { %v5905_v1 = vpop.eup %5904  ;;  %5266 = vmatprep.mubr.msk.f32.mxu0 %vm423_vm2, %v5903_v33 }
 0x2ca   :  { %5267 = vmatmul.mubr.msk.f32.gmra.mxu0 %vm423_vm2, %v5905_v1  ;;  %5326 = vmatmul.mubr.msk.f32.gmra.mxu1 %vm58_vm1, %v6316_v3 }
 0x2cb   :  { %5328 = vmatprep.mubr.msk.f32.mxu1 %vm58_vm1, %v6317_v59 }
 0x2cc   :  { %v5907_v34 = vpop.eup %5906 }
 0x2cd   :  { %v5909_v35 = vpop.eup %5908  ;;  %5269 = vmatprep.mubr.msk.f32.mxu0 %vm423_vm2, %v5907_v34 }
 0x2ce   :  { %5270 = vmatmul.mubr.msk.f32.gmra.mxu0 %vm423_vm2, %v5909_v35  ;;  %5329 = vmatmul.mubr.msk.f32.gmra.mxu1 %vm58_vm1, %v6318_v60 }
 0x2cf   :  { %5331 = vmatprep.mubr.msk.f32.mxu1 %vm58_vm1, %v6319_v61 }
 0x2d2   :  { %5332 = vmatmul.mubr.msk.f32.gmra.mxu1 %vm58_vm1, %v6320_v62 }
 0x2d3   :  { %5334 = vmatprep.mubr.msk.f32.mxu1 %vm58_vm1, %v6321_v63 }
 0x2d6   :  { %5335 = vmatmul.mubr.msk.f32.gmra.mxu1 %vm58_vm1, %v6322_v0 }
 0x2d7   :  { %5337 = vmatprep.mubr.msk.f32.mxu1 %vm58_vm1, %v6323_v2 }
 0x2da   :  { %5338 = vmatmul.mubr.msk.f32.gmra.mxu1 %vm58_vm1, %v6324_v4 }
 0x352   :  { %v5226_v6 = vpop.f32.mrf.mxu0 }
 0x353   :  { %v1315_v7 = vadd.f32 %v5226_v6, %v6936_v5 }
 0x354   :  { %v1309_v8 = vpop.f32.mrf.mxu0 }
 0x355   :  { %v1310_v9 = vadd.f32 %v6936_v5, %v1309_v8 }
 0x356   :  { %v5229_v10 = vpop.f32.mrf.mxu0 }
 0x357   :  { %5910 = vtanh.f32 %v1310_v9  ;;  %v1325_v11 = vadd.f32 %v5229_v10, %v6936_v5 }
 0x358   :  { %5912 = vtanh.f32 %v1315_v7  ;;  %v1319_v12 = vpop.f32.mrf.mxu0 }
 0x359   :  { %v1320_v13 = vadd.f32 %v6936_v5, %v1319_v12 }
 0x35a   :  { %v5232_v14 = vpop.f32.mrf.mxu0 }
 0x35b   :  { %5914 = vtanh.f32 %v1320_v13  ;;  %v1335_v15 = vadd.f32 %v5232_v14, %v6936_v5 }
 0x35c   :  { %5916 = vtanh.f32 %v1325_v11  ;;  %v1329_v45 = vpop.f32.mrf.mxu0 }
 0x35d   :  { %v1330_v16 = vadd.f32 %v6936_v5, %v1329_v45 }
 0x35e   :  { %v5235_v17 = vpop.f32.mrf.mxu0 }
 0x35f   :  { %5918 = vtanh.f32 %v1330_v16  ;;  %v1345_v18 = vadd.f32 %v5235_v17, %v6936_v5 }
 0x360   :  { %5920 = vtanh.f32 %v1335_v15  ;;  %v1339_v19 = vpop.f32.mrf.mxu0 }
 0x361   :  { %v1340_v20 = vadd.f32 %v6936_v5, %v1339_v19 }
 0x362   :  { %v5238_v22 = vpop.f32.mrf.mxu0 }
 0x363   :  { %5922 = vtanh.f32 %v1340_v20  ;;  %v1355_v24 = vadd.f32 %v5238_v22, %v6936_v5 }
 0x364   :  { %v5911_v23 = vpop.eup %5910  ;;  %5924 = vtanh.f32 %v1345_v18  ;;  %v1349_v25 = vpop.f32.mrf.mxu0 }
 0x365   :  { %v5913_v26 = vpop.eup %5912  ;;  %v1350_v27 = vadd.f32 %v6936_v5, %v1349_v25  ;;  %5342 = vmatprep.mubr.msk.f32.mxu0 %vm1739_vm4, %v5911_v23 }
 0x366   :  { %v5241_v28 = vpop.f32.mrf.mxu0  ;;  %5343 = vmatmul.mubr.msk.f32.vlgmr.msra.gmra.mxu0 %vm1739_vm4, %v5913_v26 }
 0x367   :  { %5926 = vtanh.f32 %v1350_v27  ;;  %v1365_v30 = vadd.f32 %v5241_v28, %v6936_v5 }
 0x368   :  { %v5915_v29 = vpop.eup %5914  ;;  %5928 = vtanh.f32 %v1355_v24  ;;  %v1359_v31 = vpop.f32.mrf.mxu0 }
 0x369   :  { %v5917_v32 = vpop.eup %5916  ;;  %v1360_v33 = vadd.f32 %v6936_v5, %v1359_v31  ;;  %5345 = vmatprep.mubr.msk.f32.mxu0 %vm1739_vm4, %v5915_v29 }
 0x36a   :  { %v5244_v1 = vpop.f32.mrf.mxu0  ;;  %5346 = vmatmul.mubr.msk.f32.gmra.mxu0 %vm1739_vm4, %v5917_v32 }
 0x36b   :  { %5930 = vtanh.f32 %v1360_v33  ;;  %v1375_v35 = vadd.f32 %v5244_v1, %v6936_v5 }
 0x36c   :  { %v5919_v34 = vpop.eup %5918  ;;  %5932 = vtanh.f32 %v1365_v30  ;;  %v1369_v36 = vpop.f32.mrf.mxu0 }
 0x36d   :  { %v5921_v37 = vpop.eup %5920  ;;  %v1370_v38 = vadd.f32 %v6936_v5, %v1369_v36  ;;  %5348 = vmatprep.mubr.msk.f32.mxu0 %vm1739_vm4, %v5919_v34 }
 0x36e   :  { %v5247_v39 = vpop.f32.mrf.mxu0  ;;  %5349 = vmatmul.mubr.msk.f32.gmra.mxu0 %vm1739_vm4, %v5921_v37  ;;  %v2130_v37 = vld [vmem:[%s7760_s1 + $0x110] sm:$0xff] }
 0x36f   :  { %5934 = vtanh.f32 %v1370_v38  ;;  %v1385_v58 = vadd.f32 %v5247_v39, %v6936_v5  ;;  %5390 = vmatprep.subr.mxu1 %v2130_v37  ;;  %v5294_v38 = vpop.f32.mrf.mxu1 }
 0x370   :  { %v5923_v40 = vpop.eup %5922  ;;  %5936 = vtanh.f32 %v1375_v35  ;;  %v1379_v41 = vpop.f32.mrf.mxu0 }
 0x371   :  { %v5925_v42 = vpop.eup %5924  ;;  %v1380_v43 = vadd.f32 %v6936_v5, %v1379_v41  ;;  %5351 = vmatprep.mubr.msk.f32.mxu0 %vm1739_vm4, %v5923_v40  ;;  %v1580_v39 = vpop.f32.mrf.mxu1 }
 0x372   :  { %v5250_v44 = vpop.f32.mrf.mxu0  ;;  %5352 = vmatmul.mubr.msk.f32.gmra.mxu0 %vm1739_vm4, %v5925_v42 }
 0x373   :  { %5938 = vtanh.f32 %v1380_v43  ;;  %v1395_v47 = vadd.f32 %v5250_v44, %v6936_v5  ;;  %v5297_v40 = vpop.f32.mrf.mxu1  ;;  %v2489_v44 = vld [vmem:[%s7760_s1 + $0x120] sm:$0xff] }
 0x374   :  { %v5927_v46 = vpop.eup %5926  ;;  %5940 = vtanh.f32 %v1385_v58  ;;  %v1389_v48 = vpop.f32.mrf.mxu0  ;;  %5440 = vmatprep.subr.mxu0 %v2489_v44 }
 0x375   :  { %v5929_v49 = vpop.eup %5928  ;;  %v1390_v50 = vadd.f32 %v6936_v5, %v1389_v48  ;;  %5354 = vmatprep.mubr.msk.f32.mxu0 %vm1739_vm4, %v5927_v46  ;;  %v1590_v58 = vpop.f32.mrf.mxu1  ;;  %5441 = vmatpush3.msra.mxu0 %v2489_v44 }
 0x376   :  { %v5253_v51 = vpop.f32.mrf.mxu0  ;;  %5355 = vmatmul.mubr.msk.f32.gmra.mxu0 %vm1739_vm4, %v5929_v49 }
 0x377   :  { %5942 = vtanh.f32 %v1390_v50  ;;  %v1405_v53 = vadd.f32 %v5253_v51, %v6936_v5  ;;  %v5300_v41 = vpop.f32.mrf.mxu1 }
 0x378   :  { %v5931_v52 = vpop.eup %5930  ;;  %5944 = vtanh.f32 %v1395_v47  ;;  %v1399_v21 = vpop.f32.mrf.mxu0 }
 0x379   :  { %v5933_v54 = vpop.eup %5932  ;;  %v1400_v55 = vadd.f32 %v6936_v5, %v1399_v21  ;;  %5357 = vmatprep.mubr.msk.f32.mxu0 %vm1739_vm4, %v5931_v52  ;;  %v1600_v42 = vpop.f32.mrf.mxu1 }
 0x37a   :  { %v5256_v56 = vpop.f32.mrf.mxu0  ;;  %5358 = vmatmul.mubr.msk.f32.gmra.mxu0 %vm1739_vm4, %v5933_v54 }
 0x37b   :  { %5946 = vtanh.f32 %v1400_v55  ;;  %v1415_v3 = vadd.f32 %v5256_v56, %v6936_v5  ;;  %v5303_v43 = vpop.f32.mrf.mxu1 }
 0x37c   :  { %v5935_v57 = vpop.eup %5934  ;;  %5948 = vtanh.f32 %v1405_v53  ;;  %v1409_v59 = vpop.f32.mrf.mxu0 }
 0x37d   :  { %v5937_v60 = vpop.eup %5936  ;;  %v1410_v61 = vadd.f32 %v6936_v5, %v1409_v59  ;;  %5360 = vmatprep.mubr.msk.f32.mxu0 %vm1739_vm4, %v5935_v57  ;;  %v1610_v46 = vpop.f32.mrf.mxu1 }
 0x37e   :  { %v5259_v62 = vpop.f32.mrf.mxu0  ;;  %5361 = vmatmul.mubr.msk.f32.gmra.mxu0 %vm1739_vm4, %v5937_v60 }
 0x37f   :  { %5950 = vtanh.f32 %v1410_v61  ;;  %v1425_v0 = vadd.f32 %v5259_v62, %v6936_v5  ;;  %v5306_v47 = vpop.f32.mrf.mxu1 }
 0x380   :  { %v5939_v63 = vpop.eup %5938  ;;  %5952 = vtanh.f32 %v1415_v3  ;;  %v1419_v2 = vpop.f32.mrf.mxu0  ;;  %v7023_v3 = vld [vmem:[%s7760_s1 + $0x108] ss:$0 sm:$0xff] }
 0x381   :  { %v5941_v4 = vpop.eup %5940  ;;  %v1420_v6 = vadd.f32 %v6936_v5, %v1419_v2  ;;  %5363 = vmatprep.mubr.msk.f32.mxu0 %vm1739_vm4, %v5939_v63  ;;  %v1620_v48 = vpop.f32.mrf.mxu1 }
 0x382   :  { %v5262_v7 = vpop.f32.mrf.mxu0  ;;  %5364 = vmatmul.mubr.msk.f32.gmra.mxu0 %vm1739_vm4, %v5941_v4 }
 0x383   :  { %5954 = vtanh.f32 %v1420_v6  ;;  %v1435_v9 = vadd.f32 %v5262_v7, %v6936_v5  ;;  %v5309_v49 = vpop.f32.mrf.mxu1 }
 0x384   :  { %v5943_v8 = vpop.eup %5942  ;;  %5956 = vtanh.f32 %v1425_v0  ;;  %v1429_v10 = vpop.f32.mrf.mxu0 }
 0x385   :  { %v5945_v11 = vpop.eup %5944  ;;  %v1430_v12 = vadd.f32 %v6936_v5, %v1429_v10  ;;  %5366 = vmatprep.mubr.msk.f32.mxu0 %vm1739_vm4, %v5943_v8  ;;  %v1630_v50 = vpop.f32.mrf.mxu1 }
 0x386   :  { %v5265_v13 = vpop.f32.mrf.mxu0  ;;  %5367 = vmatmul.mubr.msk.f32.gmra.mxu0 %vm1739_vm4, %v5945_v11 }
 0x387   :  { %5958 = vtanh.f32 %v1430_v12  ;;  %v1445_v15 = vadd.f32 %v5265_v13, %v6936_v5  ;;  %v7008_v51 = vpop.f32.mrf.mxu1 }
 0x388   :  { %v5947_v14 = vpop.eup %5946  ;;  %5960 = vtanh.f32 %v1435_v9  ;;  %v1439_v45 = vpop.f32.mrf.mxu0 }
 0x389   :  { %v5949_v16 = vpop.eup %5948  ;;  %v1440_v17 = vadd.f32 %v6936_v5, %v1439_v45  ;;  %5369 = vmatprep.mubr.msk.f32.mxu0 %vm1739_vm4, %v5947_v14  ;;  %v7010_v52 = vpop.f32.mrf.mxu1 }
 0x38a   :  { %v5268_v18 = vpop.f32.mrf.mxu0  ;;  %5370 = vmatmul.mubr.msk.f32.gmra.mxu0 %vm1739_vm4, %v5949_v16 }
 0x38b   :  { %5962 = vtanh.f32 %v1440_v17  ;;  %v1455_v20 = vadd.f32 %v5268_v18, %v6936_v5  ;;  %v7012_v53 = vpop.f32.mrf.mxu1 }
 0x38c   :  { %v5951_v19 = vpop.eup %5950  ;;  %5964 = vtanh.f32 %v1445_v15  ;;  %v1449_v22 = vpop.f32.mrf.mxu0 }
 0x38d   :  { %v5953_v23 = vpop.eup %5952  ;;  %v1450_v24 = vadd.f32 %v6936_v5, %v1449_v22  ;;  %5372 = vmatprep.mubr.msk.f32.mxu0 %vm1739_vm4, %v5951_v19  ;;  %v7014_v21 = vpop.f32.mrf.mxu1 }
 0x38e   :  { %v5271_v25 = vpop.f32.mrf.mxu0  ;;  %5373 = vmatmul.mubr.msk.f32.gmra.mxu0 %vm1739_vm4, %v5953_v23 }
 0x38f   :  { %5966 = vtanh.f32 %v1450_v24  ;;  %v1465_v27 = vadd.f32 %v5271_v25, %v6936_v5  ;;  %v7016_v54 = vpop.f32.mrf.mxu1 }
 0x390   :  { %v5955_v26 = vpop.eup %5954  ;;  %5968 = vtanh.f32 %v1455_v20  ;;  %v1459_v28 = vpop.f32.mrf.mxu0 }
 0x391   :  { %v5957_v29 = vpop.eup %5956  ;;  %v1460_v30 = vadd.f32 %v6936_v5, %v1459_v28  ;;  %5375 = vmatprep.mubr.msk.f32.mxu0 %vm1739_vm4, %v5955_v26  ;;  %v7018_v55 = vpop.f32.mrf.mxu1 }
 0x392   :  { %5376 = vmatmul.mubr.msk.f32.gmra.mxu0 %vm1739_vm4, %v5957_v29 }
 0x393   :  { %5970 = vtanh.f32 %v1460_v30  ;;  %v7025_v60 = vpop.f32.mrf.mxu1 }
 0x394   :  { %v5959_v31 = vpop.eup %5958  ;;  %5972 = vtanh.f32 %v1465_v27 }
 0x395   :  { %v5961_v32 = vpop.eup %5960  ;;  %5378 = vmatprep.mubr.msk.f32.mxu0 %vm1739_vm4, %v5959_v31  ;;  %v7029_v6 = vpop.f32.mrf.mxu1 }
 0x396   :  { %5379 = vmatmul.mubr.msk.f32.gmra.mxu0 %vm1739_vm4, %v5961_v32 }
 0x397   :  { %v7033_v13 = vpop.f32.mrf.mxu1 }
 0x398   :  { %v5963_v33 = vpop.eup %5962 }
 0x399   :  { %v5965_v1 = vpop.eup %5964  ;;  %5381 = vmatprep.mubr.msk.f32.mxu0 %vm1739_vm4, %v5963_v33  ;;  %v7037_v19 = vpop.f32.mrf.mxu1 }
 0x39a   :  { %5382 = vmatmul.mubr.msk.f32.gmra.mxu0 %vm1739_vm4, %v5965_v1 }
 0x39b   :  { %v7041_v27 = vpop.f32.mrf.mxu1 }
 0x39c   :  { %v5967_v34 = vpop.eup %5966 }
 0x39d   :  { %v5969_v5 = vpop.eup %5968  ;;  %5384 = vmatprep.mubr.msk.f32.mxu1 %vm1739_vm4, %v5967_v34 }
 0x39e   :  { %5385 = vmatmul.mubr.msk.f32.vlgmr.msra.gmra.mxu1 %vm1739_vm4, %v5969_v5  ;;  %v7047_v5 = vpop.f32.mrf.mxu1 }
 0x39f   :  { %5391 = vmatpush3.msra.mxu1 %v2130_v37 }
 0x3a0   :  { %v5971_v35 = vpop.eup %5970 }
 0x3a1   :  { %v5973_v36 = vpop.eup %5972  ;;  %5387 = vmatprep.mubr.msk.f32.mxu1 %vm1739_vm4, %v5971_v35 }
 0x3a2   :  { %5388 = vmatmul.mubr.msk.f32.gmra.mxu1 %vm1739_vm4, %v5973_v36 }
 0x426   :  { %v5344_v56 = vpop.f32.mrf.mxu0 }
 0x427   :  { %v1908_v57 = vadd.f32 %v5344_v56, %v5294_v38 }
 0x428   :  { %v1902_v59 = vpop.f32.mrf.mxu0 }
 0x429   :  { %v1903_v61 = vadd.f32 %v1902_v59, %v1580_v39  ;;  %v2067_v62 = vadd.f32 %v7023_v3, %v1908_v57 }
 0x42a   :  { %v5347_v63 = vpop.f32.mrf.mxu0 }
 0x42b   :  { %v2066_v0 = vadd.f32 %v7023_v3, %v1903_v61  ;;  %v1918_v2 = vadd.f32 %v5347_v63, %v5297_v40 }
 0x42c   :  { %v1912_v4 = vpop.f32.mrf.mxu0 }
 0x42d   :  { %5974 = vtanh.f32 %v2066_v0  ;;  %v1913_v7 = vadd.f32 %v1912_v4, %v1590_v58  ;;  %v2069_v8 = vadd.f32 %v7023_v3, %v1918_v2 }
 0x42e   :  { %5976 = vtanh.f32 %v2067_v62  ;;  %v5350_v9 = vpop.f32.mrf.mxu0 }
 0x42f   :  { %v2068_v10 = vadd.f32 %v7023_v3, %v1913_v7  ;;  %v1928_v11 = vadd.f32 %v5350_v9, %v5300_v41 }
 0x430   :  { %v1922_v12 = vpop.f32.mrf.mxu0 }
 0x431   :  { %5978 = vtanh.f32 %v2068_v10  ;;  %v1923_v14 = vadd.f32 %v1922_v12, %v1600_v42  ;;  %v2071_v15 = vadd.f32 %v7023_v3, %v1928_v11  ;;  %v7054_v42 = vpop.f32.mrf.mxu1 }
 0x432   :  { %5980 = vtanh.f32 %v2069_v8  ;;  %v5353_v45 = vpop.f32.mrf.mxu0 }
 0x433   :  { %v2070_v16 = vadd.f32 %v7023_v3, %v1923_v14  ;;  %v1938_v17 = vadd.f32 %v5353_v45, %v5303_v43  ;;  %v7062_v56 = vpop.f32.mrf.mxu1 }
 0x434   :  { %v1932_v18 = vpop.f32.mrf.mxu0 }
 0x435   :  { %5982 = vtanh.f32 %v2070_v16  ;;  %v1933_v20 = vadd.f32 %v1932_v18, %v1610_v46  ;;  %v2073_v22 = vadd.f32 %v7023_v3, %v1938_v17  ;;  %v5333_v2 = vpop.f32.mrf.mxu1 }
 0x436   :  { %5984 = vtanh.f32 %v2071_v15  ;;  %v5356_v23 = vpop.f32.mrf.mxu0 }
 0x437   :  { %v2072_v24 = vadd.f32 %v7023_v3, %v1933_v20  ;;  %v1948_v25 = vadd.f32 %v5356_v23, %v5306_v47  ;;  %v1710_v12 = vpop.f32.mrf.mxu1 }
 0x438   :  { %v1942_v26 = vpop.f32.mrf.mxu0 }
 0x439   :  { %5986 = vtanh.f32 %v2072_v24  ;;  %v1943_v28 = vadd.f32 %v1942_v26, %v1620_v48  ;;  %v2075_v30 = vadd.f32 %v7023_v3, %v1948_v25  ;;  %v5336_v20 = vpop.f32.mrf.mxu1 }
 0x43a   :  { %v5975_v29 = vpop.eup %5974  ;;  %5988 = vtanh.f32 %v2073_v22  ;;  %v5359_v31 = vpop.f32.mrf.mxu0 }
 0x43b   :  { %v5977_v32 = vpop.eup %5976  ;;  %v2074_v33 = vadd.f32 %v7023_v3, %v1943_v28  ;;  %v1958_v1 = vadd.f32 %v5359_v31, %v5309_v49  ;;  %5392 = vmatprep.mubr.msk.f32.mxu1 %vm1739_vm4, %v5975_v29  ;;  %v1720_v29 = vpop.f32.mrf.mxu1 }
 0x43c   :  { %v1952_v34 = vpop.f32.mrf.mxu0  ;;  %5393 = vmatmul.mubr.msk.f32.vlgmr.msra.gmra.mxu1 %vm1739_vm4, %v5977_v32 }
 0x43d   :  { %5990 = vtanh.f32 %v2074_v33  ;;  %v1953_v35 = vadd.f32 %v1952_v34, %v1630_v50  ;;  %v2077_v37 = vadd.f32 %v7023_v3, %v1958_v1 }
 0x43e   :  { %v5979_v36 = vpop.eup %5978  ;;  %5992 = vtanh.f32 %v2075_v30  ;;  %v5362_v38 = vpop.f32.mrf.mxu0 }
 0x43f   :  { %v5981_v39 = vpop.eup %5980  ;;  %v2076_v40 = vadd.f32 %v7023_v3, %v1953_v35  ;;  %v1968_v58 = vadd.f32 %v5362_v38, %v7008_v51  ;;  %5395 = vmatprep.mubr.msk.f32.mxu1 %vm1739_vm4, %v5979_v36 }
 0x440   :  { %v1962_v41 = vpop.f32.mrf.mxu0  ;;  %5396 = vmatmul.mubr.msk.f32.gmra.mxu1 %vm1739_vm4, %v5981_v39 }
 0x441   :  { %5994 = vtanh.f32 %v2076_v40  ;;  %v1963_v43 = vadd.f32 %v1962_v41, %v7010_v52  ;;  %v2079_v46 = vadd.f32 %v7023_v3, %v1968_v58 }
 0x442   :  { %v5983_v44 = vpop.eup %5982  ;;  %5996 = vtanh.f32 %v2077_v37  ;;  %v5365_v47 = vpop.f32.mrf.mxu0 }
 0x443   :  { %v5985_v48 = vpop.eup %5984  ;;  %v2078_v49 = vadd.f32 %v7023_v3, %v1963_v43  ;;  %v1978_v50 = vadd.f32 %v5365_v47, %v7012_v53  ;;  %5398 = vmatprep.mubr.msk.f32.mxu1 %vm1739_vm4, %v5983_v44 }
 0x444   :  { %v1972_v51 = vpop.f32.mrf.mxu0  ;;  %5399 = vmatmul.mubr.msk.f32.gmra.mxu1 %vm1739_vm4, %v5985_v48 }
 0x445   :  { %5998 = vtanh.f32 %v2078_v49  ;;  %v1973_v52 = vadd.f32 %v1972_v51, %v7014_v21  ;;  %v2081_v59 = vadd.f32 %v7023_v3, %v1978_v50 }
 0x446   :  { %v5987_v57 = vpop.eup %5986  ;;  %6000 = vtanh.f32 %v2079_v46  ;;  %v5368_v61 = vpop.f32.mrf.mxu0 }
 0x447   :  { %v5989_v62 = vpop.eup %5988  ;;  %v2080_v63 = vadd.f32 %v7023_v3, %v1973_v52  ;;  %v1988_v53 = vadd.f32 %v5368_v61, %v7016_v54  ;;  %5401 = vmatprep.mubr.msk.f32.mxu1 %vm1739_vm4, %v5987_v57 }
 0x448   :  { %v1982_v0 = vpop.f32.mrf.mxu0  ;;  %5402 = vmatmul.mubr.msk.f32.gmra.mxu1 %vm1739_vm4, %v5989_v62 }
 0x449   :  { %6002 = vtanh.f32 %v2080_v63  ;;  %v1983_v4 = vadd.f32 %v1982_v0, %v7018_v55  ;;  %v2083_v7 = vadd.f32 %v7023_v3, %v1988_v53 }
 0x44a   :  { %v5991_v21 = vpop.eup %5990  ;;  %6004 = vtanh.f32 %v2081_v59  ;;  %v5371_v8 = vpop.f32.mrf.mxu0 }
 0x44b   :  { %v5993_v9 = vpop.eup %5992  ;;  %v2082_v10 = vadd.f32 %v7023_v3, %v1983_v4  ;;  %v1998_v11 = vadd.f32 %v5371_v8, %v7025_v60  ;;  %5404 = vmatprep.mubr.msk.f32.mxu1 %vm1739_vm4, %v5991_v21 }
 0x44c   :  { %v1992_v54 = vpop.f32.mrf.mxu0  ;;  %5405 = vmatmul.mubr.msk.f32.gmra.mxu1 %vm1739_vm4, %v5993_v9 }
 0x44d   :  { %6006 = vtanh.f32 %v2082_v10  ;;  %v1993_v14 = vadd.f32 %v1992_v54, %v7029_v6  ;;  %v2085_v15 = vadd.f32 %v7023_v3, %v1998_v11 }
 0x44e   :  { %v5995_v55 = vpop.eup %5994  ;;  %6008 = vtanh.f32 %v2083_v7  ;;  %v5374_v45 = vpop.f32.mrf.mxu0 }
 0x44f   :  { %v5997_v16 = vpop.eup %5996  ;;  %v2084_v17 = vadd.f32 %v7023_v3, %v1993_v14  ;;  %v2008_v18 = vadd.f32 %v5374_v45, %v7033_v13  ;;  %5407 = vmatprep.mubr.msk.f32.mxu1 %vm1739_vm4, %v5995_v55  ;;  %v2849_v55 = vld [vmem:[%s7760_s1 + $0x138] sm:$0xf] }
 0x450   :  { %v2002_v60 = vpop.f32.mrf.mxu0  ;;  %5408 = vmatmul.mubr.msk.f32.gmra.mxu1 %vm1739_vm4, %v5997_v16  ;;  %5490 = vmatprep.subr.msk.mxu1 %vm2952_vm5, %v2849_v55  ;;  %v7130_v45 = vld [vmem:[%s7760_s1 + $0x118] ss:$0 sm:$0xff] }
 0x451   :  { %6010 = vtanh.f32 %v2084_v17  ;;  %v2003_v22 = vadd.f32 %v2002_v60, %v7037_v19  ;;  %v2087_v23 = vadd.f32 %v7023_v3, %v2008_v18  ;;  %5491 = vmatpush3.msk.msra.mxu1 %vm2952_vm5, %v2849_v55 }
 0x452   :  { %v5999_v6 = vpop.eup %5998  ;;  %6012 = vtanh.f32 %v2085_v15  ;;  %v5377_v24 = vpop.f32.mrf.mxu0  ;;  %v2848_v15 = vld [vmem:[%s7760_s1 + $0x130] sm:$0xff] }
 0x453   :  { %v6001_v25 = vpop.eup %6000  ;;  %v2086_v26 = vadd.f32 %v7023_v3, %v2003_v22  ;;  %v2018_v28 = vadd.f32 %v5377_v24, %v7041_v27  ;;  %5410 = vmatprep.mubr.msk.f32.mxu1 %vm1739_vm4, %v5999_v6  ;;  %v5339_v27 = vpop.f32.mrf.mxu1  ;;  %5492 = vmatprep.subr.mxu1 %v2848_v15 }
 0x454   :  { %v2012_v13 = vpop.f32.mrf.mxu0  ;;  %5411 = vmatmul.mubr.msk.f32.gmra.mxu1 %vm1739_vm4, %v6001_v25 }
 0x455   :  { %6014 = vtanh.f32 %v2086_v26  ;;  %v2013_v30 = vadd.f32 %v2012_v13, %v7047_v5  ;;  %v2089_v31 = vadd.f32 %v7023_v3, %v2018_v28  ;;  %v1730_v41 = vpop.f32.mrf.mxu1  ;;  %5493 = vmatpush3.msra.mxu1 %v2848_v15 }
 0x456   :  { %v6003_v19 = vpop.eup %6002  ;;  %6016 = vtanh.f32 %v2087_v23  ;;  %v5380_v32 = vpop.f32.mrf.mxu0 }
 0x457   :  { %v6005_v33 = vpop.eup %6004  ;;  %v2088_v1 = vadd.f32 %v7023_v3, %v2013_v30  ;;  %v2028_v34 = vadd.f32 %v5380_v32, %v7054_v42  ;;  %5413 = vmatprep.mubr.msk.f32.mxu1 %vm1739_vm4, %v6003_v19 }
 0x458   :  { %v2022_v35 = vpop.f32.mrf.mxu0  ;;  %5414 = vmatmul.mubr.msk.f32.gmra.mxu1 %vm1739_vm4, %v6005_v33 }
 0x459   :  { %6018 = vtanh.f32 %v2088_v1  ;;  %v2023_v36 = vadd.f32 %v2022_v35, %v7062_v56  ;;  %v2091_v37 = vadd.f32 %v7023_v3, %v2028_v34 }
 0x45a   :  { %v6007_v5 = vpop.eup %6006  ;;  %6020 = vtanh.f32 %v2089_v31  ;;  %v5383_v38 = vpop.f32.mrf.mxu0 }
 0x45b   :  { %v6009_v39 = vpop.eup %6008  ;;  %v2090_v40 = vadd.f32 %v7023_v3, %v2023_v36  ;;  %v2038_v58 = vadd.f32 %v5383_v38, %v5333_v2  ;;  %5416 = vmatprep.mubr.msk.f32.mxu1 %vm1739_vm4, %v6007_v5 }
 0x45c   :  { %v2032_v42 = vpop.f32.mrf.mxu0  ;;  %5417 = vmatmul.mubr.msk.f32.gmra.mxu1 %vm1739_vm4, %v6009_v39 }
 0x45d   :  { %6022 = vtanh.f32 %v2090_v40  ;;  %v2033_v43 = vadd.f32 %v2032_v42, %v1710_v12  ;;  %v2093_v46 = vadd.f32 %v7023_v3, %v2038_v58 }
 0x45e   :  { %v6011_v44 = vpop.eup %6010  ;;  %6024 = vtanh.f32 %v2091_v37  ;;  %v5386_v47 = vpop.f32.mrf.mxu1 }
 0x45f   :  { %v6013_v48 = vpop.eup %6012  ;;  %v2092_v49 = vadd.f32 %v7023_v3, %v2033_v43  ;;  %v2048_v50 = vadd.f32 %v5386_v47, %v5336_v20  ;;  %5419 = vmatprep.mubr.msk.f32.mxu1 %vm1739_vm4, %v6011_v44 }
 0x460   :  { %v2042_v51 = vpop.f32.mrf.mxu1  ;;  %5420 = vmatmul.mubr.msk.f32.gmra.mxu1 %vm1739_vm4, %v6013_v48 }
 0x461   :  { %6026 = vtanh.f32 %v2092_v49  ;;  %v2043_v56 = vadd.f32 %v2042_v51, %v1720_v29  ;;  %v2095_v57 = vadd.f32 %v7023_v3, %v2048_v50 }
 0x462   :  { %v6015_v52 = vpop.eup %6014  ;;  %6028 = vtanh.f32 %v2093_v46  ;;  %v5389_v59 = vpop.f32.mrf.mxu1 }
 0x463   :  { %v6017_v61 = vpop.eup %6016  ;;  %v2094_v62 = vadd.f32 %v7023_v3, %v2043_v56  ;;  %v2058_v63 = vadd.f32 %v5389_v59, %v5339_v27  ;;  %5422 = vmatprep.mubr.msk.f32.mxu1 %vm1739_vm4, %v6015_v52 }
 0x464   :  { %v2052_v53 = vpop.f32.mrf.mxu1  ;;  %5423 = vmatmul.mubr.msk.f32.gmra.mxu1 %vm1739_vm4, %v6017_v61 }
 0x465   :  { %6030 = vtanh.f32 %v2094_v62  ;;  %v2053_v0 = vadd.f32 %v2052_v53, %v1730_v41  ;;  %v2097_v4 = vadd.f32 %v7023_v3, %v2058_v63 }
 0x466   :  { %v6019_v2 = vpop.eup %6018  ;;  %6032 = vtanh.f32 %v2095_v57 }
 0x467   :  { %v6021_v21 = vpop.eup %6020  ;;  %v2096_v7 = vadd.f32 %v7023_v3, %v2053_v0  ;;  %5425 = vmatprep.mubr.msk.f32.mxu1 %vm1739_vm4, %v6019_v2 }
 0x468   :  { %5426 = vmatmul.mubr.msk.f32.gmra.mxu1 %vm1739_vm4, %v6021_v21 }
 0x469   :  { %6034 = vtanh.f32 %v2096_v7 }
 0x46a   :  { %v6023_v8 = vpop.eup %6022  ;;  %6036 = vtanh.f32 %v2097_v4 }
 0x46b   :  { %v6025_v9 = vpop.eup %6024  ;;  %5428 = vmatprep.mubr.msk.f32.mxu1 %vm1739_vm4, %v6023_v8 }
 0x46c   :  { %5429 = vmatmul.mubr.msk.f32.gmra.mxu1 %vm1739_vm4, %v6025_v9 }
 0x46e   :  { %v6027_v10 = vpop.eup %6026 }
 0x46f   :  { %v6029_v11 = vpop.eup %6028  ;;  %5431 = vmatprep.mubr.msk.f32.mxu1 %vm1739_vm4, %v6027_v10 }
 0x470   :  { %5432 = vmatmul.mubr.msk.f32.gmra.mxu1 %vm1739_vm4, %v6029_v11 }
 0x472   :  { %v6031_v54 = vpop.eup %6030 }
 0x473   :  { %v6033_v3 = vpop.eup %6032  ;;  %5434 = vmatprep.mubr.msk.f32.mxu1 %vm1739_vm4, %v6031_v54 }
 0x474   :  { %5435 = vmatmul.mubr.msk.f32.gmra.mxu1 %vm1739_vm4, %v6033_v3 }
 0x476   :  { %v6035_v12 = vpop.eup %6034 }
 0x477   :  { %v6037_v14 = vpop.eup %6036  ;;  %5437 = vmatprep.mubr.msk.f32.mxu1 %vm1739_vm4, %v6035_v12 }
 0x478   :  { %5438 = vmatmul.mubr.msk.f32.gmra.mxu1 %vm1739_vm4, %v6037_v14 }
 0x4fc   :  { %v5394_v16 = vpop.f32.mrf.mxu1 }
 0x4fd   :  { %v2304_v17 = vadd.f32 %v5394_v16, %v7130_v45 }
 0x4fe   :  { %v2298_v18 = vpop.f32.mrf.mxu1 }
 0x4ff   :  { %v2299_v60 = vadd.f32 %v7130_v45, %v2298_v18 }
 0x500   :  { %v5397_v20 = vpop.f32.mrf.mxu1 }
 0x501   :  { %6038 = vtanh.f32 %v2299_v60  ;;  %v2314_v22 = vadd.f32 %v5397_v20, %v7130_v45 }
 0x502   :  { %6040 = vtanh.f32 %v2304_v17  ;;  %v2308_v6 = vpop.f32.mrf.mxu1 }
 0x503   :  { %v2309_v23 = vadd.f32 %v7130_v45, %v2308_v6 }
 0x504   :  { %v5400_v24 = vpop.f32.mrf.mxu1 }
 0x505   :  { %6042 = vtanh.f32 %v2309_v23  ;;  %v2324_v25 = vadd.f32 %v5400_v24, %v7130_v45 }
 0x506   :  { %6044 = vtanh.f32 %v2314_v22  ;;  %v2318_v26 = vpop.f32.mrf.mxu1 }
 0x507   :  { %v2319_v28 = vadd.f32 %v7130_v45, %v2318_v26 }
 0x508   :  { %v5403_v13 = vpop.f32.mrf.mxu1 }
 0x509   :  { %6046 = vtanh.f32 %v2319_v28  ;;  %v2334_v29 = vadd.f32 %v5403_v13, %v7130_v45 }
 0x50a   :  { %6048 = vtanh.f32 %v2324_v25  ;;  %v2328_v30 = vpop.f32.mrf.mxu1 }
 0x50b   :  { %v2329_v19 = vadd.f32 %v7130_v45, %v2328_v30 }
 0x50c   :  { %v5406_v31 = vpop.f32.mrf.mxu1 }
 0x50d   :  { %6050 = vtanh.f32 %v2329_v19  ;;  %v2344_v33 = vadd.f32 %v5406_v31, %v7130_v45 }
 0x50e   :  { %v6039_v32 = vpop.eup %6038  ;;  %6052 = vtanh.f32 %v2334_v29  ;;  %v2338_v1 = vpop.f32.mrf.mxu1 }
 0x50f   :  { %v6041_v34 = vpop.eup %6040  ;;  %v2339_v27 = vadd.f32 %v7130_v45, %v2338_v1  ;;  %5442 = vmatprep.mubr.msk.f32.mxu0 %vm1739_vm4, %v6039_v32 }
 0x510   :  { %v5409_v35 = vpop.f32.mrf.mxu1  ;;  %5443 = vmatmul.mubr.msk.f32.vlgmr.msra.gmra.mxu0 %vm1739_vm4, %v6041_v34 }
 0x511   :  { %6054 = vtanh.f32 %v2339_v27  ;;  %v2354_v5 = vadd.f32 %v5409_v35, %v7130_v45 }
 0x512   :  { %v6043_v36 = vpop.eup %6042  ;;  %6056 = vtanh.f32 %v2344_v33  ;;  %v2348_v37 = vpop.f32.mrf.mxu1 }
 0x513   :  { %v6045_v38 = vpop.eup %6044  ;;  %v2349_v39 = vadd.f32 %v7130_v45, %v2348_v37  ;;  %5445 = vmatprep.mubr.msk.f32.mxu0 %vm1739_vm4, %v6043_v36 }
 0x514   :  { %v5412_v40 = vpop.f32.mrf.mxu1  ;;  %5446 = vmatmul.mubr.msk.f32.gmra.mxu0 %vm1739_vm4, %v6045_v38 }
 0x515   :  { %6058 = vtanh.f32 %v2349_v39  ;;  %v2364_v41 = vadd.f32 %v5412_v40, %v7130_v45 }
 0x516   :  { %v6047_v58 = vpop.eup %6046  ;;  %6060 = vtanh.f32 %v2354_v5  ;;  %v2358_v42 = vpop.f32.mrf.mxu1 }
 0x517   :  { %v6049_v43 = vpop.eup %6048  ;;  %v2359_v44 = vadd.f32 %v7130_v45, %v2358_v42  ;;  %5448 = vmatprep.mubr.msk.f32.mxu0 %vm1739_vm4, %v6047_v58 }
 0x518   :  { %v5415_v46 = vpop.f32.mrf.mxu1  ;;  %5449 = vmatmul.mubr.msk.f32.gmra.mxu0 %vm1739_vm4, %v6049_v43  ;;  %v3214_v43 = vld [vmem:[%s7760_s1 + $0x150] sm:$0xf] }
 0x519   :  { %6062 = vtanh.f32 %v2359_v44  ;;  %v2374_v48 = vadd.f32 %v5415_v46, %v7130_v45  ;;  %v3213_v44 = vld [vmem:[%s7760_s1 + $0x148] sm:$0xff]  ;;  %5542 = vmatprep.subr.msk.mxu0 %vm2952_vm5, %v3214_v43 }
 0x51a   :  { %v6051_v47 = vpop.eup %6050  ;;  %6064 = vtanh.f32 %v2364_v41  ;;  %v2368_v49 = vpop.f32.mrf.mxu1  ;;  %5543 = vmatpush3.msk.msra.mxu0 %vm2952_vm5, %v3214_v43  ;;  %v7207_v46 = vld [vmem:[%s7760_s1 + $0x128] ss:$0 sm:$0xff] }
 0x51b   :  { %v6053_v50 = vpop.eup %6052  ;;  %v2369_v51 = vadd.f32 %v7130_v45, %v2368_v49  ;;  %5451 = vmatprep.mubr.msk.f32.mxu0 %vm1739_vm4, %v6051_v47  ;;  %5544 = vmatprep.subr.mxu0 %v3213_v44 }
 0x51c   :  { %v5418_v56 = vpop.f32.mrf.mxu1  ;;  %5452 = vmatmul.mubr.msk.f32.gmra.mxu0 %vm1739_vm4, %v6053_v50 }
 0x51d   :  { %6066 = vtanh.f32 %v2369_v51  ;;  %v2384_v57 = vadd.f32 %v5418_v56, %v7130_v45  ;;  %5545 = vmatpush3.msra.mxu0 %v3213_v44 }
 0x51e   :  { %v6055_v52 = vpop.eup %6054  ;;  %6068 = vtanh.f32 %v2374_v48  ;;  %v2378_v59 = vpop.f32.mrf.mxu1 }
 0x51f   :  { %v6057_v61 = vpop.eup %6056  ;;  %v2379_v62 = vadd.f32 %v7130_v45, %v2378_v59  ;;  %5454 = vmatprep.mubr.msk.f32.mxu0 %vm1739_vm4, %v6055_v52 }
 0x520   :  { %v5421_v63 = vpop.f32.mrf.mxu1  ;;  %5455 = vmatmul.mubr.msk.f32.gmra.mxu0 %vm1739_vm4, %v6057_v61 }
 0x521   :  { %6070 = vtanh.f32 %v2379_v62  ;;  %v2394_v0 = vadd.f32 %v5421_v63, %v7130_v45 }
 0x522   :  { %v6059_v53 = vpop.eup %6058  ;;  %6072 = vtanh.f32 %v2384_v57  ;;  %v2388_v2 = vpop.f32.mrf.mxu1 }
 0x523   :  { %v6061_v4 = vpop.eup %6060  ;;  %v2389_v21 = vadd.f32 %v7130_v45, %v2388_v2  ;;  %5457 = vmatprep.mubr.msk.f32.mxu0 %vm1739_vm4, %v6059_v53 }
 0x524   :  { %v5424_v7 = vpop.f32.mrf.mxu1  ;;  %5458 = vmatmul.mubr.msk.f32.gmra.mxu0 %vm1739_vm4, %v6061_v4 }
 0x525   :  { %6074 = vtanh.f32 %v2389_v21  ;;  %v2404_v9 = vadd.f32 %v5424_v7, %v7130_v45 }
 0x526   :  { %v6063_v8 = vpop.eup %6062  ;;  %6076 = vtanh.f32 %v2394_v0  ;;  %v2398_v10 = vpop.f32.mrf.mxu1 }
 0x527   :  { %v6065_v11 = vpop.eup %6064  ;;  %v2399_v54 = vadd.f32 %v7130_v45, %v2398_v10  ;;  %5460 = vmatprep.mubr.msk.f32.mxu0 %vm1739_vm4, %v6063_v8 }
 0x528   :  { %v5427_v3 = vpop.f32.mrf.mxu1  ;;  %5461 = vmatmul.mubr.msk.f32.gmra.mxu0 %vm1739_vm4, %v6065_v11 }
 0x529   :  { %6078 = vtanh.f32 %v2399_v54  ;;  %v2414_v14 = vadd.f32 %v5427_v3, %v7130_v45 }
 0x52a   :  { %v6067_v12 = vpop.eup %6066  ;;  %6080 = vtanh.f32 %v2404_v9  ;;  %v2408_v55 = vpop.f32.mrf.mxu1 }
 0x52b   :  { %v6069_v15 = vpop.eup %6068  ;;  %v2409_v16 = vadd.f32 %v7130_v45, %v2408_v55  ;;  %5463 = vmatprep.mubr.msk.f32.mxu0 %vm1739_vm4, %v6067_v12 }
 0x52c   :  { %v5430_v17 = vpop.f32.mrf.mxu1  ;;  %5464 = vmatmul.mubr.msk.f32.gmra.mxu0 %vm1739_vm4, %v6069_v15 }
 0x52d   :  { %6082 = vtanh.f32 %v2409_v16  ;;  %v2424_v60 = vadd.f32 %v5430_v17, %v7130_v45 }
 0x52e   :  { %v6071_v18 = vpop.eup %6070  ;;  %6084 = vtanh.f32 %v2414_v14  ;;  %v2418_v20 = vpop.f32.mrf.mxu1 }
 0x52f   :  { %v6073_v22 = vpop.eup %6072  ;;  %v2419_v6 = vadd.f32 %v7130_v45, %v2418_v20  ;;  %5466 = vmatprep.mubr.msk.f32.mxu0 %vm1739_vm4, %v6071_v18 }
 0x530   :  { %v5433_v23 = vpop.f32.mrf.mxu1  ;;  %5467 = vmatmul.mubr.msk.f32.gmra.mxu0 %vm1739_vm4, %v6073_v22 }
 0x531   :  { %6086 = vtanh.f32 %v2419_v6  ;;  %v2434_v25 = vadd.f32 %v5433_v23, %v7130_v45 }
 0x532   :  { %v6075_v24 = vpop.eup %6074  ;;  %6088 = vtanh.f32 %v2424_v60  ;;  %v2428_v26 = vpop.f32.mrf.mxu1 }
 0x533   :  { %v6077_v28 = vpop.eup %6076  ;;  %v2429_v13 = vadd.f32 %v7130_v45, %v2428_v26  ;;  %5469 = vmatprep.mubr.msk.f32.mxu0 %vm1739_vm4, %v6075_v24 }
 0x534   :  { %v5436_v29 = vpop.f32.mrf.mxu1  ;;  %5470 = vmatmul.mubr.msk.f32.gmra.mxu0 %vm1739_vm4, %v6077_v28 }
 0x535   :  { %6090 = vtanh.f32 %v2429_v13  ;;  %v2444_v19 = vadd.f32 %v5436_v29, %v7130_v45 }
 0x536   :  { %v6079_v30 = vpop.eup %6078  ;;  %6092 = vtanh.f32 %v2434_v25  ;;  %v2438_v31 = vpop.f32.mrf.mxu1 }
 0x537   :  { %v6081_v32 = vpop.eup %6080  ;;  %v2439_v33 = vadd.f32 %v7130_v45, %v2438_v31  ;;  %5472 = vmatprep.mubr.msk.f32.mxu0 %vm1739_vm4, %v6079_v30 }
 0x538   :  { %v5439_v1 = vpop.f32.mrf.mxu1  ;;  %5473 = vmatmul.mubr.msk.f32.gmra.mxu0 %vm1739_vm4, %v6081_v32 }
 0x539   :  { %6094 = vtanh.f32 %v2439_v33  ;;  %v2454_v27 = vadd.f32 %v5439_v1, %v7130_v45 }
 0x53a   :  { %v6083_v34 = vpop.eup %6082  ;;  %6096 = vtanh.f32 %v2444_v19  ;;  %v2448_v35 = vpop.f32.mrf.mxu1 }
 0x53b   :  { %v6085_v36 = vpop.eup %6084  ;;  %v2449_v5 = vadd.f32 %v7130_v45, %v2448_v35  ;;  %5475 = vmatprep.mubr.msk.f32.mxu0 %vm1739_vm4, %v6083_v34 }
 0x53c   :  { %5476 = vmatmul.mubr.msk.f32.gmra.mxu0 %vm1739_vm4, %v6085_v36 }
 0x53d   :  { %6098 = vtanh.f32 %v2449_v5 }
 0x53e   :  { %v6087_v37 = vpop.eup %6086  ;;  %6100 = vtanh.f32 %v2454_v27 }
 0x53f   :  { %v6089_v38 = vpop.eup %6088  ;;  %5478 = vmatprep.mubr.msk.f32.mxu0 %vm1739_vm4, %v6087_v37 }
 0x540   :  { %5479 = vmatmul.mubr.msk.f32.gmra.mxu0 %vm1739_vm4, %v6089_v38 }
 0x542   :  { %v6091_v39 = vpop.eup %6090 }
 0x543   :  { %v6093_v40 = vpop.eup %6092  ;;  %5481 = vmatprep.mubr.msk.f32.mxu0 %vm1739_vm4, %v6091_v39 }
 0x544   :  { %5482 = vmatmul.mubr.msk.f32.gmra.mxu0 %vm1739_vm4, %v6093_v40 }
 0x546   :  { %v6095_v58 = vpop.eup %6094 }
 0x547   :  { %v6097_v45 = vpop.eup %6096  ;;  %5484 = vmatprep.mubr.msk.f32.mxu0 %vm1739_vm4, %v6095_v58 }
 0x548   :  { %5485 = vmatmul.mubr.msk.f32.gmra.mxu0 %vm1739_vm4, %v6097_v45 }
 0x54a   :  { %v6099_v41 = vpop.eup %6098 }
 0x54b   :  { %v6101_v42 = vpop.eup %6100  ;;  %5487 = vmatprep.mubr.msk.f32.mxu0 %vm1739_vm4, %v6099_v41 }
 0x54c   :  { %5488 = vmatmul.mubr.msk.f32.gmra.mxu0 %vm1739_vm4, %v6101_v42 }
 0x5d0   :  { %v5444_v47 = vpop.f32.mrf.mxu0 }
 0x5d1   :  { %v2663_v48 = vadd.f32 %v5444_v47, %v7207_v46 }
 0x5d2   :  { %v2657_v49 = vpop.f32.mrf.mxu0 }
 0x5d3   :  { %v2658_v50 = vadd.f32 %v7207_v46, %v2657_v49 }
 0x5d4   :  { %v5447_v51 = vpop.f32.mrf.mxu0 }
 0x5d5   :  { %6102 = vtanh.f32 %v2658_v50  ;;  %v2673_v56 = vadd.f32 %v5447_v51, %v7207_v46 }
 0x5d6   :  { %6104 = vtanh.f32 %v2663_v48  ;;  %v2667_v52 = vpop.f32.mrf.mxu0 }
 0x5d7   :  { %v2668_v57 = vadd.f32 %v7207_v46, %v2667_v52 }
 0x5d8   :  { %v5450_v59 = vpop.f32.mrf.mxu0 }
 0x5d9   :  { %6106 = vtanh.f32 %v2668_v57  ;;  %v2683_v61 = vadd.f32 %v5450_v59, %v7207_v46 }
 0x5da   :  { %6108 = vtanh.f32 %v2673_v56  ;;  %v2677_v62 = vpop.f32.mrf.mxu0 }
 0x5db   :  { %v2678_v63 = vadd.f32 %v7207_v46, %v2677_v62 }
 0x5dc   :  { %v5453_v53 = vpop.f32.mrf.mxu0 }
 0x5dd   :  { %6110 = vtanh.f32 %v2678_v63  ;;  %v2693_v0 = vadd.f32 %v5453_v53, %v7207_v46 }
 0x5de   :  { %6112 = vtanh.f32 %v2683_v61  ;;  %v2687_v2 = vpop.f32.mrf.mxu0 }
 0x5df   :  { %v2688_v4 = vadd.f32 %v7207_v46, %v2687_v2 }
 0x5e0   :  { %v5456_v21 = vpop.f32.mrf.mxu0 }
 0x5e1   :  { %6114 = vtanh.f32 %v2688_v4  ;;  %v2703_v8 = vadd.f32 %v5456_v21, %v7207_v46 }
 0x5e2   :  { %v6103_v7 = vpop.eup %6102  ;;  %6116 = vtanh.f32 %v2693_v0  ;;  %v2697_v9 = vpop.f32.mrf.mxu0 }
 0x5e3   :  { %v6105_v10 = vpop.eup %6104  ;;  %v2698_v11 = vadd.f32 %v7207_v46, %v2697_v9  ;;  %5494 = vmatprep.mubr.msk.f32.mxu1 %vm2855_vm6, %v6103_v7 }
 0x5e4   :  { %v5459_v54 = vpop.f32.mrf.mxu0  ;;  %5495 = vmatmul.mubr.msk.f32.vlgmr.msra.gmra.mxu1 %vm2855_vm6, %v6105_v10 }
 0x5e5   :  { %6118 = vtanh.f32 %v2698_v11  ;;  %v2713_v12 = vadd.f32 %v5459_v54, %v7207_v46 }
 0x5e6   :  { %v6107_v3 = vpop.eup %6106  ;;  %6120 = vtanh.f32 %v2703_v8  ;;  %v2707_v14 = vpop.f32.mrf.mxu0 }
 0x5e7   :  { %v6109_v55 = vpop.eup %6108  ;;  %v2708_v15 = vadd.f32 %v7207_v46, %v2707_v14  ;;  %5497 = vmatprep.mubr.msk.f32.mxu1 %vm2855_vm6, %v6107_v3 }
 0x5e8   :  { %v5462_v16 = vpop.f32.mrf.mxu0  ;;  %5498 = vmatmul.mubr.msk.f32.gmra.mxu1 %vm2855_vm6, %v6109_v55 }
 0x5e9   :  { %6122 = vtanh.f32 %v2708_v15  ;;  %v2723_v18 = vadd.f32 %v5462_v16, %v7207_v46 }
 0x5ea   :  { %v6111_v17 = vpop.eup %6110  ;;  %6124 = vtanh.f32 %v2713_v12  ;;  %v2717_v60 = vpop.f32.mrf.mxu0 }
 0x5eb   :  { %v6113_v20 = vpop.eup %6112  ;;  %v2718_v22 = vadd.f32 %v7207_v46, %v2717_v60  ;;  %5500 = vmatprep.mubr.msk.f32.mxu1 %vm2855_vm6, %v6111_v17 }
 0x5ec   :  { %v5465_v6 = vpop.f32.mrf.mxu0  ;;  %5501 = vmatmul.mubr.msk.f32.gmra.mxu1 %vm2855_vm6, %v6113_v20  ;;  %v6325_v20 = vld [vmem:[%s7761_s0] sm:$0xff] }
 0x5ed   :  { %6126 = vtanh.f32 %v2718_v22  ;;  %v2733_v24 = vadd.f32 %v5465_v6, %v7207_v46  ;;  %v3588_v22 = vld [vmem:[%s7760_s1 + $0x1c0] sm:$0x3]  ;;  %v3578_v6 = vld [vmem:[%s7760_s1 + $0x170] sm:$0xff] }
 0x5ee   :  { %v6115_v23 = vpop.eup %6114  ;;  %6128 = vtanh.f32 %v2723_v18  ;;  %v2727_v25 = vpop.f32.mrf.mxu0  ;;  %5594 = vmatprep.subr.msk.mxu1 %vm155_vm0, %v3588_v22  ;;  %5662 = vmatprep.subr.mxu0 %v3578_v6 }
 0x5ef   :  { %v6117_v26 = vpop.eup %6116  ;;  %v2728_v28 = vadd.f32 %v7207_v46, %v2727_v25  ;;  %5503 = vmatprep.mubr.msk.f32.mxu1 %vm2855_vm6, %v6115_v23  ;;  %v3587_v23 = vld [vmem:[%s7760_s1 + $0x1b8] sm:$0xff]  ;;  %5595 = vmatpush3.msk.msra.mxu1 %vm155_vm0, %v3588_v22  ;;  %v3585_v25 = vld [vmem:[%s7760_s1 + $0x1a8] sm:$0xff] }
 0x5f0   :  { %v5468_v13 = vpop.f32.mrf.mxu0  ;;  %5504 = vmatmul.mubr.msk.f32.gmra.mxu1 %vm2855_vm6, %v6117_v26  ;;  %5596 = vmatprep.subr.mxu1 %v3587_v23  ;;  %v3584_v26 = vld [vmem:[%s7760_s1 + $0x1a0] sm:$0xff] }
 0x5f1   :  { %6130 = vtanh.f32 %v2728_v28  ;;  %v2743_v30 = vadd.f32 %v5468_v13, %v7207_v46  ;;  %5597 = vmatpush3.msra.mxu1 %v3587_v23  ;;  %v3583_v28 = vld [vmem:[%s7760_s1 + $0x198] sm:$0xff]  ;;  %v3582_v13 = vld [vmem:[%s7760_s1 + $0x190] sm:$0xff] }
 0x5f2   :  { %v6119_v29 = vpop.eup %6118  ;;  %6132 = vtanh.f32 %v2733_v24  ;;  %v2737_v19 = vpop.f32.mrf.mxu0  ;;  %v3586_v24 = vld [vmem:[%s7760_s1 + $0x1b0] sm:$0xff] }
 0x5f3   :  { %v6121_v31 = vpop.eup %6120  ;;  %v2738_v32 = vadd.f32 %v7207_v46, %v2737_v19  ;;  %5506 = vmatprep.mubr.msk.f32.mxu1 %vm2855_vm6, %v6119_v29  ;;  %5598 = vmatprep.subr.mxu1 %v3586_v24  ;;  %v7306_v29 = vld [vmem:[%s7760_s1 + $0x140] ss:$0 sm:$0xff] }
 0x5f4   :  { %v5471_v33 = vpop.f32.mrf.mxu0  ;;  %5507 = vmatmul.mubr.msk.f32.gmra.mxu1 %vm2855_vm6, %v6121_v31 }
 0x5f5   :  { %6134 = vtanh.f32 %v2738_v32  ;;  %v2753_v34 = vadd.f32 %v5471_v33, %v7207_v46  ;;  %5599 = vmatpush3.msra.mxu1 %v3586_v24 }
 0x5f6   :  { %v6123_v1 = vpop.eup %6122  ;;  %6136 = vtanh.f32 %v2743_v30  ;;  %v2747_v27 = vpop.f32.mrf.mxu0  ;;  %5600 = vmatprep.subr.mxu1 %v3585_v25 }
 0x5f7   :  { %v6125_v35 = vpop.eup %6124  ;;  %v2748_v36 = vadd.f32 %v7207_v46, %v2747_v27  ;;  %5509 = vmatprep.mubr.msk.f32.mxu1 %vm2855_vm6, %v6123_v1  ;;  %5601 = vmatpush3.msra.mxu1 %v3585_v25 }
 0x5f8   :  { %v5474_v5 = vpop.f32.mrf.mxu0  ;;  %5510 = vmatmul.mubr.msk.f32.gmra.mxu1 %vm2855_vm6, %v6125_v35  ;;  %5602 = vmatprep.subr.mxu1 %v3584_v26 }
 0x5f9   :  { %6138 = vtanh.f32 %v2748_v36  ;;  %v2763_v38 = vadd.f32 %v5474_v5, %v7207_v46  ;;  %5603 = vmatpush3.msra.mxu1 %v3584_v26 }
 0x5fa   :  { %v6127_v37 = vpop.eup %6126  ;;  %6140 = vtanh.f32 %v2753_v34  ;;  %v2757_v39 = vpop.f32.mrf.mxu0  ;;  %5604 = vmatprep.subr.mxu1 %v3583_v28 }
 0x5fb   :  { %v6129_v40 = vpop.eup %6128  ;;  %v2758_v58 = vadd.f32 %v7207_v46, %v2757_v39  ;;  %5512 = vmatprep.mubr.msk.f32.mxu1 %vm2855_vm6, %v6127_v37  ;;  %5605 = vmatpush3.msra.mxu1 %v3583_v28 }
 0x5fc   :  { %v5477_v45 = vpop.f32.mrf.mxu0  ;;  %5513 = vmatmul.mubr.msk.f32.gmra.mxu1 %vm2855_vm6, %v6129_v40  ;;  %5606 = vmatprep.subr.mxu1 %v3582_v13 }
 0x5fd   :  { %6142 = vtanh.f32 %v2758_v58  ;;  %v2773_v42 = vadd.f32 %v5477_v45, %v7207_v46  ;;  %5607 = vmatpush3.msra.mxu1 %v3582_v13 }
 0x5fe   :  { %v6131_v41 = vpop.eup %6130  ;;  %6144 = vtanh.f32 %v2763_v38  ;;  %v2767_v43 = vpop.f32.mrf.mxu0 }
 0x5ff   :  { %v6133_v44 = vpop.eup %6132  ;;  %v2768_v47 = vadd.f32 %v7207_v46, %v2767_v43  ;;  %5515 = vmatprep.mubr.msk.f32.mxu1 %vm2855_vm6, %v6131_v41 }
 0x600   :  { %v5480_v48 = vpop.f32.mrf.mxu0  ;;  %5516 = vmatmul.mubr.msk.f32.gmra.mxu1 %vm2855_vm6, %v6133_v44 }
 0x601   :  { %6146 = vtanh.f32 %v2768_v47  ;;  %v2783_v50 = vadd.f32 %v5480_v48, %v7207_v46  ;;  %v3577_v48 = vld [vmem:[%s7760_s1 + $0x168] sm:$0xff] }
 0x602   :  { %v6135_v49 = vpop.eup %6134  ;;  %6148 = vtanh.f32 %v2773_v42  ;;  %v2777_v51 = vpop.f32.mrf.mxu0 }
 0x603   :  { %v6137_v56 = vpop.eup %6136  ;;  %v2778_v52 = vadd.f32 %v7207_v46, %v2777_v51  ;;  %5518 = vmatprep.mubr.msk.f32.mxu1 %vm2855_vm6, %v6135_v49 }
 0x604   :  { %v5483_v57 = vpop.f32.mrf.mxu0  ;;  %5519 = vmatmul.mubr.msk.f32.gmra.mxu1 %vm2855_vm6, %v6137_v56 }
 0x605   :  { %6150 = vtanh.f32 %v2778_v52  ;;  %v2793_v61 = vadd.f32 %v5483_v57, %v7207_v46 }
 0x606   :  { %v6139_v59 = vpop.eup %6138  ;;  %6152 = vtanh.f32 %v2783_v50  ;;  %v2787_v62 = vpop.f32.mrf.mxu0  ;;  %v3576_v50 = vld [vmem:[%s7760_s1 + $0x160] sm:$0xff] }
 0x607   :  { %v6141_v63 = vpop.eup %6140  ;;  %v2788_v53 = vadd.f32 %v7207_v46, %v2787_v62  ;;  %5521 = vmatprep.mubr.msk.f32.mxu1 %vm2855_vm6, %v6139_v59 }
 0x608   :  { %v5486_v0 = vpop.f32.mrf.mxu0  ;;  %5522 = vmatmul.mubr.msk.f32.gmra.mxu1 %vm2855_vm6, %v6141_v63 }
 0x609   :  { %6154 = vtanh.f32 %v2788_v53  ;;  %v2803_v4 = vadd.f32 %v5486_v0, %v7207_v46 }
 0x60a   :  { %v6143_v2 = vpop.eup %6142  ;;  %6156 = vtanh.f32 %v2793_v61  ;;  %v2797_v21 = vpop.f32.mrf.mxu0 }
 0x60b   :  { %v6145_v7 = vpop.eup %6144  ;;  %v2798_v8 = vadd.f32 %v7207_v46, %v2797_v21  ;;  %5524 = vmatprep.mubr.msk.f32.mxu1 %vm2855_vm6, %v6143_v2 }
 0x60c   :  { %v5489_v9 = vpop.f32.mrf.mxu0  ;;  %5525 = vmatmul.mubr.msk.f32.gmra.mxu1 %vm2855_vm6, %v6145_v7 }
 0x60d   :  { %6158 = vtanh.f32 %v2798_v8  ;;  %v2813_v11 = vadd.f32 %v5489_v9, %v7207_v46 }
 0x60e   :  { %v6147_v10 = vpop.eup %6146  ;;  %6160 = vtanh.f32 %v2803_v4  ;;  %v2807_v54 = vpop.f32.mrf.mxu0 }
 0x60f   :  { %v6149_v3 = vpop.eup %6148  ;;  %v2808_v12 = vadd.f32 %v7207_v46, %v2807_v54  ;;  %5527 = vmatprep.mubr.msk.f32.mxu1 %vm2855_vm6, %v6147_v10 }
 0x610   :  { %5528 = vmatmul.mubr.msk.f32.gmra.mxu1 %vm2855_vm6, %v6149_v3 }
 0x611   :  { %6162 = vtanh.f32 %v2808_v12 }
 0x612   :  { %v6151_v14 = vpop.eup %6150  ;;  %6164 = vtanh.f32 %v2813_v11 }
 0x613   :  { %v6153_v55 = vpop.eup %6152  ;;  %5530 = vmatprep.mubr.msk.f32.mxu1 %vm2855_vm6, %v6151_v14 }
 0x614   :  { %5531 = vmatmul.mubr.msk.f32.gmra.mxu1 %vm2855_vm6, %v6153_v55 }
 0x616   :  { %v6155_v15 = vpop.eup %6154 }
 0x617   :  { %v6157_v16 = vpop.eup %6156  ;;  %5533 = vmatprep.mubr.msk.f32.mxu1 %vm2855_vm6, %v6155_v15 }
 0x618   :  { %5534 = vmatmul.mubr.msk.f32.gmra.mxu1 %vm2855_vm6, %v6157_v16 }
 0x61a   :  { %v6159_v17 = vpop.eup %6158 }
 0x61b   :  { %v6161_v46 = vpop.eup %6160  ;;  %5536 = vmatprep.mubr.msk.f32.mxu1 %vm2855_vm6, %v6159_v17 }
 0x61c   :  { %5537 = vmatmul.mubr.msk.f32.gmra.mxu1 %vm2855_vm6, %v6161_v46 }
 0x61e   :  { %v6163_v18 = vpop.eup %6162 }
 0x61f   :  { %v6165_v60 = vpop.eup %6164  ;;  %5539 = vmatprep.mubr.msk.f32.mxu1 %vm2855_vm6, %v6163_v18 }
 0x620   :  { %5540 = vmatmul.mubr.msk.f32.gmra.mxu1 %vm2855_vm6, %v6165_v60 }
 0x621   :  { %5614 = vmatprep.mubr.msk.f32.mxu1 %vm58_vm1, %v6325_v20 }
 0x6a4   :  { %v5496_v30 = vpop.f32.mrf.mxu1 }
 0x6a5   :  { %v3028_v19 = vadd.f32 %v5496_v30, %v7306_v29 }
 0x6a6   :  { %v3022_v31 = vpop.f32.mrf.mxu1 }
 0x6a7   :  { %v3023_v32 = vadd.f32 %v7306_v29, %v3022_v31 }
 0x6a8   :  { %v5499_v33 = vpop.f32.mrf.mxu1 }
 0x6a9   :  { %6166 = vtanh.f32 %v3023_v32  ;;  %v3038_v1 = vadd.f32 %v5499_v33, %v7306_v29 }
 0x6aa   :  { %6168 = vtanh.f32 %v3028_v19  ;;  %v3032_v34 = vpop.f32.mrf.mxu1 }
 0x6ab   :  { %v3033_v27 = vadd.f32 %v7306_v29, %v3032_v34 }
 0x6ac   :  { %v5502_v35 = vpop.f32.mrf.mxu1 }
 0x6ad   :  { %6170 = vtanh.f32 %v3033_v27  ;;  %v3048_v36 = vadd.f32 %v5502_v35, %v7306_v29 }
 0x6ae   :  { %6172 = vtanh.f32 %v3038_v1  ;;  %v3042_v5 = vpop.f32.mrf.mxu1 }
 0x6af   :  { %v3043_v37 = vadd.f32 %v7306_v29, %v3042_v5 }
 0x6b0   :  { %v5505_v38 = vpop.f32.mrf.mxu1 }
 0x6b1   :  { %6174 = vtanh.f32 %v3043_v37  ;;  %v3058_v39 = vadd.f32 %v5505_v38, %v7306_v29 }
 0x6b2   :  { %6176 = vtanh.f32 %v3048_v36  ;;  %v3052_v40 = vpop.f32.mrf.mxu1 }
 0x6b3   :  { %v3053_v58 = vadd.f32 %v7306_v29, %v3052_v40 }
 0x6b4   :  { %v5508_v45 = vpop.f32.mrf.mxu1 }
 0x6b5   :  { %6178 = vtanh.f32 %v3053_v58  ;;  %v3068_v42 = vadd.f32 %v5508_v45, %v7306_v29 }
 0x6b6   :  { %v6167_v41 = vpop.eup %6166  ;;  %6180 = vtanh.f32 %v3058_v39  ;;  %v3062_v43 = vpop.f32.mrf.mxu1 }
 0x6b7   :  { %v6169_v44 = vpop.eup %6168  ;;  %v3063_v47 = vadd.f32 %v7306_v29, %v3062_v43  ;;  %5546 = vmatprep.mubr.msk.f32.mxu0 %vm2855_vm6, %v6167_v41 }
 0x6b8   :  { %v5511_v49 = vpop.f32.mrf.mxu1  ;;  %5547 = vmatmul.mubr.msk.f32.vlgmr.msra.gmra.mxu0 %vm2855_vm6, %v6169_v44 }
 0x6b9   :  { %6182 = vtanh.f32 %v3063_v47  ;;  %5663 = vmatpush3.msra.mxu0 %v3578_v6  ;;  %v3078_v56 = vadd.f32 %v5511_v49, %v7306_v29 }
 0x6ba   :  { %v6171_v51 = vpop.eup %6170  ;;  %6184 = vtanh.f32 %v3068_v42  ;;  %v3072_v52 = vpop.f32.mrf.mxu1  ;;  %5664 = vmatprep.subr.mxu0 %v3577_v48 }
 0x6bb   :  { %v6173_v57 = vpop.eup %6172  ;;  %v3073_v59 = vadd.f32 %v7306_v29, %v3072_v52  ;;  %5549 = vmatprep.mubr.msk.f32.mxu0 %vm2855_vm6, %v6171_v51  ;;  %5665 = vmatpush3.msra.mxu0 %v3577_v48 }
 0x6bc   :  { %v5514_v61 = vpop.f32.mrf.mxu1  ;;  %5550 = vmatmul.mubr.msk.f32.gmra.mxu0 %vm2855_vm6, %v6173_v57  ;;  %5666 = vmatprep.subr.mxu0 %v3576_v50 }
 0x6bd   :  { %6186 = vtanh.f32 %v3073_v59  ;;  %5667 = vmatpush3.msra.mxu0 %v3576_v50  ;;  %v3088_v63 = vadd.f32 %v5514_v61, %v7306_v29 }
 0x6be   :  { %v6175_v62 = vpop.eup %6174  ;;  %6188 = vtanh.f32 %v3078_v56  ;;  %v3082_v53 = vpop.f32.mrf.mxu1 }
 0x6bf   :  { %v6177_v0 = vpop.eup %6176  ;;  %v3083_v2 = vadd.f32 %v7306_v29, %v3082_v53  ;;  %5552 = vmatprep.mubr.msk.f32.mxu0 %vm2855_vm6, %v6175_v62 }
 0x6c0   :  { %v5517_v4 = vpop.f32.mrf.mxu1  ;;  %5553 = vmatmul.mubr.msk.f32.gmra.mxu0 %vm2855_vm6, %v6177_v0  ;;  %v3581_v0 = vld [vmem:[%s7760_s1 + $0x188] sm:$0xff] }
 0x6c1   :  { %6190 = vtanh.f32 %v3083_v2  ;;  %v3098_v7 = vadd.f32 %v5517_v4, %v7306_v29  ;;  %5608 = vmatprep.subr.mxu1 %v3581_v0  ;;  %v3580_v2 = vld [vmem:[%s7760_s1 + $0x180] sm:$0xff]  ;;  %v3579_v4 = vld [vmem:[%s7760_s1 + $0x178] sm:$0xff] }
 0x6c2   :  { %v6179_v21 = vpop.eup %6178  ;;  %6192 = vtanh.f32 %v3088_v63  ;;  %v3092_v8 = vpop.f32.mrf.mxu1  ;;  %5609 = vmatpush3.msra.mxu1 %v3581_v0 }
 0x6c3   :  { %v6181_v9 = vpop.eup %6180  ;;  %v3093_v10 = vadd.f32 %v7306_v29, %v3092_v8  ;;  %5555 = vmatprep.mubr.msk.f32.mxu0 %vm2855_vm6, %v6179_v21  ;;  %5610 = vmatprep.subr.mxu1 %v3580_v2  ;;  %v6326_v21 = vld [vmem:[%s7761_s0 + $0x8] sm:$0xff]  ;;  %v6328_v8 = vld [vmem:[%s7761_s0 + $0x18] sm:$0xff] }
 0x6c4   :  { %v5520_v11 = vpop.f32.mrf.mxu1  ;;  %5556 = vmatmul.mubr.msk.f32.gmra.mxu0 %vm2855_vm6, %v6181_v9  ;;  %5611 = vmatpush3.msra.mxu1 %v3580_v2  ;;  %v6329_v9 = vld [vmem:[%s7761_s0 + $0x20] sm:$0xff] }
 0x6c5   :  { %6194 = vtanh.f32 %v3093_v10  ;;  %v3108_v3 = vadd.f32 %v5520_v11, %v7306_v29  ;;  %5612 = vmatprep.subr.mxu1 %v3579_v4  ;;  %v6330_v10 = vld [vmem:[%s7761_s0 + $0x28] sm:$0xff]  ;;  %v6331_v11 = vld [vmem:[%s7761_s0 + $0x30] sm:$0xff] }
 0x6c6   :  { %v6183_v54 = vpop.eup %6182  ;;  %6196 = vtanh.f32 %v3098_v7  ;;  %v3102_v12 = vpop.f32.mrf.mxu1  ;;  %5613 = vmatpush3.msra.mxu1 %v3579_v4  ;;  %v6327_v7 = vld [vmem:[%s7761_s0 + $0x10] sm:$0xff] }
 0x6c7   :  { %v6185_v14 = vpop.eup %6184  ;;  %v3103_v55 = vadd.f32 %v7306_v29, %v3102_v12  ;;  %5558 = vmatprep.mubr.msk.f32.mxu0 %vm2855_vm6, %v6183_v54  ;;  %5615 = vmatmul.mubr.msk.f32.vlgmr.msra.gmra.mxu1 %vm58_vm1, %v6326_v21  ;;  %v6332_v54 = vld [vmem:[%s7761_s0 + $0x38] sm:$0xff]  ;;  %v6334_v12 = vld [vmem:[%s7761_s0 + $0x48] sm:$0xff] }
 0x6c8   :  { %v5523_v15 = vpop.f32.mrf.mxu1  ;;  %5559 = vmatmul.mubr.msk.f32.gmra.mxu0 %vm2855_vm6, %v6185_v14  ;;  %5617 = vmatprep.mubr.msk.f32.mxu1 %vm58_vm1, %v6327_v7  ;;  %v6335_v14 = vld [vmem:[%s7761_s0 + $0x50] sm:$0xff] }
 0x6c9   :  { %6198 = vtanh.f32 %v3103_v55  ;;  %v3118_v17 = vadd.f32 %v5523_v15, %v7306_v29  ;;  %v6336_v55 = vld [vmem:[%s7761_s0 + $0x58] sm:$0xff]  ;;  %v6337_v15 = vld [vmem:[%s7761_s0 + $0x60] sm:$0xff] }
 0x6ca   :  { %v6187_v16 = vpop.eup %6186  ;;  %6200 = vtanh.f32 %v3108_v3  ;;  %v3112_v46 = vpop.f32.mrf.mxu1  ;;  %v6333_v3 = vld [vmem:[%s7761_s0 + $0x40] sm:$0xff] }
 0x6cb   :  { %v6189_v18 = vpop.eup %6188  ;;  %v3113_v60 = vadd.f32 %v7306_v29, %v3112_v46  ;;  %5561 = vmatprep.mubr.msk.f32.mxu0 %vm2855_vm6, %v6187_v16  ;;  %5618 = vmatmul.mubr.msk.f32.gmra.mxu1 %vm58_vm1, %v6328_v8  ;;  %v6338_v16 = vld [vmem:[%s7761_s0 + $0x68] sm:$0xff]  ;;  %v6340_v46 = vld [vmem:[%s7761_s0 + $0x78] sm:$0xff] }
 0x6cc   :  { %v5526_v20 = vpop.f32.mrf.mxu1  ;;  %5562 = vmatmul.mubr.msk.f32.gmra.mxu0 %vm2855_vm6, %v6189_v18  ;;  %5620 = vmatprep.mubr.msk.f32.mxu1 %vm58_vm1, %v6329_v9  ;;  %v6341_v18 = vld [vmem:[%s7761_s0 + $0x80] sm:$0xff] }
 0x6cd   :  { %6202 = vtanh.f32 %v3113_v60  ;;  %v3128_v6 = vadd.f32 %v5526_v20, %v7306_v29  ;;  %v6342_v60 = vld [vmem:[%s7761_s0 + $0x88] sm:$0xff]  ;;  %v6343_v20 = vld [vmem:[%s7761_s0 + $0x90] sm:$0xff] }
 0x6ce   :  { %v6191_v22 = vpop.eup %6190  ;;  %6204 = vtanh.f32 %v3118_v17  ;;  %v3122_v23 = vpop.f32.mrf.mxu1  ;;  %v6339_v17 = vld [vmem:[%s7761_s0 + $0x70] sm:$0xff] }
 0x6cf   :  { %v6193_v24 = vpop.eup %6192  ;;  %v3123_v25 = vadd.f32 %v7306_v29, %v3122_v23  ;;  %5564 = vmatprep.mubr.msk.f32.mxu0 %vm2855_vm6, %v6191_v22  ;;  %5621 = vmatmul.mubr.msk.f32.gmra.mxu1 %vm58_vm1, %v6330_v10  ;;  %v6344_v22 = vld [vmem:[%s7761_s0 + $0x98] sm:$0xff]  ;;  %v6346_v23 = vld [vmem:[%s7761_s0 + $0xa8] sm:$0xff] }
 0x6d0   :  { %v5529_v26 = vpop.f32.mrf.mxu1  ;;  %5565 = vmatmul.mubr.msk.f32.gmra.mxu0 %vm2855_vm6, %v6193_v24  ;;  %5623 = vmatprep.mubr.msk.f32.mxu1 %vm58_vm1, %v6331_v11  ;;  %v6347_v24 = vld [vmem:[%s7761_s0 + $0xb0] sm:$0xff] }
 0x6d1   :  { %6206 = vtanh.f32 %v3123_v25  ;;  %v3138_v13 = vadd.f32 %v5529_v26, %v7306_v29  ;;  %v6348_v25 = vld [vmem:[%s7761_s0 + $0xb8] sm:$0xff]  ;;  %v6349_v26 = vld [vmem:[%s7761_s0 + $0xc0] sm:$0xff] }
 0x6d2   :  { %v6195_v28 = vpop.eup %6194  ;;  %6208 = vtanh.f32 %v3128_v6  ;;  %v3132_v30 = vpop.f32.mrf.mxu1  ;;  %v6345_v6 = vld [vmem:[%s7761_s0 + $0xa0] sm:$0xff] }
 0x6d3   :  { %v6197_v19 = vpop.eup %6196  ;;  %v3133_v31 = vadd.f32 %v7306_v29, %v3132_v30  ;;  %5567 = vmatprep.mubr.msk.f32.mxu0 %vm2855_vm6, %v6195_v28  ;;  %5624 = vmatmul.mubr.msk.f32.gmra.mxu1 %vm58_vm1, %v6332_v54  ;;  %v6350_v28 = vld [vmem:[%s7761_s0 + $0xc8] sm:$0xff]  ;;  %v6352_v30 = vld [vmem:[%s7761_s0 + $0xd8] sm:$0xff] }
 0x6d4   :  { %v5532_v32 = vpop.f32.mrf.mxu1  ;;  %5568 = vmatmul.mubr.msk.f32.gmra.mxu0 %vm2855_vm6, %v6197_v19  ;;  %5626 = vmatprep.mubr.msk.f32.mxu1 %vm58_vm1, %v6333_v3  ;;  %v6353_v19 = vld [vmem:[%s7761_s0 + $0xe0] sm:$0xff] }
 0x6d5   :  { %6210 = vtanh.f32 %v3133_v31  ;;  %v3148_v1 = vadd.f32 %v5532_v32, %v7306_v29  ;;  %v6354_v31 = vld [vmem:[%s7761_s0 + $0xe8] sm:$0xff]  ;;  %v6355_v32 = vld [vmem:[%s7761_s0 + $0xf0] sm:$0xff] }
 0x6d6   :  { %v6199_v33 = vpop.eup %6198  ;;  %6212 = vtanh.f32 %v3138_v13  ;;  %v3142_v34 = vpop.f32.mrf.mxu1  ;;  %v6351_v13 = vld [vmem:[%s7761_s0 + $0xd0] sm:$0xff] }
 0x6d7   :  { %v6201_v27 = vpop.eup %6200  ;;  %v3143_v35 = vadd.f32 %v7306_v29, %v3142_v34  ;;  %5570 = vmatprep.mubr.msk.f32.mxu0 %vm2855_vm6, %v6199_v33  ;;  %5627 = vmatmul.mubr.msk.f32.gmra.mxu1 %vm58_vm1, %v6334_v12  ;;  %v6356_v33 = vld [vmem:[%s7761_s0 + $0xf8] sm:$0xff] }
 0x6d8   :  { %v5535_v36 = vpop.f32.mrf.mxu1  ;;  %5571 = vmatmul.mubr.msk.f32.gmra.mxu0 %vm2855_vm6, %v6201_v27  ;;  %5629 = vmatprep.mubr.msk.f32.mxu1 %vm58_vm1, %v6335_v14 }
 0x6d9   :  { %6214 = vtanh.f32 %v3143_v35  ;;  %v3158_v37 = vadd.f32 %v5535_v36, %v7306_v29 }
 0x6da   :  { %v6203_v5 = vpop.eup %6202  ;;  %6216 = vtanh.f32 %v3148_v1  ;;  %v3152_v38 = vpop.f32.mrf.mxu1  ;;  %v7514_v1 = vld [vmem:[%s7760_s1 + $0x158] ss:$0 sm:$0xff] }
 0x6db   :  { %v6205_v39 = vpop.eup %6204  ;;  %v3153_v40 = vadd.f32 %v7306_v29, %v3152_v38  ;;  %5573 = vmatprep.mubr.msk.f32.mxu0 %vm2855_vm6, %v6203_v5  ;;  %5630 = vmatmul.mubr.msk.f32.gmra.mxu1 %vm58_vm1, %v6336_v55 }
 0x6dc   :  { %v5538_v58 = vpop.f32.mrf.mxu1  ;;  %5574 = vmatmul.mubr.msk.f32.gmra.mxu0 %vm2855_vm6, %v6205_v39  ;;  %5632 = vmatprep.mubr.msk.f32.mxu1 %vm58_vm1, %v6337_v15 }
 0x6dd   :  { %6218 = vtanh.f32 %v3153_v40  ;;  %v3168_v41 = vadd.f32 %v5538_v58, %v7306_v29 }
 0x6de   :  { %v6207_v45 = vpop.eup %6206  ;;  %6220 = vtanh.f32 %v3158_v37  ;;  %v3162_v42 = vpop.f32.mrf.mxu1 }
 0x6df   :  { %v6209_v43 = vpop.eup %6208  ;;  %v3163_v44 = vadd.f32 %v7306_v29, %v3162_v42  ;;  %5576 = vmatprep.mubr.msk.f32.mxu0 %vm2855_vm6, %v6207_v45  ;;  %5633 = vmatmul.mubr.msk.f32.gmra.mxu1 %vm58_vm1, %v6338_v16 }
 0x6e0   :  { %v5541_v47 = vpop.f32.mrf.mxu1  ;;  %5577 = vmatmul.mubr.msk.f32.gmra.mxu0 %vm2855_vm6, %v6209_v43  ;;  %5635 = vmatprep.mubr.msk.f32.mxu1 %vm58_vm1, %v6339_v17 }
 0x6e1   :  { %6222 = vtanh.f32 %v3163_v44  ;;  %v3178_v49 = vadd.f32 %v5541_v47, %v7306_v29 }
 0x6e2   :  { %v6211_v48 = vpop.eup %6210  ;;  %6224 = vtanh.f32 %v3168_v41  ;;  %v3172_v50 = vpop.f32.mrf.mxu1 }
 0x6e3   :  { %v6213_v51 = vpop.eup %6212  ;;  %v3173_v56 = vadd.f32 %v7306_v29, %v3172_v50  ;;  %5579 = vmatprep.mubr.msk.f32.mxu0 %vm2855_vm6, %v6211_v48  ;;  %5636 = vmatmul.mubr.msk.f32.gmra.mxu1 %vm58_vm1, %v6340_v46 }
 0x6e4   :  { %5580 = vmatmul.mubr.msk.f32.gmra.mxu0 %vm2855_vm6, %v6213_v51  ;;  %5638 = vmatprep.mubr.msk.f32.mxu1 %vm58_vm1, %v6341_v18 }
 0x6e5   :  { %6226 = vtanh.f32 %v3173_v56 }
 0x6e6   :  { %v6215_v52 = vpop.eup %6214  ;;  %6228 = vtanh.f32 %v3178_v49 }
 0x6e7   :  { %v6217_v57 = vpop.eup %6216  ;;  %5582 = vmatprep.mubr.msk.f32.mxu0 %vm2855_vm6, %v6215_v52  ;;  %5639 = vmatmul.mubr.msk.f32.gmra.mxu1 %vm58_vm1, %v6342_v60 }
 0x6e8   :  { %5583 = vmatmul.mubr.msk.f32.gmra.mxu0 %vm2855_vm6, %v6217_v57  ;;  %5641 = vmatprep.mubr.msk.f32.mxu1 %vm58_vm1, %v6343_v20 }
 0x6ea   :  { %v6219_v59 = vpop.eup %6218 }
 0x6eb   :  { %v6221_v61 = vpop.eup %6220  ;;  %5585 = vmatprep.mubr.msk.f32.mxu0 %vm2855_vm6, %v6219_v59  ;;  %5642 = vmatmul.mubr.msk.f32.gmra.mxu1 %vm58_vm1, %v6344_v22 }
 0x6ec   :  { %5586 = vmatmul.mubr.msk.f32.gmra.mxu0 %vm2855_vm6, %v6221_v61  ;;  %5644 = vmatprep.mubr.msk.f32.mxu1 %vm58_vm1, %v6345_v6 }
 0x6ee   :  { %v6223_v62 = vpop.eup %6222 }
 0x6ef   :  { %v6225_v29 = vpop.eup %6224  ;;  %5588 = vmatprep.mubr.msk.f32.mxu0 %vm2855_vm6, %v6223_v62  ;;  %5645 = vmatmul.mubr.msk.f32.gmra.mxu1 %vm58_vm1, %v6346_v23 }
 0x6f0   :  { %5589 = vmatmul.mubr.msk.f32.gmra.mxu0 %vm2855_vm6, %v6225_v29  ;;  %5647 = vmatprep.mubr.msk.f32.mxu1 %vm58_vm1, %v6347_v24 }
 0x6f2   :  { %v6227_v63 = vpop.eup %6226 }
 0x6f3   :  { %v6229_v53 = vpop.eup %6228  ;;  %5591 = vmatprep.mubr.msk.f32.mxu0 %vm2855_vm6, %v6227_v63  ;;  %5648 = vmatmul.mubr.msk.f32.gmra.mxu1 %vm58_vm1, %v6348_v25 }
 0x6f4   :  { %5592 = vmatmul.mubr.msk.f32.gmra.mxu0 %vm2855_vm6, %v6229_v53  ;;  %5650 = vmatprep.mubr.msk.f32.mxu1 %vm58_vm1, %v6349_v26 }
 0x6f7   :  { %5651 = vmatmul.mubr.msk.f32.gmra.mxu1 %vm58_vm1, %v6350_v28 }
 0x6f8   :  { %5653 = vmatprep.mubr.msk.f32.mxu1 %vm58_vm1, %v6351_v13 }
 0x6fb   :  { %5654 = vmatmul.mubr.msk.f32.gmra.mxu1 %vm58_vm1, %v6352_v30 }
 0x6fc   :  { %5656 = vmatprep.mubr.msk.f32.mxu1 %vm58_vm1, %v6353_v19 }
 0x6ff   :  { %5657 = vmatmul.mubr.msk.f32.gmra.mxu1 %vm58_vm1, %v6354_v31 }
 0x700   :  { %5659 = vmatprep.mubr.msk.f32.mxu1 %vm58_vm1, %v6355_v32 }
 0x703   :  { %5660 = vmatmul.mubr.msk.f32.gmra.mxu1 %vm58_vm1, %v6356_v33 }
 0x778   :  { %v5548_v34 = vpop.f32.mrf.mxu0 }
 0x779   :  { %v3391_v27 = vadd.f32 %v5548_v34, %v7514_v1 }
 0x77a   :  { %v3385_v35 = vpop.f32.mrf.mxu0 }
 0x77b   :  { %v3386_v36 = vadd.f32 %v7514_v1, %v3385_v35 }
 0x77c   :  { %v5551_v5 = vpop.f32.mrf.mxu0 }
 0x77d   :  { %6230 = vtanh.f32 %v3386_v36  ;;  %v3401_v37 = vadd.f32 %v5551_v5, %v7514_v1 }
 0x77e   :  { %6232 = vtanh.f32 %v3391_v27  ;;  %v3395_v38 = vpop.f32.mrf.mxu0 }
 0x77f   :  { %v3396_v39 = vadd.f32 %v7514_v1, %v3395_v38 }
 0x780   :  { %v5554_v40 = vpop.f32.mrf.mxu0 }
 0x781   :  { %6234 = vtanh.f32 %v3396_v39  ;;  %v3411_v58 = vadd.f32 %v5554_v40, %v7514_v1 }
 0x782   :  { %6236 = vtanh.f32 %v3401_v37  ;;  %v3405_v45 = vpop.f32.mrf.mxu0 }
 0x783   :  { %v3406_v41 = vadd.f32 %v7514_v1, %v3405_v45 }
 0x784   :  { %v5557_v42 = vpop.f32.mrf.mxu0 }
 0x785   :  { %6238 = vtanh.f32 %v3406_v41  ;;  %v3421_v43 = vadd.f32 %v5557_v42, %v7514_v1 }
 0x786   :  { %6240 = vtanh.f32 %v3411_v58  ;;  %v3415_v44 = vpop.f32.mrf.mxu0 }
 0x787   :  { %v3416_v47 = vadd.f32 %v7514_v1, %v3415_v44 }
 0x788   :  { %v5560_v48 = vpop.f32.mrf.mxu0 }
 0x789   :  { %6242 = vtanh.f32 %v3416_v47  ;;  %v3431_v50 = vadd.f32 %v5560_v48, %v7514_v1 }
 0x78a   :  { %v6231_v49 = vpop.eup %6230  ;;  %6244 = vtanh.f32 %v3421_v43  ;;  %v3425_v51 = vpop.f32.mrf.mxu0 }
 0x78b   :  { %v6233_v56 = vpop.eup %6232  ;;  %v3426_v52 = vadd.f32 %v7514_v1, %v3425_v51  ;;  %5668 = vmatprep.mubr.msk.f32.mxu0 %vm3817_vm7, %v6231_v49 }
 0x78c   :  { %v5563_v57 = vpop.f32.mrf.mxu0  ;;  %5669 = vmatmul.mubr.msk.f32.vlgmr.msra.gmra.mxu0 %vm3817_vm7, %v6233_v56 }
 0x78d   :  { %6246 = vtanh.f32 %v3426_v52  ;;  %v3441_v61 = vadd.f32 %v5563_v57, %v7514_v1 }
 0x78e   :  { %v6235_v59 = vpop.eup %6234  ;;  %6248 = vtanh.f32 %v3431_v50  ;;  %v3435_v62 = vpop.f32.mrf.mxu0 }
 0x78f   :  { %v6237_v29 = vpop.eup %6236  ;;  %v3436_v63 = vadd.f32 %v7514_v1, %v3435_v62  ;;  %5671 = vmatprep.mubr.msk.f32.mxu0 %vm3817_vm7, %v6235_v59 }
 0x790   :  { %v5566_v53 = vpop.f32.mrf.mxu0  ;;  %5672 = vmatmul.mubr.msk.f32.gmra.mxu0 %vm3817_vm7, %v6237_v29 }
 0x791   :  { %6250 = vtanh.f32 %v3436_v63  ;;  %v3451_v2 = vadd.f32 %v5566_v53, %v7514_v1 }
 0x792   :  { %v6239_v0 = vpop.eup %6238  ;;  %6252 = vtanh.f32 %v3441_v61  ;;  %v3445_v4 = vpop.f32.mrf.mxu0 }
 0x793   :  { %v6241_v21 = vpop.eup %6240  ;;  %v3446_v7 = vadd.f32 %v7514_v1, %v3445_v4  ;;  %5674 = vmatprep.mubr.msk.f32.mxu0 %vm3817_vm7, %v6239_v0 }
 0x794   :  { %v5569_v8 = vpop.f32.mrf.mxu0  ;;  %5675 = vmatmul.mubr.msk.f32.gmra.mxu0 %vm3817_vm7, %v6241_v21  ;;  %v5616_v21 = vpop.f32.mrf.mxu1 }
 0x795   :  { %6254 = vtanh.f32 %v3446_v7  ;;  %v3461_v10 = vadd.f32 %v5569_v8, %v7514_v1 }
 0x796   :  { %v6243_v9 = vpop.eup %6242  ;;  %6256 = vtanh.f32 %v3451_v2  ;;  %v3455_v11 = vpop.f32.mrf.mxu0 }
 0x797   :  { %v6245_v54 = vpop.eup %6244  ;;  %v3456_v3 = vadd.f32 %v7514_v1, %v3455_v11  ;;  %5677 = vmatprep.mubr.msk.f32.mxu0 %vm3817_vm7, %v6243_v9  ;;  %v3658_v7 = vpop.f32.mrf.mxu1 }
 0x798   :  { %v5572_v12 = vpop.f32.mrf.mxu0  ;;  %5678 = vmatmul.mubr.msk.f32.gmra.mxu0 %vm3817_vm7, %v6245_v54 }
 0x799   :  { %6258 = vtanh.f32 %v3456_v3  ;;  %v3471_v55 = vadd.f32 %v5572_v12, %v7514_v1  ;;  %v5619_v8 = vpop.f32.mrf.mxu1 }
 0x79a   :  { %v6247_v14 = vpop.eup %6246  ;;  %6260 = vtanh.f32 %v3461_v10  ;;  %v3465_v15 = vpop.f32.mrf.mxu0 }
 0x79b   :  { %v6249_v16 = vpop.eup %6248  ;;  %v3466_v17 = vadd.f32 %v7514_v1, %v3465_v15  ;;  %5680 = vmatprep.mubr.msk.f32.mxu0 %vm3817_vm7, %v6247_v14  ;;  %v3668_v9 = vpop.f32.mrf.mxu1 }
 0x79c   :  { %v5575_v46 = vpop.f32.mrf.mxu0  ;;  %5681 = vmatmul.mubr.msk.f32.gmra.mxu0 %vm3817_vm7, %v6249_v16 }
 0x79d   :  { %6262 = vtanh.f32 %v3466_v17  ;;  %v3481_v60 = vadd.f32 %v5575_v46, %v7514_v1  ;;  %v5622_v10 = vpop.f32.mrf.mxu1 }
 0x79e   :  { %v6251_v18 = vpop.eup %6250  ;;  %6264 = vtanh.f32 %v3471_v55  ;;  %v3475_v20 = vpop.f32.mrf.mxu0 }
 0x79f   :  { %v6253_v22 = vpop.eup %6252  ;;  %v3476_v6 = vadd.f32 %v7514_v1, %v3475_v20  ;;  %5683 = vmatprep.mubr.msk.f32.mxu0 %vm3817_vm7, %v6251_v18  ;;  %v3678_v11 = vpop.f32.mrf.mxu1  ;;  %v7589_v20 = vld [vmem:[%s7760_s1 + $0x1c8] ss:$0 sm:$0xff] }
 0x7a0   :  { %v5578_v23 = vpop.f32.mrf.mxu0  ;;  %5684 = vmatmul.mubr.msk.f32.gmra.mxu0 %vm3817_vm7, %v6253_v22 }
 0x7a1   :  { %6266 = vtanh.f32 %v3476_v6  ;;  %v3491_v25 = vadd.f32 %v5578_v23, %v7514_v1  ;;  %v5625_v54 = vpop.f32.mrf.mxu1 }
 0x7a2   :  { %v6255_v24 = vpop.eup %6254  ;;  %6268 = vtanh.f32 %v3481_v60  ;;  %v3485_v26 = vpop.f32.mrf.mxu0 }
 0x7a3   :  { %v6257_v28 = vpop.eup %6256  ;;  %v3486_v13 = vadd.f32 %v7514_v1, %v3485_v26  ;;  %5686 = vmatprep.mubr.msk.f32.mxu0 %vm3817_vm7, %v6255_v24  ;;  %v3688_v3 = vpop.f32.mrf.mxu1 }
 0x7a4   :  { %v5581_v30 = vpop.f32.mrf.mxu0  ;;  %5687 = vmatmul.mubr.msk.f32.gmra.mxu0 %vm3817_vm7, %v6257_v28 }
 0x7a5   :  { %6270 = vtanh.f32 %v3486_v13  ;;  %v3501_v31 = vadd.f32 %v5581_v30, %v7514_v1  ;;  %v5628_v12 = vpop.f32.mrf.mxu1 }
 0x7a6   :  { %v6259_v19 = vpop.eup %6258  ;;  %6272 = vtanh.f32 %v3491_v25  ;;  %v3495_v32 = vpop.f32.mrf.mxu0 }
 0x7a7   :  { %v6261_v33 = vpop.eup %6260  ;;  %v3496_v34 = vadd.f32 %v7514_v1, %v3495_v32  ;;  %5689 = vmatprep.mubr.msk.f32.mxu0 %vm3817_vm7, %v6259_v19  ;;  %v3698_v14 = vpop.f32.mrf.mxu1 }
 0x7a8   :  { %v5584_v27 = vpop.f32.mrf.mxu0  ;;  %5690 = vmatmul.mubr.msk.f32.gmra.mxu0 %vm3817_vm7, %v6261_v33 }
 0x7a9   :  { %6274 = vtanh.f32 %v3496_v34  ;;  %v3511_v36 = vadd.f32 %v5584_v27, %v7514_v1  ;;  %v5631_v55 = vpop.f32.mrf.mxu1 }
 0x7aa   :  { %v6263_v35 = vpop.eup %6262  ;;  %6276 = vtanh.f32 %v3501_v31  ;;  %v3505_v5 = vpop.f32.mrf.mxu0 }
 0x7ab   :  { %v6265_v37 = vpop.eup %6264  ;;  %v3506_v38 = vadd.f32 %v7514_v1, %v3505_v5  ;;  %5692 = vmatprep.mubr.msk.f32.mxu0 %vm3817_vm7, %v6263_v35  ;;  %v3708_v15 = vpop.f32.mrf.mxu1 }
 0x7ac   :  { %v5587_v39 = vpop.f32.mrf.mxu0  ;;  %5693 = vmatmul.mubr.msk.f32.gmra.mxu0 %vm3817_vm7, %v6265_v37 }
 0x7ad   :  { %6278 = vtanh.f32 %v3506_v38  ;;  %v3521_v58 = vadd.f32 %v5587_v39, %v7514_v1  ;;  %v5634_v16 = vpop.f32.mrf.mxu1 }
 0x7ae   :  { %v6267_v40 = vpop.eup %6266  ;;  %6280 = vtanh.f32 %v3511_v36  ;;  %v3515_v45 = vpop.f32.mrf.mxu0 }
 0x7af   :  { %v6269_v41 = vpop.eup %6268  ;;  %v3516_v42 = vadd.f32 %v7514_v1, %v3515_v45  ;;  %5695 = vmatprep.mubr.msk.f32.mxu0 %vm3817_vm7, %v6267_v40  ;;  %v7580_v17 = vpop.f32.mrf.mxu1 }
 0x7b0   :  { %v5590_v43 = vpop.f32.mrf.mxu0  ;;  %5696 = vmatmul.mubr.msk.f32.gmra.mxu0 %vm3817_vm7, %v6269_v41 }
 0x7b1   :  { %6282 = vtanh.f32 %v3516_v42  ;;  %v3531_v47 = vadd.f32 %v5590_v43, %v7514_v1  ;;  %v7582_v46 = vpop.f32.mrf.mxu1 }
 0x7b2   :  { %v6271_v44 = vpop.eup %6270  ;;  %6284 = vtanh.f32 %v3521_v58  ;;  %v3525_v48 = vpop.f32.mrf.mxu0 }
 0x7b3   :  { %v6273_v49 = vpop.eup %6272  ;;  %v3526_v50 = vadd.f32 %v7514_v1, %v3525_v48  ;;  %5698 = vmatprep.mubr.msk.f32.mxu0 %vm3817_vm7, %v6271_v44  ;;  %v7584_v18 = vpop.f32.mrf.mxu1 }
 0x7b4   :  { %v5593_v51 = vpop.f32.mrf.mxu0  ;;  %5699 = vmatmul.mubr.msk.f32.gmra.mxu0 %vm3817_vm7, %v6273_v49 }
 0x7b5   :  { %6286 = vtanh.f32 %v3526_v50  ;;  %v3541_v52 = vadd.f32 %v5593_v51, %v7514_v1  ;;  %v7591_v23 = vpop.f32.mrf.mxu1 }
 0x7b6   :  { %v6275_v56 = vpop.eup %6274  ;;  %6288 = vtanh.f32 %v3531_v47  ;;  %v3535_v57 = vpop.f32.mrf.mxu0 }
 0x7b7   :  { %v6277_v59 = vpop.eup %6276  ;;  %v3536_v61 = vadd.f32 %v7514_v1, %v3535_v57  ;;  %5701 = vmatprep.mubr.msk.f32.mxu0 %vm3817_vm7, %v6275_v56  ;;  %v7599_v19 = vpop.f32.mrf.mxu1 }
 0x7b8   :  { %5702 = vmatmul.mubr.msk.f32.gmra.mxu0 %vm3817_vm7, %v6277_v59 }
 0x7b9   :  { %6290 = vtanh.f32 %v3536_v61  ;;  %v5643_v36 = vpop.f32.mrf.mxu1 }
 0x7ba   :  { %v6279_v62 = vpop.eup %6278  ;;  %6292 = vtanh.f32 %v3541_v52 }
 0x7bb   :  { %v6281_v29 = vpop.eup %6280  ;;  %5704 = vmatprep.mubr.msk.f32.mxu0 %vm3817_vm7, %v6279_v62  ;;  %v3748_v45 = vpop.f32.mrf.mxu1 }
 0x7bc   :  { %5705 = vmatmul.mubr.msk.f32.gmra.mxu0 %vm3817_vm7, %v6281_v29 }
 0x7bd   :  { %v5646_v49 = vpop.f32.mrf.mxu1 }
 0x7be   :  { %v6283_v63 = vpop.eup %6282 }
 0x7bf   :  { %v6285_v53 = vpop.eup %6284  ;;  %5707 = vmatprep.mubr.msk.f32.mxu0 %vm3817_vm7, %v6283_v63  ;;  %v3758_v61 = vpop.f32.mrf.mxu1 }
 0x7c0   :  { %5708 = vmatmul.mubr.msk.f32.gmra.mxu0 %vm3817_vm7, %v6285_v53 }
 0x7c2   :  { %v6287_v0 = vpop.eup %6286 }
 0x7c3   :  { %v6289_v1 = vpop.eup %6288  ;;  %5710 = vmatprep.mubr.msk.f32.mxu0 %vm3817_vm7, %v6287_v0 }
 0x7c4   :  { %5711 = vmatmul.mubr.msk.f32.gmra.mxu0 %vm3817_vm7, %v6289_v1 }
 0x7c6   :  { %v6291_v2 = vpop.eup %6290 }
 0x7c7   :  { %v6293_v4 = vpop.eup %6292  ;;  %5713 = vmatprep.mubr.msk.f32.mxu0 %vm3817_vm7, %v6291_v2  ;;  %v5649_v2 = vpop.f32.mrf.mxu1 }
 0x7c8   :  { %5714 = vmatmul.mubr.msk.f32.gmra.mxu0 %vm3817_vm7, %v6293_v4 }
 0x84c   :  { %v5670_v60 = vpop.f32.mrf.mxu0 }
 0x84d   :  { %v3986_v22 = vadd.f32 %v5670_v60, %v5616_v21 }
 0x84e   :  { %v3980_v6 = vpop.f32.mrf.mxu0 }
 0x84f   :  { %v4145_v24 = vadd.f32 %v7589_v20, %v3986_v22  ;;  %v3981_v25 = vadd.f32 %v3980_v6, %v3658_v7 }
 0x850   :  { %v5673_v26 = vpop.f32.mrf.mxu0 }
 0x851   :  { %4178 = vst.msk [vmem:[%s7762_s2 + $0x8] sm:$0xff] %vm4176_vm8, %v4145_v24  ;;  %v4144_v28 = vadd.f32 %v7589_v20, %v3981_v25  ;;  %v3996_v13 = vadd.f32 %v5673_v26, %v5619_v8 }
 0x852   :  { %v3990_v30 = vpop.f32.mrf.mxu0 }
 0x853   :  { %4177 = vst.msk [vmem:[%s7762_s2] sm:$0xff] %vm4176_vm8, %v4144_v28  ;;  %v4147_v31 = vadd.f32 %v7589_v20, %v3996_v13  ;;  %v3991_v32 = vadd.f32 %v3990_v30, %v3668_v9 }
 0x854   :  { %v5676_v33 = vpop.f32.mrf.mxu0 }
 0x855   :  { %4180 = vst.msk [vmem:[%s7762_s2 + $0x18] sm:$0xff] %vm4176_vm8, %v4147_v31  ;;  %v4146_v34 = vadd.f32 %v7589_v20, %v3991_v32  ;;  %v4006_v27 = vadd.f32 %v5676_v33, %v5622_v10 }
 0x856   :  { %v4000_v35 = vpop.f32.mrf.mxu0 }
 0x857   :  { %4179 = vst.msk [vmem:[%s7762_s2 + $0x10] sm:$0xff] %vm4176_vm8, %v4146_v34  ;;  %v4149_v5 = vadd.f32 %v7589_v20, %v4006_v27  ;;  %v4001_v37 = vadd.f32 %v4000_v35, %v3678_v11  ;;  %v3768_v11 = vpop.f32.mrf.mxu1 }
 0x858   :  { %v5679_v38 = vpop.f32.mrf.mxu0 }
 0x859   :  { %4182 = vst.msk [vmem:[%s7762_s2 + $0x28] sm:$0xff] %vm4176_vm8, %v4149_v5  ;;  %v4148_v39 = vadd.f32 %v7589_v20, %v4001_v37  ;;  %v4016_v40 = vadd.f32 %v5679_v38, %v5625_v54 }
 0x85a   :  { %v4010_v58 = vpop.f32.mrf.mxu0 }
 0x85b   :  { %4181 = vst.msk [vmem:[%s7762_s2 + $0x20] sm:$0xff] %vm4176_vm8, %v4148_v39  ;;  %v4151_v41 = vadd.f32 %v7589_v20, %v4016_v40  ;;  %v4011_v42 = vadd.f32 %v4010_v58, %v3688_v3 }
 0x85c   :  { %v5682_v43 = vpop.f32.mrf.mxu0 }
 0x85d   :  { %4184 = vst.msk [vmem:[%s7762_s2 + $0x38] sm:$0xff] %vm4176_vm8, %v4151_v41  ;;  %v4150_v44 = vadd.f32 %v7589_v20, %v4011_v42  ;;  %v4026_v47 = vadd.f32 %v5682_v43, %v5628_v12 }
 0x85e   :  { %v4020_v48 = vpop.f32.mrf.mxu0 }
 0x85f   :  { %4183 = vst.msk [vmem:[%s7762_s2 + $0x30] sm:$0xff] %vm4176_vm8, %v4150_v44  ;;  %v4153_v50 = vadd.f32 %v7589_v20, %v4026_v47  ;;  %v4021_v51 = vadd.f32 %v4020_v48, %v3698_v14 }
 0x860   :  { %v5685_v56 = vpop.f32.mrf.mxu0 }
 0x861   :  { %4186 = vst.msk [vmem:[%s7762_s2 + $0x48] sm:$0xff] %vm4176_vm8, %v4153_v50  ;;  %v4152_v52 = vadd.f32 %v7589_v20, %v4021_v51  ;;  %v4036_v57 = vadd.f32 %v5685_v56, %v5631_v55 }
 0x862   :  { %v4030_v59 = vpop.f32.mrf.mxu0 }
 0x863   :  { %4185 = vst.msk [vmem:[%s7762_s2 + $0x40] sm:$0xff] %vm4176_vm8, %v4152_v52  ;;  %v4155_v62 = vadd.f32 %v7589_v20, %v4036_v57  ;;  %v4031_v29 = vadd.f32 %v4030_v59, %v3708_v15 }
 0x864   :  { %v5688_v63 = vpop.f32.mrf.mxu0 }
 0x865   :  { %4188 = vst.msk [vmem:[%s7762_s2 + $0x58] sm:$0xff] %vm4176_vm8, %v4155_v62  ;;  %v4154_v53 = vadd.f32 %v7589_v20, %v4031_v29  ;;  %v4046_v0 = vadd.f32 %v5688_v63, %v5634_v16  ;;  %v5652_v16 = vpop.f32.mrf.mxu1 }
 0x866   :  { %v4040_v1 = vpop.f32.mrf.mxu0 }
 0x867   :  { %4187 = vst.msk [vmem:[%s7762_s2 + $0x50] sm:$0xff] %vm4176_vm8, %v4154_v53  ;;  %v4157_v4 = vadd.f32 %v7589_v20, %v4046_v0  ;;  %v4041_v21 = vadd.f32 %v4040_v1, %v7580_v17 }
 0x868   :  { %v5691_v7 = vpop.f32.mrf.mxu0 }
 0x869   :  { %4190 = vst.msk [vmem:[%s7762_s2 + $0x68] sm:$0xff] %vm4176_vm8, %v4157_v4  ;;  %v4156_v8 = vadd.f32 %v7589_v20, %v4041_v21  ;;  %v4056_v9 = vadd.f32 %v5691_v7, %v7582_v46 }
 0x86a   :  { %v4050_v10 = vpop.f32.mrf.mxu0 }
 0x86b   :  { %4189 = vst.msk [vmem:[%s7762_s2 + $0x60] sm:$0xff] %vm4176_vm8, %v4156_v8  ;;  %v4159_v54 = vadd.f32 %v7589_v20, %v4056_v9  ;;  %v4051_v3 = vadd.f32 %v4050_v10, %v7584_v18 }
 0x86c   :  { %v5694_v12 = vpop.f32.mrf.mxu0 }
 0x86d   :  { %4192 = vst.msk [vmem:[%s7762_s2 + $0x78] sm:$0xff] %vm4176_vm8, %v4159_v54  ;;  %v4158_v14 = vadd.f32 %v7589_v20, %v4051_v3  ;;  %v4066_v55 = vadd.f32 %v5694_v12, %v7591_v23  ;;  %v3778_v23 = vpop.f32.mrf.mxu1 }
 0x86e   :  { %v4060_v15 = vpop.f32.mrf.mxu0 }
 0x86f   :  { %4191 = vst.msk [vmem:[%s7762_s2 + $0x70] sm:$0xff] %vm4176_vm8, %v4158_v14  ;;  %v4161_v17 = vadd.f32 %v7589_v20, %v4066_v55  ;;  %v4061_v46 = vadd.f32 %v4060_v15, %v7599_v19  ;;  %v5655_v19 = vpop.f32.mrf.mxu1 }
 0x870   :  { %v5697_v18 = vpop.f32.mrf.mxu0 }
 0x871   :  { %4194 = vst.msk [vmem:[%s7762_s2 + $0x88] sm:$0xff] %vm4176_vm8, %v4161_v17  ;;  %v4160_v60 = vadd.f32 %v7589_v20, %v4061_v46  ;;  %v4076_v22 = vadd.f32 %v5697_v18, %v5643_v36  ;;  %v3788_v36 = vpop.f32.mrf.mxu1 }
 0x872   :  { %v4070_v6 = vpop.f32.mrf.mxu0 }
 0x873   :  { %4193 = vst.msk [vmem:[%s7762_s2 + $0x80] sm:$0xff] %vm4176_vm8, %v4160_v60  ;;  %v4163_v24 = vadd.f32 %v7589_v20, %v4076_v22  ;;  %v4071_v25 = vadd.f32 %v4070_v6, %v3748_v45  ;;  %v5658_v45 = vpop.f32.mrf.mxu1 }
 0x874   :  { %v5700_v26 = vpop.f32.mrf.mxu0 }
 0x875   :  { %4196 = vst.msk [vmem:[%s7762_s2 + $0x98] sm:$0xff] %vm4176_vm8, %v4163_v24  ;;  %v4162_v28 = vadd.f32 %v7589_v20, %v4071_v25  ;;  %v4086_v13 = vadd.f32 %v5700_v26, %v5646_v49  ;;  %v3798_v49 = vpop.f32.mrf.mxu1 }
 0x876   :  { %v4080_v30 = vpop.f32.mrf.mxu0 }
 0x877   :  { %4195 = vst.msk [vmem:[%s7762_s2 + $0x90] sm:$0xff] %vm4176_vm8, %v4162_v28  ;;  %v4165_v31 = vadd.f32 %v7589_v20, %v4086_v13  ;;  %v4081_v32 = vadd.f32 %v4080_v30, %v3758_v61  ;;  %v5661_v59 = vpop.f32.mrf.mxu1 }
 0x878   :  { %v5703_v33 = vpop.f32.mrf.mxu0 }
 0x879   :  { %4198 = vst.msk [vmem:[%s7762_s2 + $0xa8] sm:$0xff] %vm4176_vm8, %v4165_v31  ;;  %v4164_v34 = vadd.f32 %v7589_v20, %v4081_v32  ;;  %v4096_v27 = vadd.f32 %v5703_v33, %v5649_v2  ;;  %v3808_v1 = vpop.f32.mrf.mxu1 }
 0x87a   :  { %v4090_v35 = vpop.f32.mrf.mxu0 }
 0x87b   :  { %4197 = vst.msk [vmem:[%s7762_s2 + $0xa0] sm:$0xff] %vm4176_vm8, %v4164_v34  ;;  %v4167_v5 = vadd.f32 %v7589_v20, %v4096_v27  ;;  %v4091_v37 = vadd.f32 %v4090_v35, %v3768_v11 }
 0x87c   :  { %v5706_v38 = vpop.f32.mrf.mxu0 }
 0x87d   :  { %4200 = vst.msk [vmem:[%s7762_s2 + $0xb8] sm:$0xff] %vm4176_vm8, %v4167_v5  ;;  %v4166_v39 = vadd.f32 %v7589_v20, %v4091_v37  ;;  %v4106_v40 = vadd.f32 %v5706_v38, %v5652_v16 }
 0x87e   :  { %v4100_v58 = vpop.f32.mrf.mxu0 }
 0x87f   :  { %4199 = vst.msk [vmem:[%s7762_s2 + $0xb0] sm:$0xff] %vm4176_vm8, %v4166_v39  ;;  %v4169_v41 = vadd.f32 %v7589_v20, %v4106_v40  ;;  %v4101_v42 = vadd.f32 %v4100_v58, %v3778_v23 }
 0x880   :  { %v5709_v43 = vpop.f32.mrf.mxu0 }
 0x881   :  { %4202 = vst.msk [vmem:[%s7762_s2 + $0xc8] sm:$0xff] %vm4176_vm8, %v4169_v41  ;;  %v4168_v44 = vadd.f32 %v7589_v20, %v4101_v42  ;;  %v4116_v47 = vadd.f32 %v5709_v43, %v5655_v19 }
 0x882   :  { %v4110_v48 = vpop.f32.mrf.mxu0 }
 0x883   :  { %4201 = vst.msk [vmem:[%s7762_s2 + $0xc0] sm:$0xff] %vm4176_vm8, %v4168_v44  ;;  %v4171_v50 = vadd.f32 %v7589_v20, %v4116_v47  ;;  %v4111_v51 = vadd.f32 %v4110_v48, %v3788_v36 }
 0x884   :  { %v5712_v56 = vpop.f32.mrf.mxu0 }
 0x885   :  { %4204 = vst.msk [vmem:[%s7762_s2 + $0xd8] sm:$0xff] %vm4176_vm8, %v4171_v50  ;;  %v4170_v52 = vadd.f32 %v7589_v20, %v4111_v51  ;;  %v4126_v57 = vadd.f32 %v5712_v56, %v5658_v45 }
 0x886   :  { %v4120_v61 = vpop.f32.mrf.mxu0 }
 0x887   :  { %4203 = vst.msk [vmem:[%s7762_s2 + $0xd0] sm:$0xff] %vm4176_vm8, %v4170_v52  ;;  %v4173_v62 = vadd.f32 %v7589_v20, %v4126_v57  ;;  %v4121_v29 = vadd.f32 %v4120_v61, %v3798_v49 }
 0x888   :  { %v5715_v63 = vpop.f32.mrf.mxu0 }
 0x889   :  { %4206 = vst.msk [vmem:[%s7762_s2 + $0xe8] sm:$0xff] %vm4176_vm8, %v4173_v62  ;;  %v4172_v53 = vadd.f32 %v7589_v20, %v4121_v29  ;;  %v4136_v0 = vadd.f32 %v5715_v63, %v5661_v59 }
 0x88a   :  { %v4130_v2 = vpop.f32.mrf.mxu0 }
 0x88b   :  { %4205 = vst.msk [vmem:[%s7762_s2 + $0xe0] sm:$0xff] %vm4176_vm8, %v4172_v53  ;;  %v4175_v4 = vadd.f32 %v7589_v20, %v4136_v0  ;;  %v4131_v21 = vadd.f32 %v4130_v2, %v3808_v1 }
 0x88d   :  { %4208 = vst.msk [vmem:[%s7762_s2 + $0xf8] sm:$0xff] %vm4176_vm8, %v4175_v4  ;;  %v4174_v7 = vadd.f32 %v7589_v20, %v4131_v21 }
 0x88f   :  { %4207 = vst.msk [vmem:[%s7762_s2 + $0xf0] sm:$0xff] %vm4176_vm8, %v4174_v7 }

</bundles_post_ra>
